<compile_context>
chip_gen: v7x
topology: tpu7x:2x2x1
jax: 0.10.0
libtpu: 0.0.40
codegen_flags: <defaults>
</compile_context>

<pallas_src>
import functools

import jax
import jax.numpy as jnp
from jax import lax
from jax.experimental import pallas as pl
from jax.experimental.pallas import tpu as pltpu

N_NODES = 8        # num_nodes
CHANNELS = 32      # in_channels (the GCN in the module runs at 32 channels)
BATCH = 2
NUM_LAYERS = 3     # number of stacked gated edge-GCN update blocks
LN_EPS = 1e-5      # torch.nn.LayerNorm default


def _layer_norm(v):
    # LayerNorm over the channel (last) dim, weight=1 bias=0 (bn_init).
    mu = jnp.mean(v, axis=-1, keepdims=True)
    d = v - mu
    var = jnp.mean(d * d, axis=-1, keepdims=True)
    return d * lax.rsqrt(var + LN_EPS)


def gnn_edge_kernel(x_ref, e_ref, wn_ref, we_ref, ox_ref, oe_ref,
                    *, batch, n_nodes, channels):
    B, N, C = batch, n_nodes, channels
    BN = B * N
    BNN = B * N * N
    inv_n = 1.0 / float(N)

    x = x_ref[...]       # (B*N, C) f32
    edge = e_ref[...]    # (B*N*N, C) f32; flat edge index within a batch = i*N + j

    for layer in range(NUM_LAYERS):          # statically unrolled
        wn = wn_ref[layer]                   # (C, 4C) bf16, columns = [A | B | U | V]
        we = we_ref[layer]                   # (C, C)  bf16, = E

        res = x

        # ---- fused node-side matmul: one (B*N, C) @ (C, 4C) MXU op ----------
        xw = jnp.dot(x.astype(jnp.bfloat16), wn,
                     preferred_element_type=jnp.float32)          # (BN, 4C) f32
        vix = xw[:, 0 * C:1 * C]     # A(x): receiver (end) term
        vjx = xw[:, 1 * C:2 * C]     # B(x): sender (start) term
        uix = xw[:, 2 * C:3 * C]     # U(x)
        vx = xw[:, 3 * C:4 * C]      # V(x)

        # ---- edge update -----------------------------------------------------
        e_lin = jnp.dot(edge.astype(jnp.bfloat16), we,
                        preferred_element_type=jnp.float32)       # (BNN, C) f32
        # end @ Vix  : broadcast the receiver term over senders j (sublane bcast)
        vix_e = jnp.broadcast_to(vix.reshape(BN, 1, C), (BN, N, C))
        # start @ Vjx: tile each batch's sender block over receivers i
        vjx_e = jnp.broadcast_to(vjx.reshape(B, 1, N, C),
                                 (B, N, N, C)).reshape(BN, N, C)
        msg = (vix_e + vjx_e).reshape(BNN, C) + e_lin
        edge = edge + jnp.maximum(_layer_norm(msg), 0.0)

        # ---- attention: sigmoid then softmax over sender j for each (b, i) ---
        s = jax.nn.sigmoid(edge)
        # s in (0,1) -> exp without max-subtraction is numerically safe
        es = jnp.exp(s).reshape(BN, N, C)
        denom = jnp.sum(es, axis=1, keepdims=True)                # (BN, 1, C)
        attn = es * pl.reciprocal(denom, approx=False)            # (BN, N, C)

        # ---- node update ------------------------------------------------------
        ujx_e = jnp.broadcast_to(vx.reshape(B, 1, N, C),
                                 (B, N, N, C)).reshape(BN, N, C)  # start @ V(x)
        agg = jnp.sum(attn * ujx_e, axis=1)                       # (BN, C)
        x_new = uix + agg * inv_n
        x = jnp.maximum(res + _layer_norm(x_new), 0.0)

    ox_ref[...] = x
    oe_ref[...] = edge


def gnn_edge_forward(x, edge, weights_t):
    """x: (B, N, C) f32; edge: (B, N*N, C) f32;
    weights_t: (NUM_LAYERS, 5, C, C) f32, pre-transposed to (C_in, C_out),
    per layer ordered [A, B, E, U, V] (right-multiply == nn.Linear)."""
    B, N, C = x.shape
    NN = N * N
    BN, BNN = B * N, B * NN

    # Pack node weights [A | B | U | V] into one lane-dense (C, 4C) matrix per
    # layer; keep E separate.  Cast once to bf16 (MXU operand dtype).
    w_node = jnp.concatenate(
        [weights_t[:, 0], weights_t[:, 1], weights_t[:, 3], weights_t[:, 4]],
        axis=-1).astype(jnp.bfloat16)                      # (L, C, 4C)
    w_edge = weights_t[:, 2].astype(jnp.bfloat16)          # (L, C, C)

    # Fold the batch into the row (sublane) dimension: single grid step.
    x2 = x.reshape(BN, C)
    e2 = edge.reshape(BNN, C)

    kernel = functools.partial(gnn_edge_kernel, batch=B, n_nodes=N, channels=C)
    ox, oe = pl.pallas_call(
        kernel,
        out_shape=(jax.ShapeDtypeStruct((BN, C), jnp.float32),
                   jax.ShapeDtypeStruct((BNN, C), jnp.float32)),
        grid_spec=pltpu.PrefetchScalarGridSpec(
            num_scalar_prefetch=0,
            grid=(1,),
            in_specs=[
                pl.BlockSpec((BN, C), lambda i: (0, 0)),                 # x (folded)
                pl.BlockSpec((BNN, C), lambda i: (0, 0)),                # edge (folded)
                pl.BlockSpec((NUM_LAYERS, C, 4 * C), lambda i: (0, 0, 0)),  # packed node W
                pl.BlockSpec((NUM_LAYERS, C, C), lambda i: (0, 0, 0)),      # edge W (E)
            ],
            out_specs=[
                pl.BlockSpec((BN, C), lambda i: (0, 0)),
                pl.BlockSpec((BNN, C), lambda i: (0, 0)),
            ],
        ),
        compiler_params=pltpu.CompilerParams(
            dimension_semantics=("arbitrary",)),
    )(x2, e2, w_node, w_edge)
    return ox.reshape(B, N, C), oe.reshape(B, NN, C)


def reference(x, edge, weights_t, *, bf16_matmuls):
    """Pure-JAX mirror of the PyTorch forward.  With bf16_matmuls=True the
    matmul operands are rounded to bf16 (f32 accumulation), mirroring the
    kernel's MXU precision; with False it is the exact f32 module math."""
    B, N, C = x.shape
    cast = (lambda a: a.astype(jnp.bfloat16)) if bf16_matmuls else (lambda a: a)

    def mm(a, w):
        return jnp.einsum('...c,co->...o', cast(a), cast(w),
                          preferred_element_type=jnp.float32)

    for l in range(NUM_LAYERS):
        A, Bw, E, U, V = (weights_t[l, k] for k in range(5))
        res = x
        vix = mm(x, A)                                    # (B, N, C)
        vjx = mm(x, Bw)
        e_lin = mm(edge, E)                               # (B, N*N, C)
        msg = (vix[:, :, None, :] + vjx[:, None, :, :]).reshape(B, N * N, C) + e_lin
        edge = edge + jax.nn.relu(_layer_norm(msg))
        s = jax.nn.sigmoid(edge).reshape(B, N, N, C)
        attn = jax.nn.softmax(s, axis=2)                  # softmax over sender j
        ujx = mm(x, V)                                    # (B, N, C)
        agg = jnp.einsum('bijc,bjc->bic', attn, ujx)      # end.T @ (attn * Ujx)
        x = mm(x, U) + agg / N
        x = jax.nn.relu(res + _layer_norm(x))
    return x, edge


if __name__ == "__main__":
    key = jax.random.PRNGKey(0)
    k_x, k_e, k_w = jax.random.split(key, 3)

    B, N, C = BATCH, N_NODES, CHANNELS
    NN = N * N

    x = jax.random.normal(k_x, (B, N, C), dtype=jnp.float32)
    edge = jax.random.normal(k_e, (B, NN, C), dtype=jnp.float32)

    # init_weights_linear: normal(0, sqrt(2/dim_in)); layers x [A,B,E,U,V],
    # stored pre-transposed as (C_in, C_out).
    scale = (2.0 / C) ** 0.5
    weights_t = jax.random.normal(
        k_w, (NUM_LAYERS, 5, C, C), dtype=jnp.float32) * scale

    out_x, out_edge = gnn_edge_forward(x, edge, weights_t)
    jax.block_until_ready((out_x, out_edge))

    # Tight check against a reference that mirrors the kernel's MXU precision
    # (bf16 operands, f32 accumulation).
    ref_x_bf, ref_e_bf = reference(x, edge, weights_t, bf16_matmuls=True)
    # Loose sanity check against the exact f32 module math (differences are
    # only the bf16 rounding of the matmul operands).
    ref_x_f32, ref_e_f32 = reference(x, edge, weights_t, bf16_matmuls=False)

    assert out_x.shape == (B, N, C) and out_edge.shape == (B, NN, C)
    assert jnp.allclose(out_x, ref_x_bf, rtol=1e-3, atol=1e-3)
    assert jnp.allclose(out_edge, ref_e_bf, rtol=1e-3, atol=1e-3)
    assert jnp.allclose(out_x, ref_x_f32, rtol=5e-2, atol=5e-2)
    assert jnp.allclose(out_edge, ref_e_f32, rtol=5e-2, atol=5e-2)

    print("KERNEL_OK")
</pallas_src>

<mosaic_0001>
module attributes {stable_mosaic.version = 11 : i64} {
  func.func @gnn_edge_kernel(%arg0: i32, %arg1: memref<16x32xf32, #tpu.memory_space<vmem>>, %arg2: memref<128x32xf32, #tpu.memory_space<vmem>>, %arg3: memref<3x32x128xbf16, #tpu.memory_space<vmem>>, %arg4: memref<3x32x32xbf16, #tpu.memory_space<vmem>>, %arg5: memref<16x32xf32, #tpu.memory_space<vmem>>, %arg6: memref<128x32xf32, #tpu.memory_space<vmem>>) attributes {dimension_semantics = [#tpu.dimension_semantics<arbitrary>], iteration_bounds = array<i64: 1>, scalar_prefetch = 0 : i64, scratch_operands = 0 : i64, tpu.core_type = #tpu.core_type<tc>, window_params = [{pipeline_mode = #tpu.pipeline_mode<synchronous>, transform_indices = @transform_0, window_bounds = array<i64: 16, 32>}, {pipeline_mode = #tpu.pipeline_mode<synchronous>, transform_indices = @transform_1, window_bounds = array<i64: 128, 32>}, {pipeline_mode = #tpu.pipeline_mode<synchronous>, transform_indices = @transform_2, window_bounds = array<i64: 3, 32, 128>}, {pipeline_mode = #tpu.pipeline_mode<synchronous>, transform_indices = @transform_3, window_bounds = array<i64: 3, 32, 32>}, {pipeline_mode = #tpu.pipeline_mode<synchronous>, transform_indices = @transform_4, window_bounds = array<i64: 16, 32>}, {pipeline_mode = #tpu.pipeline_mode<synchronous>, transform_indices = @transform_5, window_bounds = array<i64: 128, 32>}]} {
    %c0 = arith.constant 0 : index
    %c0_0 = arith.constant 0 : index
    %0 = vector.load %arg1[%c0, %c0_0] : memref<16x32xf32, #tpu.memory_space<vmem>>, vector<16x32xf32>
    %c0_1 = arith.constant 0 : index
    %c0_2 = arith.constant 0 : index
    %1 = vector.load %arg2[%c0_1, %c0_2] : memref<128x32xf32, #tpu.memory_space<vmem>>, vector<128x32xf32>
    %c0_3 = arith.constant 0 : index
    %c0_4 = arith.constant 0 : index
    %c0_5 = arith.constant 0 : index
    %2 = vector.load %arg3[%c0_3, %c0_4, %c0_5] : memref<3x32x128xbf16, #tpu.memory_space<vmem>>, vector<1x32x128xbf16>
    %3 = vector.shape_cast %2 : vector<1x32x128xbf16> to vector<32x128xbf16>
    %c0_6 = arith.constant 0 : index
    %c0_7 = arith.constant 0 : index
    %c0_8 = arith.constant 0 : index
    %4 = vector.load %arg4[%c0_6, %c0_7, %c0_8] : memref<3x32x32xbf16, #tpu.memory_space<vmem>>, vector<1x32x32xbf16>
    %5 = vector.shape_cast %4 : vector<1x32x32xbf16> to vector<32x32xbf16>
    %6 = arith.truncf %0 : vector<16x32xf32> to vector<16x32xbf16>
    %cst = arith.constant dense<0.000000e+00> : vector<16x128xf32>
    %7 = tpu.matmul %6, %3, %cst {dimension_numbers = #tpu.dot_dimension_numbers<[1], [0], [0], [1], [0, 0, 1, 1], [], []>} : vector<16x32xbf16>, vector<32x128xbf16>, vector<16x128xf32> -> vector<16x128xf32>
    %8 = vector.extract_strided_slice %7 {offsets = [0, 0], sizes = [16, 32], strides = [1, 1]} : vector<16x128xf32> to vector<16x32xf32>
    %9 = vector.extract_strided_slice %7 {offsets = [0, 32], sizes = [16, 32], strides = [1, 1]} : vector<16x128xf32> to vector<16x32xf32>
    %10 = vector.extract_strided_slice %7 {offsets = [0, 64], sizes = [16, 32], strides = [1, 1]} : vector<16x128xf32> to vector<16x32xf32>
    %11 = vector.extract_strided_slice %7 {offsets = [0, 96], sizes = [16, 32], strides = [1, 1]} : vector<16x128xf32> to vector<16x32xf32>
    %12 = arith.truncf %1 : vector<128x32xf32> to vector<128x32xbf16>
    %cst_9 = arith.constant dense<0.000000e+00> : vector<128x32xf32>
    %13 = tpu.matmul %12, %5, %cst_9 {dimension_numbers = #tpu.dot_dimension_numbers<[1], [0], [0], [1], [0, 0, 1, 1], [], []>} : vector<128x32xbf16>, vector<32x32xbf16>, vector<128x32xf32> -> vector<128x32xf32>
    %14 = vector.shape_cast %8 : vector<16x32xf32> to vector<16x1x32xf32>
    %15 = vector.shape_cast %14 : vector<16x1x32xf32> to vector<16x1x32xf32>
    %16 = vector.broadcast %15 : vector<16x1x32xf32> to vector<16x8x32xf32>
    %17 = vector.shape_cast %9 : vector<16x32xf32> to vector<2x1x8x32xf32>
    %18 = vector.shape_cast %17 : vector<2x1x8x32xf32> to vector<2x1x8x32xf32>
    %19 = vector.broadcast %18 : vector<2x1x8x32xf32> to vector<2x8x8x32xf32>
    %20 = vector.shape_cast %19 : vector<2x8x8x32xf32> to vector<16x8x32xf32>
    %21 = arith.addf %16, %20 : vector<16x8x32xf32>
    %22 = vector.shape_cast %21 : vector<16x8x32xf32> to vector<128x32xf32>
    %23 = arith.addf %22, %13 : vector<128x32xf32>
    %cst_10 = arith.constant dense<0.000000e+00> : vector<128xf32>
    %24 = vector.multi_reduction <add>, %23, %cst_10 [1] : vector<128x32xf32> to vector<128xf32>
    %25 = vector.shape_cast %24 : vector<128xf32> to vector<128x1xf32>
    %cst_11 = arith.constant 3.200000e+01 : f32
    %26 = vector.broadcast %cst_11 : f32 to vector<128x1xf32>
    %27 = arith.divf %25, %26 : vector<128x1xf32>
    %28 = vector.broadcast %27 : vector<128x1xf32> to vector<128x32xf32>
    %29 = arith.subf %23, %28 : vector<128x32xf32>
    %30 = arith.mulf %29, %29 : vector<128x32xf32>
    %cst_12 = arith.constant dense<0.000000e+00> : vector<128xf32>
    %31 = vector.multi_reduction <add>, %30, %cst_12 [1] : vector<128x32xf32> to vector<128xf32>
    %32 = vector.shape_cast %31 : vector<128xf32> to vector<128x1xf32>
    %cst_13 = arith.constant 3.200000e+01 : f32
    %33 = vector.broadcast %cst_13 : f32 to vector<128x1xf32>
    %34 = arith.divf %32, %33 : vector<128x1xf32>
    %cst_14 = arith.constant 9.99999974E-6 : f32
    %35 = vector.broadcast %cst_14 : f32 to vector<128x1xf32>
    %36 = arith.addf %34, %35 : vector<128x1xf32>
    %37 = math.rsqrt %36 : vector<128x1xf32>
    %38 = vector.broadcast %37 : vector<128x1xf32> to vector<128x32xf32>
    %39 = arith.mulf %29, %38 : vector<128x32xf32>
    %cst_15 = arith.constant 0.000000e+00 : f32
    %40 = vector.broadcast %cst_15 : f32 to vector<128x32xf32>
    %41 = arith.maximumf %39, %40 : vector<128x32xf32>
    %42 = arith.addf %1, %41 : vector<128x32xf32>
    %43 = arith.negf %42 : vector<128x32xf32>
    %44 = math.exp %43 : vector<128x32xf32>
    %cst_16 = arith.constant 1.000000e+00 : f32
    %45 = vector.broadcast %cst_16 : f32 to vector<128x32xf32>
    %46 = arith.addf %45, %44 : vector<128x32xf32>
    %47 = arith.divf %45, %46 : vector<128x32xf32>
    %48 = math.exp %47 : vector<128x32xf32>
    %49 = vector.shape_cast %48 : vector<128x32xf32> to vector<16x8x32xf32>
    %cst_17 = arith.constant dense<0.000000e+00> : vector<16x32xf32>
    %50 = vector.multi_reduction <add>, %49, %cst_17 [1] : vector<16x8x32xf32> to vector<16x32xf32>
    %51 = vector.shape_cast %50 : vector<16x32xf32> to vector<16x1x32xf32>
    %52 = tpu.reciprocal %51 : vector<16x1x32xf32> -> vector<16x1x32xf32>
    %53 = vector.broadcast %52 : vector<16x1x32xf32> to vector<16x8x32xf32>
    %54 = arith.mulf %49, %53 : vector<16x8x32xf32>
    %55 = vector.shape_cast %11 : vector<16x32xf32> to vector<2x1x8x32xf32>
    %56 = vector.shape_cast %55 : vector<2x1x8x32xf32> to vector<2x1x8x32xf32>
    %57 = vector.broadcast %56 : vector<2x1x8x32xf32> to vector<2x8x8x32xf32>
    %58 = vector.shape_cast %57 : vector<2x8x8x32xf32> to vector<16x8x32xf32>
    %59 = arith.mulf %54, %58 : vector<16x8x32xf32>
    %cst_18 = arith.constant dense<0.000000e+00> : vector<16x32xf32>
    %60 = vector.multi_reduction <add>, %59, %cst_18 [1] : vector<16x8x32xf32> to vector<16x32xf32>
    %cst_19 = arith.constant 1.250000e-01 : f32
    %61 = vector.broadcast %cst_19 : f32 to vector<16x32xf32>
    %62 = arith.mulf %60, %61 : vector<16x32xf32>
    %63 = arith.addf %10, %62 : vector<16x32xf32>
    %cst_20 = arith.constant dense<0.000000e+00> : vector<16xf32>
    %64 = vector.multi_reduction <add>, %63, %cst_20 [1] : vector<16x32xf32> to vector<16xf32>
    %65 = vector.shape_cast %64 : vector<16xf32> to vector<16x1xf32>
    %cst_21 = arith.constant 3.200000e+01 : f32
    %66 = vector.broadcast %cst_21 : f32 to vector<16x1xf32>
    %67 = arith.divf %65, %66 : vector<16x1xf32>
    %68 = vector.broadcast %67 : vector<16x1xf32> to vector<16x32xf32>
    %69 = arith.subf %63, %68 : vector<16x32xf32>
    %70 = arith.mulf %69, %69 : vector<16x32xf32>
    %cst_22 = arith.constant dense<0.000000e+00> : vector<16xf32>
    %71 = vector.multi_reduction <add>, %70, %cst_22 [1] : vector<16x32xf32> to vector<16xf32>
    %72 = vector.shape_cast %71 : vector<16xf32> to vector<16x1xf32>
    %cst_23 = arith.constant 3.200000e+01 : f32
    %73 = vector.broadcast %cst_23 : f32 to vector<16x1xf32>
    %74 = arith.divf %72, %73 : vector<16x1xf32>
    %cst_24 = arith.constant 9.99999974E-6 : f32
    %75 = vector.broadcast %cst_24 : f32 to vector<16x1xf32>
    %76 = arith.addf %74, %75 : vector<16x1xf32>
    %77 = math.rsqrt %76 : vector<16x1xf32>
    %78 = vector.broadcast %77 : vector<16x1xf32> to vector<16x32xf32>
    %79 = arith.mulf %69, %78 : vector<16x32xf32>
    %80 = arith.addf %0, %79 : vector<16x32xf32>
    %cst_25 = arith.constant 0.000000e+00 : f32
    %81 = vector.broadcast %cst_25 : f32 to vector<16x32xf32>
    %82 = arith.maximumf %80, %81 : vector<16x32xf32>
    %c1 = arith.constant 1 : index
    %c0_26 = arith.constant 0 : index
    %c0_27 = arith.constant 0 : index
    %83 = vector.load %arg3[%c1, %c0_26, %c0_27] : memref<3x32x128xbf16, #tpu.memory_space<vmem>>, vector<1x32x128xbf16>
    %84 = vector.shape_cast %83 : vector<1x32x128xbf16> to vector<32x128xbf16>
    %c1_28 = arith.constant 1 : index
    %c0_29 = arith.constant 0 : index
    %c0_30 = arith.constant 0 : index
    %85 = vector.load %arg4[%c1_28, %c0_29, %c0_30] : memref<3x32x32xbf16, #tpu.memory_space<vmem>>, vector<1x32x32xbf16>
    %86 = vector.shape_cast %85 : vector<1x32x32xbf16> to vector<32x32xbf16>
    %87 = arith.truncf %82 : vector<16x32xf32> to vector<16x32xbf16>
    %cst_31 = arith.constant dense<0.000000e+00> : vector<16x128xf32>
    %88 = tpu.matmul %87, %84, %cst_31 {dimension_numbers = #tpu.dot_dimension_numbers<[1], [0], [0], [1], [0, 0, 1, 1], [], []>} : vector<16x32xbf16>, vector<32x128xbf16>, vector<16x128xf32> -> vector<16x128xf32>
    %89 = vector.extract_strided_slice %88 {offsets = [0, 0], sizes = [16, 32], strides = [1, 1]} : vector<16x128xf32> to vector<16x32xf32>
    %90 = vector.extract_strided_slice %88 {offsets = [0, 32], sizes = [16, 32], strides = [1, 1]} : vector<16x128xf32> to vector<16x32xf32>
    %91 = vector.extract_strided_slice %88 {offsets = [0, 64], sizes = [16, 32], strides = [1, 1]} : vector<16x128xf32> to vector<16x32xf32>
    %92 = vector.extract_strided_slice %88 {offsets = [0, 96], sizes = [16, 32], strides = [1, 1]} : vector<16x128xf32> to vector<16x32xf32>
    %93 = arith.truncf %42 : vector<128x32xf32> to vector<128x32xbf16>
    %cst_32 = arith.constant dense<0.000000e+00> : vector<128x32xf32>
    %94 = tpu.matmul %93, %86, %cst_32 {dimension_numbers = #tpu.dot_dimension_numbers<[1], [0], [0], [1], [0, 0, 1, 1], [], []>} : vector<128x32xbf16>, vector<32x32xbf16>, vector<128x32xf32> -> vector<128x32xf32>
    %95 = vector.shape_cast %89 : vector<16x32xf32> to vector<16x1x32xf32>
    %96 = vector.shape_cast %95 : vector<16x1x32xf32> to vector<16x1x32xf32>
    %97 = vector.broadcast %96 : vector<16x1x32xf32> to vector<16x8x32xf32>
    %98 = vector.shape_cast %90 : vector<16x32xf32> to vector<2x1x8x32xf32>
    %99 = vector.shape_cast %98 : vector<2x1x8x32xf32> to vector<2x1x8x32xf32>
    %100 = vector.broadcast %99 : vector<2x1x8x32xf32> to vector<2x8x8x32xf32>
    %101 = vector.shape_cast %100 : vector<2x8x8x32xf32> to vector<16x8x32xf32>
    %102 = arith.addf %97, %101 : vector<16x8x32xf32>
    %103 = vector.shape_cast %102 : vector<16x8x32xf32> to vector<128x32xf32>
    %104 = arith.addf %103, %94 : vector<128x32xf32>
    %cst_33 = arith.constant dense<0.000000e+00> : vector<128xf32>
    %105 = vector.multi_reduction <add>, %104, %cst_33 [1] : vector<128x32xf32> to vector<128xf32>
    %106 = vector.shape_cast %105 : vector<128xf32> to vector<128x1xf32>
    %cst_34 = arith.constant 3.200000e+01 : f32
    %107 = vector.broadcast %cst_34 : f32 to vector<128x1xf32>
    %108 = arith.divf %106, %107 : vector<128x1xf32>
    %109 = vector.broadcast %108 : vector<128x1xf32> to vector<128x32xf32>
    %110 = arith.subf %104, %109 : vector<128x32xf32>
    %111 = arith.mulf %110, %110 : vector<128x32xf32>
    %cst_35 = arith.constant dense<0.000000e+00> : vector<128xf32>
    %112 = vector.multi_reduction <add>, %111, %cst_35 [1] : vector<128x32xf32> to vector<128xf32>
    %113 = vector.shape_cast %112 : vector<128xf32> to vector<128x1xf32>
    %cst_36 = arith.constant 3.200000e+01 : f32
    %114 = vector.broadcast %cst_36 : f32 to vector<128x1xf32>
    %115 = arith.divf %113, %114 : vector<128x1xf32>
    %cst_37 = arith.constant 9.99999974E-6 : f32
    %116 = vector.broadcast %cst_37 : f32 to vector<128x1xf32>
    %117 = arith.addf %115, %116 : vector<128x1xf32>
    %118 = math.rsqrt %117 : vector<128x1xf32>
    %119 = vector.broadcast %118 : vector<128x1xf32> to vector<128x32xf32>
    %120 = arith.mulf %110, %119 : vector<128x32xf32>
    %cst_38 = arith.constant 0.000000e+00 : f32
    %121 = vector.broadcast %cst_38 : f32 to vector<128x32xf32>
    %122 = arith.maximumf %120, %121 : vector<128x32xf32>
    %123 = arith.addf %42, %122 : vector<128x32xf32>
    %124 = arith.negf %123 : vector<128x32xf32>
    %125 = math.exp %124 : vector<128x32xf32>
    %cst_39 = arith.constant 1.000000e+00 : f32
    %126 = vector.broadcast %cst_39 : f32 to vector<128x32xf32>
    %127 = arith.addf %126, %125 : vector<128x32xf32>
    %128 = arith.divf %126, %127 : vector<128x32xf32>
    %129 = math.exp %128 : vector<128x32xf32>
    %130 = vector.shape_cast %129 : vector<128x32xf32> to vector<16x8x32xf32>
    %cst_40 = arith.constant dense<0.000000e+00> : vector<16x32xf32>
    %131 = vector.multi_reduction <add>, %130, %cst_40 [1] : vector<16x8x32xf32> to vector<16x32xf32>
    %132 = vector.shape_cast %131 : vector<16x32xf32> to vector<16x1x32xf32>
    %133 = tpu.reciprocal %132 : vector<16x1x32xf32> -> vector<16x1x32xf32>
    %134 = vector.broadcast %133 : vector<16x1x32xf32> to vector<16x8x32xf32>
    %135 = arith.mulf %130, %134 : vector<16x8x32xf32>
    %136 = vector.shape_cast %92 : vector<16x32xf32> to vector<2x1x8x32xf32>
    %137 = vector.shape_cast %136 : vector<2x1x8x32xf32> to vector<2x1x8x32xf32>
    %138 = vector.broadcast %137 : vector<2x1x8x32xf32> to vector<2x8x8x32xf32>
    %139 = vector.shape_cast %138 : vector<2x8x8x32xf32> to vector<16x8x32xf32>
    %140 = arith.mulf %135, %139 : vector<16x8x32xf32>
    %cst_41 = arith.constant dense<0.000000e+00> : vector<16x32xf32>
    %141 = vector.multi_reduction <add>, %140, %cst_41 [1] : vector<16x8x32xf32> to vector<16x32xf32>
    %cst_42 = arith.constant 1.250000e-01 : f32
    %142 = vector.broadcast %cst_42 : f32 to vector<16x32xf32>
    %143 = arith.mulf %141, %142 : vector<16x32xf32>
    %144 = arith.addf %91, %143 : vector<16x32xf32>
    %cst_43 = arith.constant dense<0.000000e+00> : vector<16xf32>
    %145 = vector.multi_reduction <add>, %144, %cst_43 [1] : vector<16x32xf32> to vector<16xf32>
    %146 = vector.shape_cast %145 : vector<16xf32> to vector<16x1xf32>
    %cst_44 = arith.constant 3.200000e+01 : f32
    %147 = vector.broadcast %cst_44 : f32 to vector<16x1xf32>
    %148 = arith.divf %146, %147 : vector<16x1xf32>
    %149 = vector.broadcast %148 : vector<16x1xf32> to vector<16x32xf32>
    %150 = arith.subf %144, %149 : vector<16x32xf32>
    %151 = arith.mulf %150, %150 : vector<16x32xf32>
    %cst_45 = arith.constant dense<0.000000e+00> : vector<16xf32>
    %152 = vector.multi_reduction <add>, %151, %cst_45 [1] : vector<16x32xf32> to vector<16xf32>
    %153 = vector.shape_cast %152 : vector<16xf32> to vector<16x1xf32>
    %cst_46 = arith.constant 3.200000e+01 : f32
    %154 = vector.broadcast %cst_46 : f32 to vector<16x1xf32>
    %155 = arith.divf %153, %154 : vector<16x1xf32>
    %cst_47 = arith.constant 9.99999974E-6 : f32
    %156 = vector.broadcast %cst_47 : f32 to vector<16x1xf32>
    %157 = arith.addf %155, %156 : vector<16x1xf32>
    %158 = math.rsqrt %157 : vector<16x1xf32>
    %159 = vector.broadcast %158 : vector<16x1xf32> to vector<16x32xf32>
    %160 = arith.mulf %150, %159 : vector<16x32xf32>
    %161 = arith.addf %82, %160 : vector<16x32xf32>
    %cst_48 = arith.constant 0.000000e+00 : f32
    %162 = vector.broadcast %cst_48 : f32 to vector<16x32xf32>
    %163 = arith.maximumf %161, %162 : vector<16x32xf32>
    %c2 = arith.constant 2 : index
    %c0_49 = arith.constant 0 : index
    %c0_50 = arith.constant 0 : index
    %164 = vector.load %arg3[%c2, %c0_49, %c0_50] : memref<3x32x128xbf16, #tpu.memory_space<vmem>>, vector<1x32x128xbf16>
    %165 = vector.shape_cast %164 : vector<1x32x128xbf16> to vector<32x128xbf16>
    %c2_51 = arith.constant 2 : index
    %c0_52 = arith.constant 0 : index
    %c0_53 = arith.constant 0 : index
    %166 = vector.load %arg4[%c2_51, %c0_52, %c0_53] : memref<3x32x32xbf16, #tpu.memory_space<vmem>>, vector<1x32x32xbf16>
    %167 = vector.shape_cast %166 : vector<1x32x32xbf16> to vector<32x32xbf16>
    %168 = arith.truncf %163 : vector<16x32xf32> to vector<16x32xbf16>
    %cst_54 = arith.constant dense<0.000000e+00> : vector<16x128xf32>
    %169 = tpu.matmul %168, %165, %cst_54 {dimension_numbers = #tpu.dot_dimension_numbers<[1], [0], [0], [1], [0, 0, 1, 1], [], []>} : vector<16x32xbf16>, vector<32x128xbf16>, vector<16x128xf32> -> vector<16x128xf32>
    %170 = vector.extract_strided_slice %169 {offsets = [0, 0], sizes = [16, 32], strides = [1, 1]} : vector<16x128xf32> to vector<16x32xf32>
    %171 = vector.extract_strided_slice %169 {offsets = [0, 32], sizes = [16, 32], strides = [1, 1]} : vector<16x128xf32> to vector<16x32xf32>
    %172 = vector.extract_strided_slice %169 {offsets = [0, 64], sizes = [16, 32], strides = [1, 1]} : vector<16x128xf32> to vector<16x32xf32>
    %173 = vector.extract_strided_slice %169 {offsets = [0, 96], sizes = [16, 32], strides = [1, 1]} : vector<16x128xf32> to vector<16x32xf32>
    %174 = arith.truncf %123 : vector<128x32xf32> to vector<128x32xbf16>
    %cst_55 = arith.constant dense<0.000000e+00> : vector<128x32xf32>
    %175 = tpu.matmul %174, %167, %cst_55 {dimension_numbers = #tpu.dot_dimension_numbers<[1], [0], [0], [1], [0, 0, 1, 1], [], []>} : vector<128x32xbf16>, vector<32x32xbf16>, vector<128x32xf32> -> vector<128x32xf32>
    %176 = vector.shape_cast %170 : vector<16x32xf32> to vector<16x1x32xf32>
    %177 = vector.shape_cast %176 : vector<16x1x32xf32> to vector<16x1x32xf32>
    %178 = vector.broadcast %177 : vector<16x1x32xf32> to vector<16x8x32xf32>
    %179 = vector.shape_cast %171 : vector<16x32xf32> to vector<2x1x8x32xf32>
    %180 = vector.shape_cast %179 : vector<2x1x8x32xf32> to vector<2x1x8x32xf32>
    %181 = vector.broadcast %180 : vector<2x1x8x32xf32> to vector<2x8x8x32xf32>
    %182 = vector.shape_cast %181 : vector<2x8x8x32xf32> to vector<16x8x32xf32>
    %183 = arith.addf %178, %182 : vector<16x8x32xf32>
    %184 = vector.shape_cast %183 : vector<16x8x32xf32> to vector<128x32xf32>
    %185 = arith.addf %184, %175 : vector<128x32xf32>
    %cst_56 = arith.constant dense<0.000000e+00> : vector<128xf32>
    %186 = vector.multi_reduction <add>, %185, %cst_56 [1] : vector<128x32xf32> to vector<128xf32>
    %187 = vector.shape_cast %186 : vector<128xf32> to vector<128x1xf32>
    %cst_57 = arith.constant 3.200000e+01 : f32
    %188 = vector.broadcast %cst_57 : f32 to vector<128x1xf32>
    %189 = arith.divf %187, %188 : vector<128x1xf32>
    %190 = vector.broadcast %189 : vector<128x1xf32> to vector<128x32xf32>
    %191 = arith.subf %185, %190 : vector<128x32xf32>
    %192 = arith.mulf %191, %191 : vector<128x32xf32>
    %cst_58 = arith.constant dense<0.000000e+00> : vector<128xf32>
    %193 = vector.multi_reduction <add>, %192, %cst_58 [1] : vector<128x32xf32> to vector<128xf32>
    %194 = vector.shape_cast %193 : vector<128xf32> to vector<128x1xf32>
    %cst_59 = arith.constant 3.200000e+01 : f32
    %195 = vector.broadcast %cst_59 : f32 to vector<128x1xf32>
    %196 = arith.divf %194, %195 : vector<128x1xf32>
    %cst_60 = arith.constant 9.99999974E-6 : f32
    %197 = vector.broadcast %cst_60 : f32 to vector<128x1xf32>
    %198 = arith.addf %196, %197 : vector<128x1xf32>
    %199 = math.rsqrt %198 : vector<128x1xf32>
    %200 = vector.broadcast %199 : vector<128x1xf32> to vector<128x32xf32>
    %201 = arith.mulf %191, %200 : vector<128x32xf32>
    %cst_61 = arith.constant 0.000000e+00 : f32
    %202 = vector.broadcast %cst_61 : f32 to vector<128x32xf32>
    %203 = arith.maximumf %201, %202 : vector<128x32xf32>
    %204 = arith.addf %123, %203 : vector<128x32xf32>
    %205 = arith.negf %204 : vector<128x32xf32>
    %206 = math.exp %205 : vector<128x32xf32>
    %cst_62 = arith.constant 1.000000e+00 : f32
    %207 = vector.broadcast %cst_62 : f32 to vector<128x32xf32>
    %208 = arith.addf %207, %206 : vector<128x32xf32>
    %209 = arith.divf %207, %208 : vector<128x32xf32>
    %210 = math.exp %209 : vector<128x32xf32>
    %211 = vector.shape_cast %210 : vector<128x32xf32> to vector<16x8x32xf32>
    %cst_63 = arith.constant dense<0.000000e+00> : vector<16x32xf32>
    %212 = vector.multi_reduction <add>, %211, %cst_63 [1] : vector<16x8x32xf32> to vector<16x32xf32>
    %213 = vector.shape_cast %212 : vector<16x32xf32> to vector<16x1x32xf32>
    %214 = tpu.reciprocal %213 : vector<16x1x32xf32> -> vector<16x1x32xf32>
    %215 = vector.broadcast %214 : vector<16x1x32xf32> to vector<16x8x32xf32>
    %216 = arith.mulf %211, %215 : vector<16x8x32xf32>
    %217 = vector.shape_cast %173 : vector<16x32xf32> to vector<2x1x8x32xf32>
    %218 = vector.shape_cast %217 : vector<2x1x8x32xf32> to vector<2x1x8x32xf32>
    %219 = vector.broadcast %218 : vector<2x1x8x32xf32> to vector<2x8x8x32xf32>
    %220 = vector.shape_cast %219 : vector<2x8x8x32xf32> to vector<16x8x32xf32>
    %221 = arith.mulf %216, %220 : vector<16x8x32xf32>
    %cst_64 = arith.constant dense<0.000000e+00> : vector<16x32xf32>
    %222 = vector.multi_reduction <add>, %221, %cst_64 [1] : vector<16x8x32xf32> to vector<16x32xf32>
    %cst_65 = arith.constant 1.250000e-01 : f32
    %223 = vector.broadcast %cst_65 : f32 to vector<16x32xf32>
    %224 = arith.mulf %222, %223 : vector<16x32xf32>
    %225 = arith.addf %172, %224 : vector<16x32xf32>
    %cst_66 = arith.constant dense<0.000000e+00> : vector<16xf32>
    %226 = vector.multi_reduction <add>, %225, %cst_66 [1] : vector<16x32xf32> to vector<16xf32>
    %227 = vector.shape_cast %226 : vector<16xf32> to vector<16x1xf32>
    %cst_67 = arith.constant 3.200000e+01 : f32
    %228 = vector.broadcast %cst_67 : f32 to vector<16x1xf32>
    %229 = arith.divf %227, %228 : vector<16x1xf32>
    %230 = vector.broadcast %229 : vector<16x1xf32> to vector<16x32xf32>
    %231 = arith.subf %225, %230 : vector<16x32xf32>
    %232 = arith.mulf %231, %231 : vector<16x32xf32>
    %cst_68 = arith.constant dense<0.000000e+00> : vector<16xf32>
    %233 = vector.multi_reduction <add>, %232, %cst_68 [1] : vector<16x32xf32> to vector<16xf32>
    %234 = vector.shape_cast %233 : vector<16xf32> to vector<16x1xf32>
    %cst_69 = arith.constant 3.200000e+01 : f32
    %235 = vector.broadcast %cst_69 : f32 to vector<16x1xf32>
    %236 = arith.divf %234, %235 : vector<16x1xf32>
    %cst_70 = arith.constant 9.99999974E-6 : f32
    %237 = vector.broadcast %cst_70 : f32 to vector<16x1xf32>
    %238 = arith.addf %236, %237 : vector<16x1xf32>
    %239 = math.rsqrt %238 : vector<16x1xf32>
    %240 = vector.broadcast %239 : vector<16x1xf32> to vector<16x32xf32>
    %241 = arith.mulf %231, %240 : vector<16x32xf32>
    %242 = arith.addf %163, %241 : vector<16x32xf32>
    %cst_71 = arith.constant 0.000000e+00 : f32
    %243 = vector.broadcast %cst_71 : f32 to vector<16x32xf32>
    %244 = arith.maximumf %242, %243 : vector<16x32xf32>
    %c0_72 = arith.constant 0 : index
    %c0_73 = arith.constant 0 : index
    %245 = vector.load %arg5[%c0_72, %c0_73] : memref<16x32xf32, #tpu.memory_space<vmem>>, vector<16x32xf32>
    tpu.vector_store %arg5[%c0_72, %c0_73], %244 {strides = array<i32>} : memref<16x32xf32, #tpu.memory_space<vmem>>, vector<16x32xf32>,
    %c0_74 = arith.constant 0 : index
    %c0_75 = arith.constant 0 : index
    %246 = vector.load %arg6[%c0_74, %c0_75] : memref<128x32xf32, #tpu.memory_space<vmem>>, vector<128x32xf32>
    tpu.vector_store %arg6[%c0_74, %c0_75], %204 {strides = array<i32>} : memref<128x32xf32, #tpu.memory_space<vmem>>, vector<128x32xf32>,
    return
  }
  func.func @transform_0(%arg0: i32) -> (i32, i32) {
    %c0_i32 = arith.constant 0 : i32
    %c0_i32_0 = arith.constant 0 : i32
    %c0_i32_1 = arith.constant 0 : i32
    return %c0_i32, %c0_i32_0 : i32, i32
  }
  func.func @transform_1(%arg0: i32) -> (i32, i32) {
    %c0_i32 = arith.constant 0 : i32
    %c0_i32_0 = arith.constant 0 : i32
    %c0_i32_1 = arith.constant 0 : i32
    return %c0_i32, %c0_i32_0 : i32, i32
  }
  func.func @transform_2(%arg0: i32) -> (i32, i32, i32) {
    %c0_i32 = arith.constant 0 : i32
    %c0_i32_0 = arith.constant 0 : i32
    %c0_i32_1 = arith.constant 0 : i32
    %c0_i32_2 = arith.constant 0 : i32
    return %c0_i32, %c0_i32_0, %c0_i32_1 : i32, i32, i32
  }
  func.func @transform_3(%arg0: i32) -> (i32, i32, i32) {
    %c0_i32 = arith.constant 0 : i32
    %c0_i32_0 = arith.constant 0 : i32
    %c0_i32_1 = arith.constant 0 : i32
    %c0_i32_2 = arith.constant 0 : i32
    return %c0_i32, %c0_i32_0, %c0_i32_1 : i32, i32, i32
  }
  func.func @transform_4(%arg0: i32) -> (i32, i32) {
    %c0_i32 = arith.constant 0 : i32
    %c0_i32_0 = arith.constant 0 : i32
    %c0_i32_1 = arith.constant 0 : i32
    return %c0_i32, %c0_i32_0 : i32, i32
  }
  func.func @transform_5(%arg0: i32) -> (i32, i32) {
    %c0_i32 = arith.constant 0 : i32
    %c0_i32_0 = arith.constant 0 : i32
    %c0_i32_1 = arith.constant 0 : i32
    return %c0_i32, %c0_i32_0 : i32, i32
  }
}

</mosaic_0001>

<bundles_post_ra>
// kernel: tpu_custom_call.1
= control target key start
LH: loop header
LB: loop body
LE: loop exit
PB: predicated region body
PF: predicated region fallthrough
CT: control target
= control target key end

     0   :  { %v6148_v1 = vmov 0.0   ;;  %vm4394_vm0 = vmmov 0   ;;  %vm60_vm1 = vcmask 261120   ;;  %s6142_s0 = inlined_call_operand.vmem [shape: f32[16,32], index: 0, kind: input, shape index: {}]   ;;  %s6143_s1 = inlined_call_operand.vmem [shape: f32[128,32], index: 1, kind: input, shape index: {}]   ;;  %s6144_s2 = inlined_call_operand.vmem [shape: bf16[3,32,128], index: 2, kind: input, shape index: {}]   ;;  %s6145_s3 = inlined_call_operand.vmem [shape: bf16[3,32,32], index: 3, kind: input, shape index: {}]   ;;  %s6146_s4 = inlined_call_operand.hbm [shape: f32[16,32], index: 4, kind: output, shape index: {0}]   ;;  %s6147_s5 = inlined_call_operand.vmem [shape: f32[128,32], index: 5, kind: output, shape index: {1}]  }
   0x1   :  { %v3863_v0 = vld [vmem:[%s6144_s2] sm:$0xff]   ;;  %3766 = vmatprep.subr.bf16.mxu0 %v6148_v1  ;;  %v3864_v2 = vld [vmem:[%s6144_s2 + $0x8] sm:$0xff]   ;;  %3770 = vmatprep.mubr.msk.bf16.mxu0 %vm4394_vm0, %v6148_v1  ;;  %v4469_v11 = vld [vmem:[%s6143_s1 + $0x30] sm:$0xff] }
   0x2   :  { %3767 = vmatpush3.bf16.msra.mxu0 %v3863_v0  ;;  %v21_v3 = vld [vmem:[%s6142_s0] sm:$0xff]  ;;  %v22_v4 = vld [vmem:[%s6142_s0 + $0x8] sm:$0xff]  ;;  %v4474_v12 = vld [vmem:[%s6143_s1 + $0x38] sm:$0xff] }
   0x3   :  { %3768 = vmatprep.subr.bf16.mxu0 %v6148_v1  ;;  %v3865_v5 = vld [vmem:[%s6145_s3] sm:$0xff]   ;;  %v3866_v6 = vld [vmem:[%s6145_s3 + $0x8] sm:$0xff]   ;;  %v47_v8 = vpack.c.bf16 %v22_v4, %v21_v3  ;;  %v108_v18 = vpack.c.bf16 %v4474_v12, %v4469_v11  ;;  %v4505_v19 = vld [vmem:[%s6143_s1 + $0x10] sm:$0xff] }
   0x4   :  { %v4457_v7 = vld [vmem:[%s6143_s1 + $0x20] sm:$0xff]  ;;  %3850 = vmatprep.subr.bf16.mxu1 %v3865_v5  ;;  %v4462_v9 = vld [vmem:[%s6143_s1 + $0x28] sm:$0xff]  ;;  %v4510_v20 = vld [vmem:[%s6143_s1 + $0x18] sm:$0xff] }
   0x5   :  { %3852 = vmatpush3.bf16.msra.mxu1 %v3865_v5  ;;  %v107_v10 = vpack.c.bf16 %v4462_v9, %v4457_v7  ;;  %v4479_v13 = vld [vmem:[%s6143_s1 + $0x40] sm:$0xff]  ;;  %v4484_v14 = vld [vmem:[%s6143_s1 + $0x48] sm:$0xff]  ;;  %v4518_v22 = vld [vmem:[%s6143_s1 + $0x50] sm:$0xff]  ;;  %v106_v24 = vpack.c.bf16 %v4510_v20, %v4505_v19 }
   0x6   :  { %3769 = vmatpush3.bf16.msra.mxu0 %v3864_v2  ;;  %3851 = vmatprep.subr.bf16.mxu1 %v3866_v6  ;;  %v4489_v15 = vld [vmem:[%s6143_s1] sm:$0xff]  ;;  %v4494_v16 = vld [vmem:[%s6143_s1 + $0x8] sm:$0xff]  ;;  %v109_v21 = vpack.c.bf16 %v4484_v14, %v4479_v13  ;;  %v4523_v23 = vld [vmem:[%s6143_s1 + $0x58] sm:$0xff] }
   0x7   :  { %3774 = vmatprep.subr.bf16.mxu0 %v3865_v5  ;;  %3782 = vmatprep.mubr.msk.bf16.mxu1 %vm60_vm1, %v107_v10  ;;  %v105_v17 = vpack.c.bf16 %v4494_v16, %v4489_v15  ;;  %v4532_v25 = vld [vmem:[%s6143_s1 + $0x60] sm:$0xff]  ;;  %v4538_v26 = vld [vmem:[%s6143_s1 + $0x68] sm:$0xff] }
   0x9   :  { %3771 = vmatmul.mubr.msk.bf16.vlgmr.msra.gmra.mrb[0].mxu0 %vm60_vm1, %v47_v8  ;;  %3853 = vmatpush3.bf16.msra.mxu1 %v3866_v6 }
   0xa   :  { %3775 = vmatpush3.bf16.msra.mxu0 %v3865_v5  ;;  %3778 = vmatprep.mubr.msk.bf16.mxu0 %vm60_vm1, %v105_v17 }
   0xb   :  { %3776 = vmatprep.subr.bf16.mxu0 %v3866_v6  ;;  %3822 = vmatprep.subr.bf16.mxu1 %v6148_v1 }
   0xc   :  { %3783 = vmatmul.mubr.msk.bf16.vlgmr.msra.gmra.mrb[0].mxu1 %vm60_vm1, %v108_v18 }
   0xd   :  { %3786 = vmatprep.mubr.msk.bf16.mxu1 %vm60_vm1, %v109_v21 }
   0xe   :  { %3777 = vmatpush3.bf16.msra.mxu0 %v3866_v6 }
   0xf   :  { %3794 = vmatprep.subr.bf16.mxu0 %v6148_v1 }
  0x10   :  { %11 = vsyncpa [#allocation3], 0  ;;  %v110_v27 = vpack.c.bf16 %v4523_v23, %v4518_v22  ;;  %v111_v28 = vpack.c.bf16 %v4538_v26, %v4532_v25  ;;  %v4553_v29 = vld [vmem:[%s6143_s1 + $0x70] sm:$0xff]  ;;  %v4558_v30 = vld [vmem:[%s6143_s1 + $0x78] sm:$0xff]  ;;  %s4395_s12 = smov 96   ;;  %v252_v54 = vlaneseq  ;;  %s4397_s1 = smov 32  }
  0x11   :  { %3779 = vmatmul.mubr.msk.bf16.vlgmr.msra.gmra.mrb[4].mxu0 %vm60_vm1, %v106_v24  ;;  %6171 = vst [vmem:[#allocation5_spill] sm:$0xff] %v4553_v29  ;;  %6172 = vst [vmem:[#allocation6_spill] sm:$0xff] %v4558_v30  ;;  %v112_v31 = vpack.c.bf16 %v4558_v30, %v4553_v29  ;;  %v4396_v52 = vmov 1966171168   ;;  %vm1143_vm2 = vcmask 1041409   ;;  %vm1145_vm3 = vcmask 1042434  }
  0x12   :  { %3798 = vmatprep.mubr.msk.bf16.mxu0 %vm4394_vm0, %v6148_v1  ;;  %v250_v53 = vunpack.c.l.s4 %v4396_v52  ;;  %v253_v56 = vshrl.u32 %v252_v54, 7  ;;  %vm1147_vm4 = vcmask 1043459   ;;  %vm1149_vm5 = vcmask 1044484   ;;  %s4398_s13 = smov 64  }
  0x13   :  { %vm1151_vm6 = vcmask 1045509   ;;  %vm1153_vm7 = vcmask 1046534   ;;  %vm1155_vm8 = vcmask 1047559  }
  0x14   :  { %3787 = vmatmul.mubr.msk.bf16.gmra.mrb[4].mxu1 %vm60_vm1, %v110_v27  ;;  %v251_v55 = vunpack.c.0.s8 %v250_v53  ;;  %v4625_v21 = vsub.s32 0, %v253_v56 }
  0x15   :  { %3790 = vmatprep.mubr.msk.bf16.mxu1 %vm60_vm1, %v111_v28 }
  0x16   :  { %v4605_v57 = vsub.s32 %v251_v55, %v253_v56  ;;  %6174 = vst [vmem:[#allocation8_spill] sm:$0xff] %v4625_v21 }
  0x18   :  { %6173 = vst [vmem:[#allocation7_spill] sm:$0xff] %v4605_v57 }
  0x1c   :  { %3791 = vmatmul.mubr.msk.bf16.gmra.mrb[8].mxu1 %vm60_vm1, %v112_v31 }
  0x1d   :  { %3826 = vmatprep.mubr.msk.bf16.mxu1 %vm4394_vm0, %v6148_v1 }
  0xdc   :  { %v4565_v32 = vpop.f32.mrb[0].mxu0 }
  0xdd   :  { %426 = vrot.lane.b32.xlu0 %v4565_v32, %s4395_s12  ;;  %v3772_v33 = vpop.f32.mrb[1].mxu0  ;;  %v248_v58 = vcombine.high %v4565_v32, %v4565_v32  ;;  %v255_v60 = vrot.slane %v4565_v32, %v4605_v57 }
  0xde   :  { %v4569_v34 = vpop.f32.mrb[2].mxu0 }
  0xdf   :  { %v3773_v35 = vpop.f32.mrb[3].mxu0  ;;  %v4571_v36 = vpop.f32.mrb[0].mxu1  ;;  %v297_v59 = vcombine.high %v4569_v34, %v4569_v34  ;;  %v262_v62 = vrot.slane %v248_v58, %v4605_v57  ;;  %v263_v63 = vcombine.high %v255_v60, %v255_v60  ;;  %v304_v0 = vrot.slane %v4569_v34, %v4605_v57 }
  0xe0   :  { %v4575_v37 = vpop.f32.mrb[1].mxu1  ;;  %v271_v5 = vrot.slane %v255_v60, %v4605_v57 }
  0xe1   :  { %428 = vrot.lane.b32.xlu0 %v4569_v34, %s4395_s12  ;;  %v4577_v38 = vpop.f32.mrb[2].mxu1  ;;  %v311_v61 = vrot.slane %v297_v59, %v4605_v57  ;;  %v264_v3 = vcombine.high %v262_v62, %v262_v62  ;;  %v285_v4 = vrot.slane %v263_v63, %v4605_v57  ;;  %v278_v6 = vrot.slane %v262_v62, %v4605_v57 }
  0xe2   :  { %v4579_v39 = vpop.f32.mrb[3].mxu1  ;;  %v312_v18 = vcombine.high %v304_v0, %v304_v0  ;;  %v320_v27 = vrot.slane %v304_v0, %v4605_v57  ;;  %v293_v28 = vcombine.high %v271_v5, %v271_v5  ;;  %v349_v55 = vrot.slane %v271_v5, %v4625_v21 }
  0xe3   :  { %v313_v2 = vcombine.high %v311_v61, %v311_v61  ;;  %v4622_v10 = vrot.slane %v311_v61, %v4605_v57  ;;  %v292_v17 = vrot.slane %v264_v3, %v4605_v57  ;;  %v295_v24 = vcombine.high %v285_v4, %v285_v4 }
  0xe4   :  { %v4581_v40 = vpop.f32.mrb[4].mxu0  ;;  %v294_v31 = vcombine.high %v278_v6, %v278_v6  ;;  %v334_v52 = vrot.slane %v312_v18, %v4605_v57  ;;  %v353_v54 = vrot.slane %v285_v4, %v4625_v21  ;;  %v381_v56 = vrot.slane %v320_v27, %v4625_v21 }
  0xe5   :  { %v4583_v41 = vpop.f32.mrb[5].mxu0  ;;  %v341_v8 = vrot.slane %v313_v2, %v4605_v57  ;;  %v343_v35 = vcombine.high %v4622_v10, %v4622_v10  ;;  %v296_v53 = vcombine.high %v292_v17, %v292_v17  ;;  %v361_v58 = vrot.slane %v295_v24, %v4625_v21 }
  0xe6   :  { %v4585_v42 = vpop.f32.mrb[6].mxu0  ;;  %v357_v59 = vrot.slane %v293_v28, %v4625_v21  ;;  %v365_v60 = vrot.slane %v278_v6, %v4625_v21  ;;  %v369_v62 = vrot.slane %v292_v17, %v4625_v21  ;;  %v373_v63 = vrot.slane %v294_v31, %v4625_v21 }
  0xe7   :  { %v4587_v43 = vpop.f32.mrb[7].mxu0  ;;  %v4589_v44 = vpop.f32.mrb[4].mxu1  ;;  %v345_v33 = vcombine.high %v341_v8, %v341_v8  ;;  %v401_v61 = vrot.slane %v341_v8, %v4625_v21  ;;  %v342_v0 = vcombine.high %v320_v27, %v320_v27  ;;  %v405_v4 = vrot.slane %v343_v35, %v4625_v21 }
  0xe8   :  { %v4591_v45 = vpop.f32.mrb[5].mxu1  ;;  %v344_v5 = vcombine.high %v334_v52, %v334_v52  ;;  %v377_v18 = vrot.slane %v296_v53, %v4625_v21 }
  0xe9   :  { %v4593_v46 = vpop.f32.mrb[6].mxu1  ;;  %v409_v3 = vrot.slane %v345_v33, %v4625_v21 }
  0xea   :  { %v4595_v47 = vpop.f32.mrb[7].mxu1 }
  0xef   :  { %v4597_v48 = vpop.f32.mrb[8].mxu1 }
  0xf0   :  { %v4599_v49 = vpop.f32.mrb[9].mxu1 }
  0xf1   :  { %v4601_v50 = vpop.f32.mrb[10].mxu1 }
  0xf2   :  { %v4603_v51 = vpop.f32.mrb[11].mxu1 }
 0x14f   :  { %v427_v2 = vpop.permute.xlu0 %426 }
 0x150   :  { %v435_v24 = vadd.f32 %v427_v2, %v361_v58  ;;  %v433_v1 = vadd.f32 %v427_v2, %v353_v54  ;;  %v432_v28 = vadd.f32 %v427_v2, %v349_v55  ;;  %v434_v57 = vadd.f32 %v427_v2, %v357_v59 }
 0x151   :  { %v436_v6 = vadd.f32 %v427_v2, %v365_v60  ;;  %v437_v30 = vadd.f32 %v427_v2, %v369_v62  ;;  %v438_v8 = vadd.f32 %v427_v2, %v373_v63  ;;  %v439_v29 = vadd.f32 %v427_v2, %v377_v18 }
 0x152   :  { %v4644_v17 = vadd.f32 %v4585_v42, %v435_v24  ;;  %v4647_v27 = vadd.f32 %v433_v1, %v4587_v43  ;;  %v448_v31 = vadd.f32 %v432_v28, %v4583_v41  ;;  %v4651_v33 = vadd.f32 %v4581_v40, %v434_v57 }
 0x153   :  { %v429_v35 = vpop.permute.xlu0 %428  ;;  %v4654_v53 = vadd.f32 %v436_v6, %v4575_v37  ;;  %v4657_v54 = vadd.f32 %v437_v30, %v4579_v39  ;;  %v4660_v55 = vadd.f32 %v4571_v36, %v438_v8  ;;  %v4663_v42 = vadd.f32 %v4577_v38, %v439_v29 }
 0x154   :  { %v447_v1 = vadd.f32 %v429_v35, %v409_v3  ;;  %v445_v43 = vadd.f32 %v429_v35, %v401_v61  ;;  %v464_v41 = vsel %vm60_vm1, %v448_v31, 0.0  ;;  %v440_v58 = vadd.f32 %v429_v35, %v381_v56 }
 0x155   :  { %465 = vadd.xlane.f32.xlu1 %v464_v41  ;;  %v446_v40 = vadd.f32 %v429_v35, %v405_v4  ;;  %v385_v57 = vrot.slane %v334_v52, %v4625_v21  ;;  %v389_v29 = vrot.slane %v342_v0, %v4625_v21  ;;  %v393_v56 = vrot.slane %v344_v5, %v4625_v21 }
 0x156   :  { %v4668_v37 = vadd.f32 %v4601_v50, %v447_v1  ;;  %v4671_v30 = vadd.f32 %v445_v43, %v4603_v51  ;;  %v4674_v36 = vadd.f32 %v440_v58, %v4591_v45  ;;  %v397_v52 = vrot.slane %v4622_v10, %v4625_v21 }
 0x157   :  { %v4678_v38 = vadd.f32 %v4597_v48, %v446_v40  ;;  %v441_v39 = vadd.f32 %v429_v35, %v385_v57  ;;  %v467_v51 = vsel %vm60_vm1, %v4647_v27, 0.0  ;;  %v442_v59 = vadd.f32 %v429_v35, %v389_v29 }
 0x158   :  { %v488_v50 = vsel %vm60_vm1, %v4674_v36, 0.0  ;;  %v443_v48 = vadd.f32 %v429_v35, %v393_v56  ;;  %v444_v60 = vadd.f32 %v429_v35, %v397_v52  ;;  %v503_v63 = vsel %vm60_vm1, %v4671_v30, 0.0 }
 0x159   :  { %489 = vadd.xlane.f32.xlu0 %v488_v50  ;;  %468 = vadd.xlane.f32.xlu1 %v467_v51  ;;  %v4688_v45 = vadd.f32 %v441_v39, %v4595_v47  ;;  %v4691_v61 = vadd.f32 %v4589_v44, %v442_v59  ;;  %v470_v0 = vsel %vm60_vm1, %v4651_v33, 0.0  ;;  %v506_v47 = vsel %vm60_vm1, %v4678_v38, 0.0 }
 0x15a   :  { %v4694_v62 = vadd.f32 %v4593_v46, %v443_v48  ;;  %v4697_v10 = vadd.f32 %v444_v60, %v4599_v49  ;;  %v473_v44 = vsel %vm60_vm1, %v4644_v17, 0.0  ;;  %v509_v46 = vsel %vm60_vm1, %v4668_v37, 0.0 }
 0x15b   :  { %v476_v49 = vsel %vm60_vm1, %v4654_v53, 0.0  ;;  %v479_v2 = vsel %vm60_vm1, %v4657_v54, 0.0  ;;  %v482_v3 = vsel %vm60_vm1, %v4660_v55, 0.0  ;;  %v491_v4 = vsel %vm60_vm1, %v4688_v45, 0.0 }
 0x15c   :  { %v494_v5 = vsel %vm60_vm1, %v4691_v61, 0.0  ;;  %v497_v18 = vsel %vm60_vm1, %v4694_v62, 0.0  ;;  %v500_v24 = vsel %vm60_vm1, %v4697_v10, 0.0  ;;  %v485_v28 = vsel %vm60_vm1, %v4663_v42, 0.0 }
 0x15d   :  { %504 = vadd.xlane.f32.xlu0 %v503_v63  ;;  %471 = vadd.xlane.f32.xlu1 %v470_v0 }
 0x161   :  { %507 = vadd.xlane.f32.xlu0 %v506_v47  ;;  %474 = vadd.xlane.f32.xlu1 %v473_v44 }
 0x165   :  { %510 = vadd.xlane.f32.xlu0 %v509_v46  ;;  %477 = vadd.xlane.f32.xlu1 %v476_v49 }
 0x169   :  { %480 = vadd.xlane.f32.xlu1 %v479_v2 }
 0x16d   :  { %483 = vadd.xlane.f32.xlu1 %v482_v3 }
 0x171   :  { %492 = vadd.xlane.f32.xlu1 %v491_v4 }
 0x175   :  { %495 = vadd.xlane.f32.xlu1 %v494_v5 }
 0x179   :  { %498 = vadd.xlane.f32.xlu1 %v497_v18 }
 0x17d   :  { %501 = vadd.xlane.f32.xlu1 %v500_v24 }
 0x181   :  { %486 = vadd.xlane.f32.xlu1 %v485_v28 }
 0x1e2   :  { %v466_v6 = vpop.xlane.xlu1 %465 }
 0x1e3   :  { %v513_v8 = vmul.f32 0.03125, %v466_v6 }
 0x1e5   :  { %v4725_v35 = vsub.f32 %v448_v31, %v513_v8 }
 0x1e6   :  { %v469_v1 = vpop.xlane.xlu1 %468  ;;  %v490_v48 = vpop.xlane.xlu0 %489 }
 0x1e7   :  { %v514_v43 = vmul.f32 0.03125, %v469_v1  ;;  %v545_v41 = vmul.f32 %v4725_v35, %v4725_v35  ;;  %v521_v0 = vmul.f32 0.03125, %v490_v48 }
 0x1e9   :  { %v4730_v58 = vsub.f32 %v4647_v27, %v514_v43  ;;  %v561_v40 = vsel %vm60_vm1, %v545_v41, 0.0  ;;  %v4754_v2 = vsub.f32 %v4674_v36, %v521_v0 }
 0x1ea   :  { %562 = vadd.xlane.f32.xlu1 %v561_v40  ;;  %v472_v57 = vpop.xlane.xlu1 %471  ;;  %v505_v41 = vpop.xlane.xlu0 %504 }
 0x1eb   :  { %v515_v29 = vmul.f32 0.03125, %v472_v57  ;;  %v546_v39 = vmul.f32 %v4730_v58, %v4730_v58  ;;  %v553_v36 = vmul.f32 %v4754_v2, %v4754_v2 }
 0x1ed   :  { %v4736_v56 = vsub.f32 %v4651_v33, %v515_v29  ;;  %v564_v31 = vsel %vm60_vm1, %v546_v39, 0.0  ;;  %v585_v1 = vsel %vm60_vm1, %v553_v36, 0.0 }
 0x1ee   :  { %565 = vadd.xlane.f32.xlu0 %v564_v31  ;;  %v475_v52 = vpop.xlane.xlu1 %474 }
 0x1ef   :  { %v516_v50 = vmul.f32 0.03125, %v475_v52  ;;  %v547_v27 = vmul.f32 %v4736_v56, %v4736_v56 }
 0x1f1   :  { %v4742_v51 = vsub.f32 %v4644_v17, %v516_v50  ;;  %v567_v59 = vsel %vm60_vm1, %v547_v27, 0.0  ;;  %v526_v27 = vmul.f32 0.03125, %v505_v41 }
 0x1f2   :  { %568 = vadd.xlane.f32.xlu1 %v567_v59  ;;  %v478_v60 = vpop.xlane.xlu1 %477  ;;  %v508_v59 = vpop.xlane.xlu0 %507 }
 0x1f3   :  { %v517_v63 = vmul.f32 0.03125, %v478_v60  ;;  %v548_v33 = vmul.f32 %v4742_v51, %v4742_v51  ;;  %v4790_v0 = vsub.f32 %v4671_v30, %v526_v27 }
 0x1f5   :  { %v4748_v47 = vsub.f32 %v4654_v53, %v517_v63  ;;  %v570_v44 = vsel %vm60_vm1, %v548_v33, 0.0 }
 0x1f6   :  { %571 = vadd.xlane.f32.xlu1 %v570_v44  ;;  %v481_v46 = vpop.xlane.xlu1 %480  ;;  %v527_v44 = vmul.f32 0.03125, %v508_v59 }
 0x1f7   :  { %v518_v49 = vmul.f32 0.03125, %v481_v46  ;;  %v549_v17 = vmul.f32 %v4748_v47, %v4748_v47 }
 0x1f9   :  { %v4757_v3 = vsub.f32 %v4657_v54, %v518_v49  ;;  %v573_v4 = vsel %vm60_vm1, %v549_v17, 0.0  ;;  %v511_v17 = vpop.xlane.xlu0 %510 }
 0x1fa   :  { %574 = vadd.xlane.f32.xlu1 %v573_v4  ;;  %v484_v5 = vpop.xlane.xlu1 %483  ;;  %v528_v30 = vmul.f32 0.03125, %v511_v17 }
 0x1fb   :  { %v519_v53 = vmul.f32 0.03125, %v484_v5  ;;  %v550_v18 = vmul.f32 %v4757_v3, %v4757_v3 }
 0x1fd   :  { %v4763_v24 = vsub.f32 %v4660_v55, %v519_v53  ;;  %v576_v28 = vsel %vm60_vm1, %v550_v18, 0.0  ;;  %v558_v53 = vmul.f32 %v4790_v0, %v4790_v0  ;;  %v4801_v18 = vsub.f32 %v4678_v38, %v527_v44 }
 0x1fe   :  { %577 = vadd.xlane.f32.xlu1 %v576_v28  ;;  %v493_v6 = vpop.xlane.xlu1 %492 }
 0x1ff   :  { %v522_v54 = vmul.f32 0.03125, %v493_v6  ;;  %v551_v43 = vmul.f32 %v4763_v24, %v4763_v24  ;;  %v4810_v6 = vsub.f32 %v4668_v37, %v528_v30  ;;  %v559_v38 = vmul.f32 %v4801_v18, %v4801_v18 }
 0x201   :  { %v4769_v8 = vsub.f32 %v4688_v45, %v522_v54  ;;  %v579_v39 = vsel %vm60_vm1, %v551_v43, 0.0  ;;  %v600_v54 = vsel %vm60_vm1, %v558_v53, 0.0  ;;  %v560_v43 = vmul.f32 %v4810_v6, %v4810_v6 }
 0x202   :  { %586 = vadd.xlane.f32.xlu1 %v585_v1  ;;  %v496_v55 = vpop.xlane.xlu1 %495 }
 0x203   :  { %v523_v40 = vmul.f32 0.03125, %v496_v55  ;;  %v554_v57 = vmul.f32 %v4769_v8, %v4769_v8  ;;  %v606_v41 = vsel %vm60_vm1, %v560_v43, 0.0 }
 0x205   :  { %v4777_v29 = vsub.f32 %v4691_v61, %v523_v40  ;;  %v588_v45 = vsel %vm60_vm1, %v554_v57, 0.0 }
 0x206   :  { %580 = vadd.xlane.f32.xlu1 %v579_v39  ;;  %589 = vadd.xlane.f32.xlu0 %v588_v45  ;;  %v499_v31 = vpop.xlane.xlu1 %498 }
 0x207   :  { %v524_v52 = vmul.f32 0.03125, %v499_v31  ;;  %v555_v50 = vmul.f32 %v4777_v29, %v4777_v29 }
 0x209   :  { %v4784_v48 = vsub.f32 %v4694_v62, %v524_v52  ;;  %v591_v60 = vsel %vm60_vm1, %v555_v50, 0.0 }
 0x20a   :  { %592 = vadd.xlane.f32.xlu0 %v591_v60  ;;  %v502_v61 = vpop.xlane.xlu1 %501 }
 0x20b   :  { %v525_v63 = vmul.f32 0.03125, %v502_v61  ;;  %v556_v33 = vmul.f32 %v4784_v48, %v4784_v48 }
 0x20d   :  { %v4793_v46 = vsub.f32 %v4697_v10, %v525_v63  ;;  %v594_v49 = vsel %vm60_vm1, %v556_v33, 0.0 }
 0x20e   :  { %595 = vadd.xlane.f32.xlu0 %v594_v49  ;;  %v487_v62 = vpop.xlane.xlu1 %486 }
 0x20f   :  { %v520_v4 = vmul.f32 0.03125, %v487_v62  ;;  %v557_v5 = vmul.f32 %v4793_v46, %v4793_v46 }
 0x211   :  { %v4804_v28 = vsub.f32 %v4663_v42, %v520_v4  ;;  %v597_v10 = vsel %vm60_vm1, %v557_v5, 0.0  ;;  %v603_v42 = vsel %vm60_vm1, %v559_v38, 0.0 }
 0x212   :  { %598 = vadd.xlane.f32.xlu0 %v597_v10 }
 0x213   :  { %v552_v36 = vmul.f32 %v4804_v28, %v4804_v28 }
 0x215   :  { %v582_v1 = vsel %vm60_vm1, %v552_v36, 0.0 }
 0x216   :  { %601 = vadd.xlane.f32.xlu0 %v600_v54  ;;  %583 = vadd.xlane.f32.xlu1 %v582_v1 }
 0x21a   :  { %604 = vadd.xlane.f32.xlu0 %v603_v42 }
 0x21e   :  { %607 = vadd.xlane.f32.xlu0 %v606_v41 }
 0x227   :  { %977 = vrot.lane.b32.xlu1 %v4565_v32, %s4397_s1 }
 0x234   :  { %979 = vrot.lane.b32.xlu0 %v4569_v34, %s4397_s1 }
 0x277   :  { %v563_v37 = vpop.xlane.xlu1 %562 }
 0x278   :  { %v609_v55 = vmul.f32 0.03125, %v563_v37 }
 0x27a   :  { %v625_v40 = vadd.f32 1e-05, %v609_v55 }
 0x27b   :  { %v566_v57 = vpop.xlane.xlu0 %565 }
 0x27c   :  { %3875 = vrsqrt.f32 %v625_v40  ;;  %v610_v39 = vmul.f32 0.03125, %v566_v57 }
 0x27e   :  { %v626_v45 = vadd.f32 1e-05, %v610_v39 }
 0x27f   :  { %v569_v31 = vpop.xlane.xlu1 %568 }
 0x280   :  { %3877 = vrsqrt.f32 %v626_v45  ;;  %v611_v52 = vmul.f32 0.03125, %v569_v31 }
 0x282   :  { %v627_v50 = vadd.f32 1e-05, %v611_v52 }
 0x283   :  { %v572_v27 = vpop.xlane.xlu1 %571 }
 0x284   :  { %3879 = vrsqrt.f32 %v627_v50  ;;  %v612_v59 = vmul.f32 0.03125, %v572_v27 }
 0x286   :  { %v3876_v60 = vpop.eup %3875  ;;  %v628_v61 = vadd.f32 1e-05, %v612_v59 }
 0x287   :  { %v657_v63 = vmul.f32 %v3876_v60, %v4725_v35  ;;  %v575_v33 = vpop.xlane.xlu1 %574 }
 0x288   :  { %3881 = vrsqrt.f32 %v628_v61  ;;  %v613_v44 = vmul.f32 0.03125, %v575_v33 }
 0x289   :  { %v673_v49 = vmax.f32 %v657_v63, 0.0 }
 0x28a   :  { %v3878_v17 = vpop.eup %3877  ;;  %v629_v62 = vadd.f32 1e-05, %v613_v44 }
 0x28b   :  { %v4826_v4 = vadd.f32 %v673_v49, %v4489_v15  ;;  %v658_v5 = vmul.f32 %v3878_v17, %v4730_v58  ;;  %v578_v53 = vpop.xlane.xlu1 %577 }
 0x28c   :  { %3883 = vrsqrt.f32 %v629_v62  ;;  %v614_v30 = vmul.f32 0.03125, %v578_v53 }
 0x28d   :  { %v3637_v10 = vmul.f32 -1.442695, %v4826_v4  ;;  %v674_v36 = vmax.f32 %v658_v5, 0.0 }
 0x28e   :  { %v3880_v54 = vpop.eup %3879  ;;  %v630_v1 = vadd.f32 1e-05, %v614_v30 }
 0x28f   :  { %3885 = vpow2.f32 %v3637_v10  ;;  %v4831_v35 = vadd.f32 %v674_v36, %v4494_v16  ;;  %v659_v38 = vmul.f32 %v3880_v54, %v4736_v56  ;;  %v587_v42 = vpop.xlane.xlu1 %586 }
 0x290   :  { %3887 = vrsqrt.f32 %v630_v1  ;;  %v617_v15 = vmul.f32 0.03125, %v587_v42 }
 0x291   :  { %v3638_v43 = vmul.f32 -1.442695, %v4831_v35  ;;  %v675_v58 = vmax.f32 %v659_v38, 0.0 }
 0x292   :  { %v3882_v41 = vpop.eup %3881  ;;  %v633_v37 = vadd.f32 1e-05, %v617_v15 }
 0x293   :  { %3889 = vpow2.f32 %v3638_v43  ;;  %v4836_v55 = vadd.f32 %v675_v58, %v4505_v19  ;;  %v660_v40 = vmul.f32 %v3882_v41, %v4742_v51  ;;  %v590_v57 = vpop.xlane.xlu0 %589  ;;  %v581_v39 = vpop.xlane.xlu1 %580 }
 0x294   :  { %3891 = vrsqrt.f32 %v633_v37  ;;  %v618_v16 = vmul.f32 0.03125, %v590_v57  ;;  %v615_v45 = vmul.f32 0.03125, %v581_v39 }
 0x295   :  { %v3639_v56 = vmul.f32 -1.442695, %v4836_v55  ;;  %v676_v31 = vmax.f32 %v660_v40, 0.0 }
 0x296   :  { %v3884_v52 = vpop.eup %3883  ;;  %v634_v50 = vadd.f32 1e-05, %v618_v16  ;;  %v631_v27 = vadd.f32 1e-05, %v615_v45 }
 0x297   :  { %3893 = vpow2.f32 %v3639_v56  ;;  %v4841_v59 = vadd.f32 %v676_v31, %v4510_v20  ;;  %v661_v19 = vmul.f32 %v3884_v52, %v4748_v47  ;;  %v593_v60 = vpop.xlane.xlu0 %592 }
 0x298   :  { %3895 = vrsqrt.f32 %v634_v50  ;;  %v619_v51 = vmul.f32 0.03125, %v593_v60 }
 0x299   :  { %v3886_v61 = vpop.eup %3885  ;;  %v3640_v63 = vmul.f32 -1.442695, %v4841_v59  ;;  %v677_v33 = vmax.f32 %v661_v19, 0.0  ;;  %3897 = vrsqrt.f32 %v631_v27 }
 0x29a   :  { %v3888_v44 = vpop.eup %3887  ;;  %v753_v49 = vadd.f32 1.0, %v3886_v61  ;;  %v635_v17 = vadd.f32 1e-05, %v619_v51 }
 0x29b   :  { %3899 = vpow2.f32 %v3640_v63  ;;  %v4846_v62 = vadd.f32 %v677_v33, %v4457_v7  ;;  %v662_v20 = vmul.f32 %v3888_v44, %v4757_v3  ;;  %v596_v5 = vpop.xlane.xlu0 %595 }
 0x29c   :  { %3901 = vrcp.f32 %v753_v49  ;;  %v620_v47 = vmul.f32 0.03125, %v596_v5 }
 0x29d   :  { %v3890_v53 = vpop.eup %3889  ;;  %v3641_v30 = vmul.f32 -1.442695, %v4846_v62  ;;  %v678_v10 = vmax.f32 %v662_v20, 0.0  ;;  %3903 = vrsqrt.f32 %v635_v17 }
 0x29e   :  { %v3892_v36 = vpop.eup %3891  ;;  %v754_v54 = vadd.f32 1.0, %v3890_v53  ;;  %v636_v1 = vadd.f32 1e-05, %v620_v47 }
 0x29f   :  { %3905 = vpow2.f32 %v3641_v30  ;;  %v4851_v38 = vadd.f32 %v678_v10, %v4462_v9  ;;  %v665_v7 = vmul.f32 %v3892_v36, %v4754_v2  ;;  %v599_v42 = vpop.xlane.xlu0 %598 }
 0x2a0   :  { %3907 = vrcp.f32 %v754_v54  ;;  %v621_v3 = vmul.f32 0.03125, %v599_v42 }
 0x2a1   :  { %v3894_v15 = vpop.eup %3893  ;;  %v3642_v43 = vmul.f32 -1.442695, %v4851_v38  ;;  %v681_v58 = vmax.f32 %v665_v7, 0.0  ;;  %3909 = vrsqrt.f32 %v636_v1 }
 0x2a2   :  { %v3896_v41 = vpop.eup %3895  ;;  %v755_v37 = vadd.f32 1.0, %v3894_v15  ;;  %v637_v40 = vadd.f32 1e-05, %v621_v3 }
 0x2a3   :  { %v3898_v57 = vpop.eup %3897  ;;  %3911 = vpow2.f32 %v3642_v43  ;;  %v4856_v39 = vadd.f32 %v681_v58, %v4479_v13  ;;  %v666_v9 = vmul.f32 %v3896_v41, %v4769_v8  ;;  %v602_v16 = vpop.xlane.xlu0 %601 }
 0x2a4   :  { %3913 = vrcp.f32 %v755_v37  ;;  %v663_v2 = vmul.f32 %v3898_v57, %v4763_v24  ;;  %v622_v45 = vmul.f32 0.03125, %v602_v16  ;;  %v584_v56 = vpop.xlane.xlu1 %583 }
 0x2a5   :  { %v3900_v31 = vpop.eup %3899  ;;  %v3645_v52 = vmul.f32 -1.442695, %v4856_v39  ;;  %v682_v50 = vmax.f32 %v666_v9, 0.0  ;;  %3915 = vrsqrt.f32 %v637_v40  ;;  %v616_v63 = vmul.f32 0.03125, %v584_v56 }
 0x2a6   :  { %v3902_v27 = vpop.eup %3901  ;;  %v756_v19 = vadd.f32 1.0, %v3900_v31  ;;  %v679_v60 = vmax.f32 %v663_v2, 0.0  ;;  %v638_v51 = vadd.f32 1e-05, %v622_v45 }
 0x2a7   :  { %v3904_v61 = vpop.eup %3903  ;;  %v801_v13 = vmul.f32 1.442695, %v3902_v27  ;;  %3917 = vpow2.f32 %v3645_v52  ;;  %v4862_v8 = vadd.f32 %v682_v50, %v4484_v14  ;;  %v605_v33 = vpop.xlane.xlu0 %604  ;;  %v632_v10 = vadd.f32 1e-05, %v616_v63 }
 0x2a8   :  { %3919 = vrcp.f32 %v756_v19  ;;  %v4865_v24 = vadd.f32 %v679_v60, %v4469_v11  ;;  %v667_v44 = vmul.f32 %v3904_v61, %v4777_v29  ;;  %v623_v36 = vmul.f32 0.03125, %v605_v33 }
 0x2a9   :  { %v3906_v49 = vpop.eup %3905  ;;  %3921 = vpow2.f32 %v801_v13  ;;  %v3646_v17 = vmul.f32 -1.442695, %v4862_v8 }
 0x2aa   :  { %v3908_v20 = vpop.eup %3907  ;;  %v757_v5 = vadd.f32 1.0, %v3906_v49  ;;  %v3643_v47 = vmul.f32 -1.442695, %v4865_v24  ;;  %v683_v53 = vmax.f32 %v667_v44, 0.0  ;;  %3923 = vrsqrt.f32 %v638_v51 }
 0x2ab   :  { %v3910_v14 = vpop.eup %3909  ;;  %v803_v30 = vmul.f32 1.442695, %v3908_v20  ;;  %3925 = vpow2.f32 %v3646_v17  ;;  %v608_v54 = vpop.xlane.xlu0 %607  ;;  %v639_v41 = vadd.f32 1e-05, %v623_v36 }
 0x2ac   :  { %3927 = vrcp.f32 %v757_v5  ;;  %v4871_v11 = vadd.f32 %v683_v53, %v4518_v22  ;;  %v668_v29 = vmul.f32 %v3910_v14, %v4784_v48  ;;  %v624_v37 = vmul.f32 0.03125, %v608_v54 }
 0x2ad   :  { %v3912_v1 = vpop.eup %3911  ;;  %3929 = vpow2.f32 %v803_v30 }
 0x2ae   :  { %v3914_v7 = vpop.eup %3913  ;;  %v758_v42 = vadd.f32 1.0, %v3912_v1  ;;  %3931 = vpow2.f32 %v3643_v47  ;;  %v3647_v3 = vmul.f32 -1.442695, %v4871_v11  ;;  %v684_v15 = vmax.f32 %v668_v29, 0.0 }
 0x2af   :  { %v3916_v43 = vpop.eup %3915  ;;  %v805_v58 = vmul.f32 1.442695, %v3914_v7  ;;  %3933 = vrsqrt.f32 %v632_v10  ;;  %v640_v31 = vadd.f32 1e-05, %v624_v37 }
 0x2b0   :  { %3935 = vrcp.f32 %v758_v42  ;;  %v4876_v22 = vadd.f32 %v684_v15, %v4523_v23  ;;  %v669_v48 = vmul.f32 %v3916_v43, %v4793_v46 }
 0x2b1   :  { %v3918_v40 = vpop.eup %3917  ;;  %3937 = vpow2.f32 %v805_v58 }
 0x2b2   :  { %v3920_v57 = vpop.eup %3919  ;;  %v761_v9 = vadd.f32 1.0, %v3918_v40  ;;  %3939 = vpow2.f32 %v3647_v3  ;;  %v3648_v16 = vmul.f32 -1.442695, %v4876_v22  ;;  %v685_v2 = vmax.f32 %v669_v48, 0.0 }
 0x2b3   :  { %v4880_v45 = vpop.eup %3921  ;;  %v807_v56 = vmul.f32 1.442695, %v3920_v57  ;;  %3941 = vrsqrt.f32 %v639_v41 }
 0x2b4   :  { %v3924_v52 = vpop.eup %3923  ;;  %v833_v23 = vsel %vm60_vm1, %v4880_v45, 0.0  ;;  %3943 = vrcp.f32 %v761_v9  ;;  %v4885_v46 = vadd.f32 %v685_v2, %v4532_v25 }
 0x2b5   :  { %v3926_v50 = vpop.eup %3925  ;;  %v834_v27 = vrot.slane %v833_v23, 4  ;;  %3945 = vpow2.f32 %v807_v56  ;;  %v670_v19 = vmul.f32 %v3924_v52, %v4790_v0 }
 0x2b6   :  { %v3928_v60 = vpop.eup %3927  ;;  %v762_v51 = vadd.f32 1.0, %v3926_v50  ;;  %3947 = vpow2.f32 %v3648_v16  ;;  %v3649_v61 = vmul.f32 -1.442695, %v4885_v46 }
 0x2b7   :  { %v4889_v13 = vpop.eup %3929  ;;  %v835_v63 = vadd.f32 %v834_v27, %v833_v23  ;;  %v809_v33 = vmul.f32 1.442695, %v3928_v60  ;;  %v686_v44 = vmax.f32 %v670_v19, 0.0  ;;  %3949 = vrsqrt.f32 %v640_v31  ;;  %v6175_v19 = vld [vmem:[#allocation5_spill] sm:$0xff] }
 0x2b8   :  { %v3932_v49 = vpop.eup %3931  ;;  %v840_v25 = vsel %vm60_vm1, %v4889_v13, 0.0  ;;  %3951 = vrcp.f32 %v762_v51 }
 0x2b9   :  { %v3934_v17 = vpop.eup %3933  ;;  %v836_v20 = vrot.slane %v835_v63, 2  ;;  %v841_v5 = vrot.slane %v840_v25, 4  ;;  %3953 = vpow2.f32 %v809_v33  ;;  %v759_v0 = vadd.f32 1.0, %v3932_v49 }
 0x2ba   :  { %v3936_v47 = vpop.eup %3935  ;;  %3955 = vpow2.f32 %v3649_v61  ;;  %v4894_v53 = vadd.f32 %v686_v44, %v4538_v26  ;;  %v664_v14 = vmul.f32 %v3934_v17, %v4804_v28 }
 0x2bb   :  { %v4897_v30 = vpop.eup %3937  ;;  %v842_v10 = vadd.f32 %v841_v5, %v840_v25  ;;  %v811_v36 = vmul.f32 1.442695, %v3936_v47  ;;  %3957 = vrcp.f32 %v759_v0  ;;  %v837_v29 = vadd.f32 %v836_v20, %v835_v63 }
 0x2bc   :  { %v3940_v54 = vpop.eup %3939  ;;  %v847_v1 = vsel %vm60_vm1, %v4897_v30, 0.0  ;;  %v3650_v7 = vmul.f32 -1.442695, %v4894_v53  ;;  %v680_v42 = vmax.f32 %v664_v14, 0.0 }
 0x2bd   :  { %v3942_v3 = vpop.eup %3941  ;;  %v843_v15 = vrot.slane %v842_v10, 2  ;;  %v848_v43 = vrot.slane %v847_v1, 4  ;;  %3959 = vpow2.f32 %v811_v36  ;;  %v763_v26 = vadd.f32 1.0, %v3940_v54 }
 0x2be   :  { %v3944_v58 = vpop.eup %3943  ;;  %3961 = vpow2.f32 %v3650_v7  ;;  %v4903_v28 = vadd.f32 %v680_v42, %v4474_v12  ;;  %v671_v41 = vmul.f32 %v3942_v3, %v4801_v18  ;;  %v838_v37 = vrot.slane %v837_v29, 1  ;;  %v6177_v3 = vld [vmem:[#allocation6_spill] sm:$0xff] }
 0x2bf   :  { %v4906_v48 = vpop.eup %3945  ;;  %v849_v40 = vadd.f32 %v848_v43, %v847_v1  ;;  %v817_v57 = vmul.f32 1.442695, %v3944_v58  ;;  %3963 = vrcp.f32 %v763_v26  ;;  %v844_v9 = vadd.f32 %v843_v15, %v842_v10 }
 0x2c0   :  { %v3948_v16 = vpop.eup %3947  ;;  %v854_v2 = vsel %vm60_vm1, %v4906_v48, 0.0  ;;  %v3644_v56 = vmul.f32 -1.442695, %v4903_v28  ;;  %v687_v31 = vmax.f32 %v671_v41, 0.0  ;;  %v839_v52 = vadd.f32 %v838_v37, %v837_v29 }
 0x2c1   :  { %v3950_v23 = vpop.eup %3949  ;;  %v850_v12 = vrot.slane %v849_v40, 2  ;;  %v855_v50 = vrot.slane %v854_v2, 4  ;;  %3965 = vpow2.f32 %v817_v57  ;;  %v764_v18 = vadd.f32 1.0, %v3948_v16 }
 0x2c2   :  { %v3952_v27 = vpop.eup %3951  ;;  %3967 = vpow2.f32 %v3644_v56  ;;  %v4912_v60 = vadd.f32 %v687_v31, %v6175_v19  ;;  %v845_v51 = vrot.slane %v844_v9, 1  ;;  %v672_v61 = vmul.f32 %v3950_v23, %v4810_v6 }
 0x2c3   :  { %v4915_v63 = vpop.eup %3953  ;;  %v856_v33 = vadd.f32 %v855_v50, %v854_v2  ;;  %v819_v44 = vmul.f32 1.442695, %v3952_v27  ;;  %3969 = vrcp.f32 %v764_v18  ;;  %v851_v49 = vadd.f32 %v850_v12, %v849_v40 }
 0x2c4   :  { %6176 = vst [vmem:[#allocation5_spill] sm:$0xff] %v4912_v60  ;;  %v3956_v25 = vpop.eup %3955  ;;  %v861_v17 = vsel %vm60_vm1, %v4915_v63, 0.0  ;;  %v3651_v20 = vmul.f32 -1.442695, %v4912_v60  ;;  %v846_v5 = vadd.f32 %v845_v51, %v844_v9  ;;  %3971 = vrcp.f32 %v839_v52 }
 0x2c5   :  { %v3958_v0 = vpop.eup %3957  ;;  %v862_v47 = vrot.slane %v861_v17, 4  ;;  %3973 = vpow2.f32 %v819_v44  ;;  %v765_v14 = vadd.f32 1.0, %v3956_v25  ;;  %v852_v10 = vrot.slane %v851_v49, 1 }
 0x2c6   :  { %v813_v6 = vmul.f32 1.442695, %v3958_v0  ;;  %3975 = vpow2.f32 %v3651_v20  ;;  %v688_v36 = vmax.f32 %v672_v61, 0.0  ;;  %v857_v29 = vrot.slane %v856_v33, 2 }
 0x2c7   :  { %v4920_v54 = vpop.eup %3959  ;;  %3977 = vrcp.f32 %v765_v14  ;;  %v853_v1 = vadd.f32 %v852_v10, %v851_v49  ;;  %v863_v7 = vadd.f32 %v862_v47, %v861_v17 }
 0x2c8   :  { %v3962_v42 = vpop.eup %3961  ;;  %3979 = vpow2.f32 %v813_v6  ;;  %v4923_v15 = vadd.f32 %v688_v36, %v6177_v3  ;;  %v858_v43 = vadd.f32 %v857_v29, %v856_v33  ;;  %v868_v26 = vsel %vm60_vm1, %v4920_v54, 0.0  ;;  %v4939_v29 = vpop.permute.xlu1 %977 }
 0x2c9   :  { %v3964_v58 = vpop.eup %3963  ;;  %3981 = vrcp.f32 %v846_v5  ;;  %v864_v41 = vrot.slane %v863_v7, 2  ;;  %v869_v37 = vrot.slane %v868_v26, 4  ;;  %v766_v57 = vadd.f32 1.0, %v3962_v42 }
 0x2ca   :  { %6178 = vst [vmem:[#allocation6_spill] sm:$0xff] %v4923_v15  ;;  %v821_v40 = vmul.f32 1.442695, %v3964_v58  ;;  %v3652_v9 = vmul.f32 -1.442695, %v4923_v15  ;;  %v859_v16 = vrot.slane %v858_v43, 1  ;;  %3983 = vrcp.f32 %v853_v1 }
 0x2cb   :  { %v4928_v2 = vpop.eup %3965  ;;  %v865_v56 = vadd.f32 %v864_v41, %v863_v7  ;;  %v870_v31 = vadd.f32 %v869_v37, %v868_v26 }
 0x2cc   :  { %v3968_v52 = vpop.eup %3967  ;;  %v889_v23 = vsel %vm60_vm1, %v4928_v2, 0.0  ;;  %3985 = vpow2.f32 %v821_v40  ;;  %v860_v12 = vadd.f32 %v859_v16, %v858_v43 }
 0x2cd   :  { %v3970_v50 = vpop.eup %3969  ;;  %v890_v18 = vrot.slane %v889_v23, 4  ;;  %v760_v27 = vadd.f32 1.0, %v3968_v52  ;;  %3987 = vpow2.f32 %v3652_v9  ;;  %v866_v19 = vrot.slane %v865_v56, 1 }
 0x2ce   :  { %v3972_v51 = vpop.eup %3971  ;;  %v823_v61 = vmul.f32 1.442695, %v3970_v50  ;;  %3989 = vrcp.f32 %v766_v57  ;;  %v871_v33 = vrot.slane %v870_v31, 2 }
 0x2cf   :  { %v4932_v44 = vpop.eup %3973  ;;  %v891_v49 = vadd.f32 %v890_v18, %v889_v23  ;;  %3991 = vrcp.f32 %v760_v27  ;;  %v961_v25 = vmul.f32 %v3972_v51, %v4880_v45  ;;  %v867_v17 = vadd.f32 %v866_v19, %v865_v56 }
 0x2d0   :  { %v3976_v20 = vpop.eup %3975  ;;  %v896_v5 = vsel %vm60_vm1, %v4932_v44, 0.0  ;;  %v872_v0 = vadd.f32 %v871_v33, %v870_v31  ;;  %3993 = vrcp.f32 %v860_v12 }
 0x2d1   :  { %v3978_v47 = vpop.eup %3977  ;;  %v892_v14 = vrot.slane %v891_v49, 2  ;;  %v897_v10 = vrot.slane %v896_v5, 4  ;;  %3995 = vpow2.f32 %v823_v61  ;;  %v767_v6 = vadd.f32 1.0, %v3976_v20 }
 0x2d2   :  { %v4937_v36 = vpop.eup %3979  ;;  %v873_v1 = vrot.slane %v872_v0, 1  ;;  %3997 = vrcp.f32 %v867_v17  ;;  %v983_v42 = vmul.f32 %v4939_v29, %v961_v25  ;;  %v825_v52 = vmul.f32 1.442695, %v3978_v47 }
 0x2d3   :  { %v3982_v7 = vpop.eup %3981  ;;  %v898_v45 = vadd.f32 %v897_v10, %v896_v5  ;;  %v893_v3 = vadd.f32 %v892_v14, %v891_v49  ;;  %v875_v43 = vsel %vm60_vm1, %v4937_v36, 0.0  ;;  %3999 = vrcp.f32 %v767_v6 }
 0x2d4   :  { %v874_v26 = vadd.f32 %v873_v1, %v872_v0  ;;  %v876_v58 = vrot.slane %v875_v43, 4  ;;  %v3984_v41 = vpop.eup %3983  ;;  %v962_v40 = vmul.f32 %v3982_v7, %v4889_v13  ;;  %v999_v23 = vsel %vm60_vm1, %v983_v42, 0.0 }
 0x2d5   :  { %v899_v37 = vrot.slane %v898_v45, 2  ;;  %v894_v57 = vrot.slane %v893_v3, 1  ;;  %v963_v13 = vmul.f32 %v3984_v41, %v4897_v30  ;;  %v1000_v0 = vrot.slane %v999_v23, 4 }
 0x2d6   :  { %v4945_v9 = vpop.eup %3985  ;;  %v877_v16 = vadd.f32 %v876_v58, %v875_v43  ;;  %4001 = vrcp.f32 %v874_v26  ;;  %v984_v61 = vmul.f32 %v4939_v29, %v962_v40 }
 0x2d7   :  { %v3988_v56 = vpop.eup %3987  ;;  %v903_v31 = vsel %vm60_vm1, %v4945_v9, 0.0  ;;  %v900_v27 = vadd.f32 %v899_v37, %v898_v45  ;;  %v895_v33 = vadd.f32 %v894_v57, %v893_v3  ;;  %v985_v1 = vmul.f32 %v4939_v29, %v963_v13 }
 0x2d8   :  { %v3990_v12 = vpop.eup %3989  ;;  %v904_v50 = vrot.slane %v903_v31, 4  ;;  %v768_v18 = vadd.f32 1.0, %v3988_v56  ;;  %v878_v19 = vrot.slane %v877_v16, 2  ;;  %v1006_v30 = vsel %vm60_vm1, %v984_v61, 0.0 }
 0x2d9   :  { %v3992_v51 = vpop.eup %3991  ;;  %v901_v10 = vrot.slane %v900_v27, 1  ;;  %v827_v26 = vmul.f32 1.442695, %v3990_v12  ;;  %v1001_v58 = vadd.f32 %v1000_v0, %v999_v23  ;;  %v1007_v57 = vrot.slane %v1006_v30, 4 }
 0x2da   :  { %v3994_v49 = vpop.eup %3993  ;;  %v905_v25 = vadd.f32 %v904_v50, %v903_v31  ;;  %4003 = vrcp.f32 %v768_v18  ;;  %v815_v17 = vmul.f32 1.442695, %v3992_v51  ;;  %v879_v20 = vadd.f32 %v878_v19, %v877_v16 }
 0x2db   :  { %v4952_v5 = vpop.eup %3995  ;;  %4005 = vpow2.f32 %v825_v52  ;;  %v964_v3 = vmul.f32 %v3994_v49, %v4906_v48  ;;  %v902_v37 = vadd.f32 %v901_v10, %v900_v27  ;;  %v1013_v48 = vsel %vm60_vm1, %v985_v1, 0.0 }
 0x2dc   :  { %v3998_v47 = vpop.eup %3997  ;;  %v906_v14 = vrot.slane %v905_v25, 2  ;;  %4007 = vpow2.f32 %v815_v17  ;;  %v880_v6 = vrot.slane %v879_v20, 1  ;;  %v910_v41 = vsel %vm60_vm1, %v4952_v5, 0.0 }
 0x2dd   :  { %4009 = vrcp.f32 %v895_v33  ;;  %v4000_v7 = vpop.eup %3999  ;;  %v965_v43 = vmul.f32 %v3998_v47, %v4915_v63  ;;  %v986_v52 = vmul.f32 %v4939_v29, %v964_v3  ;;  %v911_v18 = vrot.slane %v910_v41, 4 }
 0x2de   :  { %v907_v45 = vadd.f32 %v906_v14, %v905_v25  ;;  %v881_v42 = vadd.f32 %v880_v6, %v879_v20  ;;  %v829_v56 = vmul.f32 1.442695, %v4000_v7  ;;  %v1002_v63 = vrot.slane %v1001_v58, 2 }
 0x2df   :  { %v987_v50 = vmul.f32 %v4939_v29, %v965_v43  ;;  %v1008_v27 = vadd.f32 %v1007_v57, %v1006_v30  ;;  %v1014_v51 = vrot.slane %v1013_v48, 4  ;;  %v1020_v61 = vsel %vm60_vm1, %v986_v52, 0.0 }
 0x2e0   :  { %v908_v40 = vrot.slane %v907_v45, 1  ;;  %v4002_v16 = vpop.eup %4001  ;;  %4011 = vrcp.f32 %v881_v42  ;;  %v912_v25 = vadd.f32 %v911_v18, %v910_v41  ;;  %v1003_v20 = vadd.f32 %v1002_v63, %v1001_v58  ;;  %v4983_v63 = vpop.permute.xlu0 %979 }
 0x2e1   :  { %4013 = vpow2.f32 %v827_v26  ;;  %v966_v12 = vmul.f32 %v4002_v16, %v4920_v54  ;;  %v1027_v33 = vsel %vm60_vm1, %v987_v50, 0.0  ;;  %v1009_v14 = vrot.slane %v1008_v27, 2 }
 0x2e2   :  { %v909_v31 = vadd.f32 %v908_v40, %v907_v45  ;;  %4015 = vrcp.f32 %v902_v37  ;;  %v1015_v10 = vadd.f32 %v1014_v51, %v1013_v48  ;;  %v1021_v6 = vrot.slane %v1020_v61, 4 }
 0x2e3   :  { %4017 = vpow2.f32 %v829_v56  ;;  %v988_v47 = vmul.f32 %v4939_v29, %v966_v12  ;;  %v1028_v1 = vrot.slane %v1027_v33, 4  ;;  %v1004_v3 = vrot.slane %v1003_v20, 1 }
 0x2e4   :  { %v4004_v23 = vpop.eup %4003  ;;  %4019 = vrcp.f32 %v909_v31  ;;  %v913_v43 = vrot.slane %v912_v25, 2  ;;  %v1010_v41 = vadd.f32 %v1009_v14, %v1008_v27  ;;  %v1016_v57 = vrot.slane %v1015_v10, 2 }
 0x2e5   :  { %v4964_v19 = vpop.eup %4005  ;;  %v831_v0 = vmul.f32 1.442695, %v4004_v23  ;;  %v1034_v37 = vsel %vm60_vm1, %v988_v47, 0.0  ;;  %v1022_v16 = vadd.f32 %v1021_v6, %v1020_v61  ;;  %v1029_v56 = vadd.f32 %v1028_v1, %v1027_v33 }
 0x2e6   :  { %v4966_v13 = vpop.eup %4007  ;;  %v917_v45 = vsel %vm60_vm1, %v4964_v19, 0.0  ;;  %v914_v31 = vadd.f32 %v913_v43, %v912_v25  ;;  %v1035_v23 = vrot.slane %v1034_v37, 4  ;;  %v1011_v61 = vrot.slane %v1010_v41, 1 }
 0x2e7   :  { %v4010_v49 = vpop.eup %4009  ;;  %v882_v17 = vsel %vm60_vm1, %v4966_v13, 0.0  ;;  %4021 = vpow2.f32 %v831_v0  ;;  %v918_v50 = vrot.slane %v917_v45, 4  ;;  %v1017_v25 = vadd.f32 %v1016_v57, %v1015_v10 }
 0x2e8   :  { %v883_v54 = vrot.slane %v882_v17, 4  ;;  %v969_v42 = vmul.f32 %v4010_v49, %v4928_v2  ;;  %v4986_v49 = vadd.f32 %v1004_v3, %v1003_v20  ;;  %v1030_v0 = vrot.slane %v1029_v56, 2 }
 0x2e9   :  { %v919_v6 = vadd.f32 %v918_v50, %v917_v45 }
 0x2ea   :  { %v884_v30 = vadd.f32 %v883_v54, %v882_v17  ;;  %v4012_v7 = vpop.eup %4011  ;;  %v991_v27 = vmul.f32 %v4983_v63, %v969_v42  ;;  %v1023_v17 = vrot.slane %v1022_v16, 2 }
 0x2eb   :  { %v967_v58 = vmul.f32 %v4012_v7, %v4937_v36  ;;  %v4978_v40 = vpop.eup %4013  ;;  %v915_v36 = vrot.slane %v914_v31, 1  ;;  %v1036_v7 = vadd.f32 %v1035_v23, %v1034_v37 }
 0x2ec   :  { %v885_v26 = vrot.slane %v884_v30, 2  ;;  %v4016_v52 = vpop.eup %4015  ;;  %v924_v20 = vsel %vm60_vm1, %v4978_v40, 0.0  ;;  %v1024_v50 = vadd.f32 %v1023_v17, %v1022_v16 }
 0x2ed   :  { %v989_v18 = vmul.f32 %v4939_v29, %v967_v58  ;;  %v4981_v2 = vpop.eup %4017  ;;  %v970_v33 = vmul.f32 %v4016_v52, %v4932_v44  ;;  %v916_v14 = vadd.f32 %v915_v36, %v914_v31  ;;  %v920_v44 = vrot.slane %v919_v6, 2 }
 0x2ee   :  { %v886_v48 = vadd.f32 %v885_v26, %v884_v30  ;;  %v4020_v12 = vpop.eup %4019  ;;  %v931_v42 = vsel %vm60_vm1, %v4981_v2, 0.0  ;;  %v925_v10 = vrot.slane %v924_v20, 4  ;;  %v1012_v52 = vadd.f32 %v1011_v61, %v1010_v41 }
 0x2ef   :  { %v1041_v47 = vsel %vm60_vm1, %v989_v18, 0.0  ;;  %v971_v30 = vmul.f32 %v4020_v12, %v4945_v9  ;;  %v932_v3 = vrot.slane %v931_v42, 4  ;;  %v992_v43 = vmul.f32 %v4983_v63, %v970_v33 }
 0x2f0   :  { %v887_v51 = vrot.slane %v886_v48, 1  ;;  %v1042_v26 = vrot.slane %v1041_v47, 4  ;;  %v921_v58 = vadd.f32 %v920_v44, %v919_v6  ;;  %v926_v9 = vadd.f32 %v925_v10, %v924_v20 }
 0x2f1   :  { %v4990_v1 = vpop.eup %4021  ;;  %v933_v37 = vadd.f32 %v932_v3, %v931_v42  ;;  %v993_v31 = vmul.f32 %v4983_v63, %v971_v30  ;;  %v1031_v33 = vadd.f32 %v1030_v0, %v1029_v56  ;;  %v1062_v21 = vsel %vm60_vm1, %v992_v43, 0.0 }
 0x2f2   :  { %v888_v54 = vadd.f32 %v887_v51, %v886_v48  ;;  %v938_v45 = vsel %vm60_vm1, %v4990_v1, 0.0  ;;  %v1037_v48 = vrot.slane %v1036_v7, 2  ;;  %v922_v18 = vrot.slane %v921_v58, 1 }
 0x2f3   :  { %v939_v57 = vrot.slane %v938_v45, 4  ;;  %v927_v23 = vrot.slane %v926_v9, 2  ;;  %v934_v36 = vrot.slane %v933_v37, 2  ;;  %v1018_v51 = vrot.slane %v1017_v25, 1 }
 0x2f4   :  { %4023 = vrcp.f32 %v888_v54  ;;  %v1043_v54 = vadd.f32 %v1042_v26, %v1041_v47  ;;  %v923_v15 = vadd.f32 %v922_v18, %v921_v58  ;;  %v1025_v42 = vrot.slane %v1024_v50, 1 }
 0x2f5   :  { %4025 = vrcp.f32 %v916_v14  ;;  %v940_v12 = vadd.f32 %v939_v57, %v938_v45  ;;  %v928_v14 = vadd.f32 %v927_v23, %v926_v9  ;;  %v935_v6 = vadd.f32 %v934_v36, %v933_v37 }
 0x2f6   :  { %v1038_v44 = vadd.f32 %v1037_v48, %v1036_v7  ;;  %v1055_v41 = vsel %vm60_vm1, %v991_v27, 0.0  ;;  %v1069_v16 = vsel %vm60_vm1, %v993_v31, 0.0  ;;  %4027 = vrcp.f32 %v923_v15 }
 0x2f7   :  { %v941_v20 = vrot.slane %v940_v12, 2  ;;  %v929_v61 = vrot.slane %v928_v14, 1  ;;  %v936_v17 = vrot.slane %v935_v6, 1  ;;  %v1032_v56 = vrot.slane %v1031_v33, 1 }
 0x2f8   :  { %v1044_v0 = vrot.slane %v1043_v54, 2  ;;  %v1112_v47 = vmul.f32 0.125, %v1012_v52  ;;  %v1063_v10 = vrot.slane %v1062_v21, 4  ;;  %v1056_v7 = vrot.slane %v1055_v41, 4 }
 0x2f9   :  { %v942_v30 = vadd.f32 %v941_v20, %v940_v12  ;;  %v930_v43 = vadd.f32 %v929_v61, %v928_v14  ;;  %v937_v26 = vadd.f32 %v936_v17, %v935_v6  ;;  %v1019_v9 = vadd.f32 %v1018_v51, %v1017_v25 }
 0x2fa   :  { %v1026_v37 = vadd.f32 %v1025_v42, %v1024_v50  ;;  %v1070_v57 = vrot.slane %v1069_v16, 4  ;;  %v1039_v31 = vrot.slane %v1038_v44, 1  ;;  %v1045_v18 = vadd.f32 %v1044_v0, %v1043_v54 }
 0x2fb   :  { %v943_v45 = vrot.slane %v942_v30, 1  ;;  %4029 = vrcp.f32 %v930_v43  ;;  %v1064_v23 = vadd.f32 %v1063_v10, %v1062_v21  ;;  %v1033_v36 = vadd.f32 %v1032_v56, %v1031_v33 }
 0x2fc   :  { %4031 = vrcp.f32 %v937_v26  ;;  %v1057_v14 = vadd.f32 %v1056_v7, %v1055_v41  ;;  %v1111_v25 = vmul.f32 0.125, %v4986_v49  ;;  %v1113_v50 = vmul.f32 0.125, %v1019_v9 }
 0x2fd   :  { %v944_v48 = vadd.f32 %v943_v45, %v942_v30  ;;  %v1071_v51 = vadd.f32 %v1070_v57, %v1069_v16  ;;  %v1040_v6 = vadd.f32 %v1039_v31, %v1038_v44  ;;  %v1114_v42 = vmul.f32 0.125, %v1026_v37 }
 0x2fe   :  { %v4024_v3 = vpop.eup %4023  ;;  %v1065_v54 = vrot.slane %v1064_v23, 2  ;;  %v1115_v17 = vmul.f32 0.125, %v1033_v36  ;;  %v1144_v41 = vsel %vm1143_vm2, %v1112_v47, %v1111_v25  ;;  %v1058_v30 = vrot.slane %v1057_v14, 2 }
 0x2ff   :  { %v4026_v58 = vpop.eup %4025  ;;  %v968_v27 = vmul.f32 %v4024_v3, %v4966_v13  ;;  %4033 = vrcp.f32 %v944_v48  ;;  %v1146_v56 = vsel %vm1145_vm3, %v1113_v50, %v1144_v41  ;;  %v1072_v16 = vrot.slane %v1071_v51, 2 }
 0x300   :  { %v972_v15 = vmul.f32 %v4026_v58, %v4952_v5  ;;  %v4028_v33 = vpop.eup %4027  ;;  %v1116_v10 = vmul.f32 0.125, %v1040_v6  ;;  %v1148_v3 = vsel %vm1147_vm4, %v1114_v42, %v1146_v56  ;;  %v1066_v45 = vadd.f32 %v1065_v54, %v1064_v23 }
 0x301   :  { %v990_v52 = vmul.f32 %v4939_v29, %v968_v27  ;;  %v1046_v29 = vrot.slane %v1045_v18, 1  ;;  %v973_v49 = vmul.f32 %v4028_v33, %v4964_v19  ;;  %v1150_v47 = vsel %vm1149_vm5, %v1115_v17, %v1148_v3 }
 0x302   :  { %v994_v12 = vmul.f32 %v4983_v63, %v972_v15  ;;  %v1059_v9 = vadd.f32 %v1058_v30, %v1057_v14  ;;  %v1073_v57 = vadd.f32 %v1072_v16, %v1071_v51  ;;  %v1067_v14 = vrot.slane %v1066_v45, 1 }
 0x303   :  { %v1048_v13 = vsel %vm60_vm1, %v990_v52, 0.0  ;;  %v1047_v43 = vadd.f32 %v1046_v29, %v1045_v18  ;;  %v995_v26 = vmul.f32 %v4983_v63, %v973_v49  ;;  %v1152_v18 = vsel %vm1151_vm6, %v1116_v10, %v1150_v47 }
 0x304   :  { %v1049_v20 = vrot.slane %v1048_v13, 4  ;;  %v1076_v5 = vsel %vm60_vm1, %v994_v12, 0.0  ;;  %v1060_v51 = vrot.slane %v1059_v9, 1  ;;  %v1074_v42 = vrot.slane %v1073_v57, 1 }
 0x305   :  { %v1077_v21 = vrot.slane %v1076_v5, 4  ;;  %v4030_v58 = vpop.eup %4029  ;;  %v1083_v48 = vsel %vm60_vm1, %v995_v26, 0.0  ;;  %v1117_v12 = vmul.f32 0.125, %v1047_v43 }
 0x306   :  { %v1050_v61 = vadd.f32 %v1049_v20, %v1048_v13  ;;  %v4032_v37 = vpop.eup %4031  ;;  %v974_v19 = vmul.f32 %v4030_v58, %v4978_v40  ;;  %v1084_v36 = vrot.slane %v1083_v48, 4  ;;  %v1061_v16 = vadd.f32 %v1060_v51, %v1059_v9 }
 0x307   :  { %v1078_v44 = vadd.f32 %v1077_v21, %v1076_v5  ;;  %v975_v23 = vmul.f32 %v4032_v37, %v4981_v2 }
 0x308   :  { %v1051_v0 = vrot.slane %v1050_v61, 2  ;;  %v996_v25 = vmul.f32 %v4983_v63, %v974_v19  ;;  %v1085_v6 = vadd.f32 %v1084_v36, %v1083_v48 }
 0x309   :  { %v1079_v7 = vrot.slane %v1078_v44, 2  ;;  %v4034_v15 = vpop.eup %4033  ;;  %v997_v40 = vmul.f32 %v4983_v63, %v975_v23 }
 0x30a   :  { %v1052_v27 = vadd.f32 %v1051_v0, %v1050_v61  ;;  %v976_v13 = vmul.f32 %v4034_v15, %v4990_v1  ;;  %v1090_v29 = vsel %vm60_vm1, %v996_v25, 0.0  ;;  %v1086_v2 = vrot.slane %v1085_v6, 2 }
 0x30b   :  { %v1080_v31 = vadd.f32 %v1079_v7, %v1078_v44  ;;  %v1091_v21 = vrot.slane %v1090_v29, 4  ;;  %v1097_v33 = vsel %vm60_vm1, %v997_v40, 0.0  ;;  %v1154_v1 = vsel %vm1153_vm7, %v1117_v12, %v1152_v18 }
 0x30c   :  { %v1053_v52 = vrot.slane %v1052_v27, 1  ;;  %v998_v20 = vmul.f32 %v4983_v63, %v976_v13  ;;  %v1068_v61 = vadd.f32 %v1067_v14, %v1066_v45  ;;  %v1098_v17 = vrot.slane %v1097_v33, 4 }
 0x30d   :  { %v1081_v5 = vrot.slane %v1080_v31, 1  ;;  %v1087_v56 = vadd.f32 %v1086_v2, %v1085_v6  ;;  %v1092_v49 = vadd.f32 %v1091_v21, %v1090_v29  ;;  %v1075_v44 = vadd.f32 %v1074_v42, %v1073_v57 }
 0x30e   :  { %v1054_v50 = vadd.f32 %v1053_v52, %v1052_v27  ;;  %v1104_v41 = vsel %vm60_vm1, %v998_v20, 0.0  ;;  %v1099_v0 = vadd.f32 %v1098_v17, %v1097_v33  ;;  %v1120_v47 = vmul.f32 0.125, %v1068_v61 }
 0x30f   :  { %v1105_v63 = vrot.slane %v1104_v41, 4  ;;  %v1082_v10 = vadd.f32 %v1081_v5, %v1080_v31  ;;  %v1088_v3 = vrot.slane %v1087_v56, 1  ;;  %v1093_v43 = vrot.slane %v1092_v49, 2 }
 0x310   :  { %v1118_v54 = vmul.f32 0.125, %v1054_v50  ;;  %v1100_v7 = vrot.slane %v1099_v0, 2  ;;  %v1121_v19 = vmul.f32 0.125, %v1075_v44  ;;  %v1119_v52 = vmul.f32 0.125, %v1061_v16 }
 0x311   :  { %v1106_v26 = vadd.f32 %v1105_v63, %v1104_v41  ;;  %v1089_v45 = vadd.f32 %v1088_v3, %v1087_v56  ;;  %v1094_v58 = vadd.f32 %v1093_v43, %v1092_v49  ;;  %v1122_v18 = vmul.f32 0.125, %v1082_v10 }
 0x312   :  { %v1156_v30 = vsel %vm1155_vm8, %v1118_v54, %v1154_v1  ;;  %v1101_v37 = vadd.f32 %v1100_v7, %v1099_v0  ;;  %v1157_v31 = vsel %vm1143_vm2, %v1120_v47, %v1119_v52  ;;  %v3869_v52 = vld [vmem:[%s6145_s3 + $0x10] sm:$0xff]  }
 0x313   :  { %1164 = vrot.lane.b32.xlu1 %v1156_v30, %s4398_s13  ;;  %v1107_v27 = vrot.slane %v1106_v26, 2  ;;  %v1095_v48 = vrot.slane %v1094_v58, 1  ;;  %v1123_v36 = vmul.f32 0.125, %v1089_v45  ;;  %v1158_v13 = vsel %vm1145_vm3, %v1121_v19, %v1157_v31  ;;  %v3867_v45 = vld [vmem:[%s6144_s2 + $0x10] sm:$0xff]  }
 0x314   :  { %v1102_v23 = vrot.slane %v1101_v37, 1  ;;  %v1159_v50 = vsel %vm1147_vm4, %v1122_v18, %v1158_v13  ;;  %3795 = vmatpush3.bf16.msra.mxu0 %v3867_v45 }
 0x315   :  { %v1108_v15 = vadd.f32 %v1107_v27, %v1106_v26  ;;  %v1096_v9 = vadd.f32 %v1095_v48, %v1094_v58  ;;  %v1160_v51 = vsel %vm1149_vm5, %v1123_v36, %v1159_v50  ;;  %v6179_v58 = vmov 0.0  }
 0x316   :  { %v1103_v12 = vadd.f32 %v1102_v23, %v1101_v37  ;;  %3796 = vmatprep.subr.bf16.mxu0 %v6179_v58 }
 0x317   :  { %v1109_v57 = vrot.slane %v1108_v15, 1  ;;  %v1124_v14 = vmul.f32 0.125, %v1096_v9  ;;  %v4367_v9 = vld [vmem:[%s6142_s0] sm:$0xff] }
 0x318   :  { %v1125_v40 = vmul.f32 0.125, %v1103_v12  ;;  %v4368_v12 = vld [vmem:[%s6142_s0 + $0x8] sm:$0xff] }
 0x319   :  { %v1110_v25 = vadd.f32 %v1109_v57, %v1108_v15  ;;  %v1161_v20 = vsel %vm1151_vm6, %v1124_v14, %v1160_v51  ;;  %v3868_v15 = vld [vmem:[%s6144_s2 + $0x18] sm:$0xff]   ;;  %v1293_v51 = vpack.c.bf16 %v4831_v35, %v4826_v4 }
 0x31a   :  { %v1162_v42 = vsel %vm1153_vm7, %v1125_v40, %v1161_v20  ;;  %3797 = vmatpush3.bf16.msra.mxu0 %v3868_v15  ;;  %v3870_v40 = vld [vmem:[%s6145_s3 + $0x18] sm:$0xff]   ;;  %v1295_v20 = vpack.c.bf16 %v4851_v38, %v4846_v62 }
 0x31b   :  { %v1126_v6 = vmul.f32 0.125, %v1110_v25  ;;  %3802 = vmatprep.subr.bf16.mxu0 %v3869_v52 }
 0x31d   :  { %v1163_v5 = vsel %vm1155_vm8, %v1126_v6, %v1162_v42  ;;  %v1294_v6 = vpack.c.bf16 %v4841_v59, %v4836_v55  ;;  %v1296_v42 = vpack.c.bf16 %v4903_v28, %v4865_v24 }
 0x31e   :  { %1166 = vrot.lane.b32.xlu1 %v1163_v5, %s4398_s13  ;;  %v1297_v5 = vpack.c.bf16 %v4862_v8, %v4856_v39 }
 0x385   :  { %v1165_v29 = vpop.permute.xlu1 %1164 }
 0x386   :  { %v1170_v54 = vadd.f32 %v1165_v29, %v4565_v32  ;;  %v1298_v29 = vpack.c.bf16 %v4876_v22, %v4871_v11 }
 0x388   :  { %1174 = vrot.lane.b32.xlu0 %v1170_v54, %s4398_s13 }
 0x390   :  { %v1167_v2 = vpop.permute.xlu1 %1166 }
 0x391   :  { %v1171_v21 = vadd.f32 %v1167_v2, %v4569_v34  ;;  %v6182_v2 = vld [vmem:[#allocation6_spill] sm:$0xff] }
 0x393   :  { %1176 = vrot.lane.b32.xlu1 %v1171_v21, %s4398_s13 }
 0x3fa   :  { %v1175_v33 = vpop.permute.xlu0 %1174 }
 0x3fb   :  { %v1180_v1 = vsel %vm60_vm1, %v1175_v33, 0.0 }
 0x3fc   :  { %1181 = vadd.xlane.f32.xlu0 %v1180_v1 }
 0x405   :  { %v1177_v61 = vpop.permute.xlu1 %1176 }
 0x406   :  { %v1183_v17 = vsel %vm60_vm1, %v1177_v61, 0.0 }
 0x407   :  { %1184 = vadd.xlane.f32.xlu1 %v1183_v17 }
 0x489   :  { %v1182_v41 = vpop.xlane.xlu0 %1181 }
 0x48a   :  { %v1186_v30 = vmul.f32 0.03125, %v1182_v41 }
 0x48c   :  { %v1188_v56 = vsub.f32 %v1170_v54, %v1186_v30  ;;  %v1299_v54 = vpack.c.bf16 %v4894_v53, %v4885_v46 }
 0x48e   :  { %v1190_v49 = vmul.f32 %v1188_v56, %v1188_v56 }
 0x490   :  { %1194 = vrot.lane.b32.xlu0 %v1190_v49, %s4398_s13 }
 0x494   :  { %v1185_v32 = vpop.xlane.xlu1 %1184 }
 0x495   :  { %v1187_v63 = vmul.f32 0.03125, %v1185_v32 }
 0x497   :  { %v1189_v16 = vsub.f32 %v1171_v21, %v1187_v63  ;;  %v1300_v21 = vpack.c.bf16 %v6182_v2, %v4912_v60 }
 0x499   :  { %v1191_v34 = vmul.f32 %v1189_v16, %v1189_v16 }
 0x49b   :  { %1196 = vrot.lane.b32.xlu1 %v1191_v34, %s4398_s13 }
 0x502   :  { %v1195_v44 = vpop.permute.xlu0 %1194 }
 0x503   :  { %v1200_v0 = vsel %vm60_vm1, %v1195_v44, 0.0 }
 0x504   :  { %1201 = vadd.xlane.f32.xlu0 %v1200_v0 }
 0x50d   :  { %v1197_v10 = vpop.permute.xlu1 %1196 }
 0x50e   :  { %v1203_v3 = vsel %vm60_vm1, %v1197_v10, 0.0 }
 0x50f   :  { %1204 = vadd.xlane.f32.xlu1 %v1203_v3 }
 0x591   :  { %v1202_v43 = vpop.xlane.xlu0 %1201 }
 0x592   :  { %v1206_v26 = vmul.f32 0.03125, %v1202_v43 }
 0x594   :  { %v1208_v7 = vadd.f32 1e-05, %v1206_v26 }
 0x596   :  { %4035 = vrsqrt.f32 %v1208_v7 }
 0x59c   :  { %v1205_v27 = vpop.xlane.xlu1 %1204 }
 0x59d   :  { %v1207_v37 = vmul.f32 0.03125, %v1205_v27 }
 0x59f   :  { %v1209_v48 = vadd.f32 1e-05, %v1207_v37 }
 0x5a0   :  { %v4036_v47 = vpop.eup %4035 }
 0x5a1   :  { %v1212_v19 = vmul.f32 %v4036_v47, %v1188_v56  ;;  %4037 = vrsqrt.f32 %v1209_v48  ;;  %v6183_v47 = vld [vmem:[#allocation7_spill] sm:$0xff] }
 0x5a3   :  { %1216 = vrot.lane.b32.xlu0 %v1212_v19, %s4398_s13 }
 0x5ab   :  { %v4038_v18 = vpop.eup %4037 }
 0x5ac   :  { %v1213_v23 = vmul.f32 %v4038_v18, %v1189_v16 }
 0x5ae   :  { %1218 = vrot.lane.b32.xlu1 %v1213_v23, %s4398_s13 }
 0x615   :  { %v1217_v36 = vpop.permute.xlu0 %1216 }
 0x616   :  { %v5064_v57 = vadd.f32 %v4367_v9, %v1217_v36 }
 0x618   :  { %6180 = vst [vmem:[#allocation9_spill] sm:$0xff] %v5064_v57  ;;  %v6159_v25 = vmax.f32 %v5064_v57, 0.0 }
 0x620   :  { %v1219_v31 = vpop.permute.xlu1 %1218 }
 0x621   :  { %v5069_v13 = vadd.f32 %v4368_v12, %v1219_v31 }
 0x623   :  { %6181 = vst [vmem:[#allocation10_spill] sm:$0xff] %v5069_v13  ;;  %v6158_v14 = vmax.f32 %v5069_v13, 0.0 }
 0x625   :  { %v1236_v50 = vpack.c.bf16 %v6158_v14, %v6159_v25 }
 0x627   :  { %3799 = vmatmul.mubr.msk.bf16.vlgmr.msra.gmra.mrb[8].mxu0 %vm60_vm1, %v1236_v50 }
 0x628   :  { %3803 = vmatpush3.bf16.msra.mxu0 %v3869_v52  ;;  %3806 = vmatprep.mubr.msk.bf16.mxu0 %vm60_vm1, %v1293_v51 }
 0x629   :  { %3804 = vmatprep.subr.bf16.mxu0 %v3870_v40 }
 0x62c   :  { %3805 = vmatpush3.bf16.msra.mxu0 %v3870_v40 }
 0x62f   :  { %3807 = vmatmul.mubr.msk.bf16.vlgmr.msra.gmra.mrb[12].mxu0 %vm60_vm1, %v1294_v6 }
 0x630   :  { %3810 = vmatprep.mubr.msk.bf16.mxu0 %vm60_vm1, %v1295_v20 }
 0x637   :  { %3811 = vmatmul.mubr.msk.bf16.gmra.mrb[16].mxu0 %vm60_vm1, %v1296_v42 }
 0x638   :  { %3814 = vmatprep.mubr.msk.bf16.mxu0 %vm60_vm1, %v1297_v5 }
 0x63f   :  { %3815 = vmatmul.mubr.msk.bf16.gmra.mrb[20].mxu0 %vm60_vm1, %v1298_v29 }
 0x640   :  { %3818 = vmatprep.mubr.msk.bf16.mxu0 %vm60_vm1, %v1299_v54 }
 0x647   :  { %3819 = vmatmul.mubr.msk.bf16.gmra.mrb[24].mxu0 %vm60_vm1, %v1300_v21 }
 0x6fa   :  { %v5105_v33 = vpop.f32.mrb[8].mxu0 }
 0x6fb   :  { %1614 = vrot.lane.b32.xlu0 %v5105_v33, %s4395_s12  ;;  %v3800_v1 = vpop.f32.mrb[9].mxu0  ;;  %v1436_v27 = vcombine.high %v5105_v33, %v5105_v33  ;;  %v1443_v37 = vrot.slane %v5105_v33, %v6183_v47 }
 0x6fc   :  { %v5109_v61 = vpop.f32.mrb[10].mxu0 }
 0x6fd   :  { %1616 = vrot.lane.b32.xlu1 %v5109_v61, %s4395_s12  ;;  %v3801_v17 = vpop.f32.mrb[11].mxu0  ;;  %v1485_v19 = vcombine.high %v5109_v61, %v5109_v61  ;;  %v1450_v48 = vrot.slane %v1436_v27, %v6183_v47  ;;  %v1451_v15 = vcombine.high %v1443_v37, %v1443_v37  ;;  %v1492_v52 = vrot.slane %v5109_v61, %v6183_v47 }
 0x6fe   :  { %v1459_v36 = vrot.slane %v1443_v37, %v6183_v47  ;;  %v6184_v17 = vld [vmem:[#allocation8_spill] sm:$0xff] }
 0x6ff   :  { %v1452_v18 = vcombine.high %v1450_v48, %v1450_v48  ;;  %v1499_v23 = vrot.slane %v1485_v19, %v6183_v47  ;;  %v1473_v9 = vrot.slane %v1451_v15, %v6183_v47  ;;  %v1508_v31 = vrot.slane %v1492_v52, %v6183_v47 }
 0x700   :  { %v1500_v12 = vcombine.high %v1492_v52, %v1492_v52  ;;  %v1466_v50 = vrot.slane %v1450_v48, %v6183_v47  ;;  %v1481_v6 = vcombine.high %v1459_v36, %v1459_v36  ;;  %v1537_v27 = vrot.slane %v1459_v36, %v6184_v17 }
 0x701   :  { %v1480_v40 = vrot.slane %v1452_v18, %v6183_v47  ;;  %v1501_v51 = vcombine.high %v1499_v23, %v1499_v23  ;;  %v1483_v20 = vcombine.high %v1473_v9, %v1473_v9  ;;  %v1530_v5 = vcombine.high %v1508_v31, %v1508_v31 }
 0x702   :  { %v5113_v41 = vpop.f32.mrb[12].mxu0  ;;  %v1522_v42 = vrot.slane %v1500_v12, %v6183_v47  ;;  %v1482_v29 = vcombine.high %v1466_v50, %v1466_v50  ;;  %v1515_v54 = vrot.slane %v1499_v23, %v6183_v47  ;;  %v1541_v37 = vrot.slane %v1473_v9, %v6184_v17 }
 0x703   :  { %v1371_v30 = vpop.f32.mrb[13].mxu0  ;;  %v1484_v21 = vcombine.high %v1480_v40, %v1480_v40  ;;  %v1529_v1 = vrot.slane %v1501_v51, %v6183_v47  ;;  %v1545_v19 = vrot.slane %v1481_v6, %v6184_v17  ;;  %v1569_v48 = vrot.slane %v1508_v31, %v6184_v17 }
 0x704   :  { %v5115_v56 = vpop.f32.mrb[14].mxu0  ;;  %v1549_v15 = vrot.slane %v1483_v20, %v6184_v17  ;;  %v1553_v52 = vrot.slane %v1466_v50, %v6184_v17  ;;  %v1573_v18 = vrot.slane %v1522_v42, %v6184_v17  ;;  %v1577_v12 = vrot.slane %v1530_v5, %v6184_v17 }
 0x705   :  { %v1374_v49 = vpop.f32.mrb[15].mxu0  ;;  %v1557_v23 = vrot.slane %v1480_v40, %v6184_v17  ;;  %v1532_v14 = vcombine.high %v1522_v42, %v1522_v42  ;;  %v1561_v36 = vrot.slane %v1482_v29, %v6184_v17  ;;  %v1565_v9 = vrot.slane %v1484_v21, %v6184_v17 }
 0x706   :  { %v1531_v25 = vcombine.high %v1515_v54, %v1515_v54  ;;  %v1533_v6 = vcombine.high %v1529_v1, %v1529_v1 }
 0x70a   :  { %v5117_v32 = vpop.f32.mrb[16].mxu0 }
 0x70b   :  { %v5119_v63 = vpop.f32.mrb[17].mxu0 }
 0x70c   :  { %v5121_v16 = vpop.f32.mrb[18].mxu0 }
 0x70d   :  { %v5123_v34 = vpop.f32.mrb[19].mxu0 }
 0x712   :  { %v5125_v44 = vpop.f32.mrb[20].mxu0 }
 0x713   :  { %v5127_v0 = vpop.f32.mrb[21].mxu0 }
 0x714   :  { %v5129_v10 = vpop.f32.mrb[22].mxu0 }
 0x715   :  { %v5131_v3 = vpop.f32.mrb[23].mxu0 }
 0x71a   :  { %v5133_v43 = vpop.f32.mrb[24].mxu0 }
 0x71b   :  { %v5135_v26 = vpop.f32.mrb[25].mxu0 }
 0x71c   :  { %v5137_v7 = vpop.f32.mrb[26].mxu0 }
 0x71d   :  { %v5139_v45 = vpop.f32.mrb[27].mxu0 }
 0x76d   :  { %v1615_v51 = vpop.permute.xlu0 %1614 }
 0x76e   :  { %v1620_v47 = vadd.f32 %v1615_v51, %v1537_v27  ;;  %v1621_v31 = vadd.f32 %v1615_v51, %v1541_v37  ;;  %v1622_v13 = vadd.f32 %v1615_v51, %v1545_v19  ;;  %v1623_v20 = vadd.f32 %v1615_v51, %v1549_v15 }
 0x76f   :  { %v1617_v57 = vpop.permute.xlu1 %1616  ;;  %v1624_v50 = vadd.f32 %v1615_v51, %v1553_v52  ;;  %v1625_v58 = vadd.f32 %v1615_v51, %v1557_v23  ;;  %v1626_v2 = vadd.f32 %v1615_v51, %v1561_v36  ;;  %v1627_v60 = vadd.f32 %v1615_v51, %v1565_v9 }
 0x770   :  { %v5170_v5 = vadd.f32 %v1620_v47, %v1371_v30  ;;  %v5172_v40 = vadd.f32 %v1621_v31, %v1374_v49  ;;  %v5175_v42 = vadd.f32 %v5113_v41, %v1622_v13  ;;  %v1628_v29 = vadd.f32 %v1617_v57, %v1569_v48 }
 0x771   :  { %v5178_v21 = vadd.f32 %v5115_v56, %v1623_v20  ;;  %v1629_v27 = vadd.f32 %v1617_v57, %v1573_v18  ;;  %v5181_v37 = vadd.f32 %v1624_v50, %v5119_v63  ;;  %v1630_v19 = vadd.f32 %v1617_v57, %v1577_v12 }
 0x772   :  { %v1652_v15 = vsel %vm60_vm1, %v5170_v5, 0.0  ;;  %v1655_v30 = vsel %vm60_vm1, %v5172_v40, 0.0  ;;  %v5188_v49 = vadd.f32 %v1628_v29, %v5127_v0  ;;  %v1581_v13 = vrot.slane %v1532_v14, %v6184_v17 }
 0x773   :  { %1653 = vadd.xlane.f32.xlu0 %v1652_v15  ;;  %1656 = vadd.xlane.f32.xlu1 %v1655_v30  ;;  %v5192_v41 = vadd.f32 %v1629_v27, %v5131_v3  ;;  %v5195_v56 = vadd.f32 %v5125_v44, %v1630_v19  ;;  %v1585_v63 = vrot.slane %v1515_v54, %v6184_v17  ;;  %v1658_v54 = vsel %vm60_vm1, %v5175_v42, 0.0 }
 0x774   :  { %v5199_v47 = vadd.f32 %v1625_v58, %v5123_v34  ;;  %v1631_v48 = vadd.f32 %v1617_v57, %v1581_v13  ;;  %v5202_v52 = vadd.f32 %v5117_v32, %v1626_v2  ;;  %v1589_v0 = vrot.slane %v1529_v1, %v6184_v17 }
 0x775   :  { %v1632_v14 = vadd.f32 %v1617_v57, %v1585_v63  ;;  %v5206_v18 = vadd.f32 %v5121_v16, %v1627_v60  ;;  %v1593_v3 = vrot.slane %v1531_v25, %v6184_v17  ;;  %v1597_v44 = vrot.slane %v1533_v6, %v6184_v17 }
 0x776   :  { %v1676_v58 = vsel %vm60_vm1, %v5188_v49, 0.0  ;;  %v5215_v34 = vadd.f32 %v5129_v10, %v1631_v48  ;;  %v1633_v2 = vadd.f32 %v1617_v57, %v1589_v0  ;;  %v1661_v10 = vsel %vm60_vm1, %v5178_v21, 0.0 }
 0x777   :  { %1659 = vadd.xlane.f32.xlu1 %v1658_v54  ;;  %1677 = vadd.xlane.f32.xlu0 %v1676_v58  ;;  %v5218_v32 = vadd.f32 %v1632_v14, %v5135_v26  ;;  %v1634_v60 = vadd.f32 %v1617_v57, %v1593_v3  ;;  %v1635_v16 = vadd.f32 %v1617_v57, %v1597_v44  ;;  %v1679_v23 = vsel %vm60_vm1, %v5192_v41, 0.0 }
 0x778   :  { %v5221_v25 = vadd.f32 %v1633_v2, %v5139_v45  ;;  %v1664_v57 = vsel %vm60_vm1, %v5181_v37, 0.0  ;;  %v1682_v26 = vsel %vm60_vm1, %v5195_v56, 0.0  ;;  %v1670_v45 = vsel %vm60_vm1, %v5202_v52, 0.0 }
 0x779   :  { %v5224_v1 = vadd.f32 %v5133_v43, %v1634_v60  ;;  %v5227_v12 = vadd.f32 %v5137_v7, %v1635_v16  ;;  %v1667_v43 = vsel %vm60_vm1, %v5199_v47, 0.0  ;;  %v1685_v7 = vsel %vm60_vm1, %v5215_v34, 0.0 }
 0x77a   :  { %v1688_v51 = vsel %vm60_vm1, %v5218_v32, 0.0  ;;  %v1673_v36 = vsel %vm60_vm1, %v5206_v18, 0.0  ;;  %v1691_v9 = vsel %vm60_vm1, %v5221_v25, 0.0 }
 0x77b   :  { %1662 = vadd.xlane.f32.xlu1 %v1661_v10  ;;  %1680 = vadd.xlane.f32.xlu0 %v1679_v23  ;;  %v1694_v6 = vsel %vm60_vm1, %v5224_v1, 0.0  ;;  %v1697_v31 = vsel %vm60_vm1, %v5227_v12, 0.0 }
 0x77f   :  { %1665 = vadd.xlane.f32.xlu1 %v1664_v57  ;;  %1683 = vadd.xlane.f32.xlu0 %v1682_v26 }
 0x783   :  { %1668 = vadd.xlane.f32.xlu1 %v1667_v43  ;;  %1686 = vadd.xlane.f32.xlu0 %v1685_v7 }
 0x787   :  { %1671 = vadd.xlane.f32.xlu1 %v1670_v45  ;;  %1689 = vadd.xlane.f32.xlu0 %v1688_v51 }
 0x78b   :  { %1674 = vadd.xlane.f32.xlu1 %v1673_v36  ;;  %1692 = vadd.xlane.f32.xlu0 %v1691_v9 }
 0x78f   :  { %1695 = vadd.xlane.f32.xlu0 %v1694_v6 }
 0x793   :  { %1698 = vadd.xlane.f32.xlu0 %v1697_v31 }
 0x800   :  { %v1654_v20 = vpop.xlane.xlu0 %1653  ;;  %v1657_v50 = vpop.xlane.xlu1 %1656 }
 0x801   :  { %v1700_v29 = vmul.f32 0.03125, %v1654_v20  ;;  %v1701_v27 = vmul.f32 0.03125, %v1657_v50 }
 0x803   :  { %v5254_v19 = vsub.f32 %v5170_v5, %v1700_v29  ;;  %v5257_v15 = vsub.f32 %v5172_v40, %v1701_v27 }
 0x804   :  { %v1660_v30 = vpop.xlane.xlu1 %1659  ;;  %v1678_v13 = vpop.xlane.xlu0 %1677 }
 0x805   :  { %v1702_v63 = vmul.f32 0.03125, %v1660_v30  ;;  %v1732_v48 = vmul.f32 %v5254_v19, %v5254_v19  ;;  %v1733_v0 = vmul.f32 %v5257_v15, %v5257_v15  ;;  %v1708_v45 = vmul.f32 0.03125, %v1678_v13 }
 0x807   :  { %v5264_v14 = vsub.f32 %v5175_v42, %v1702_v63  ;;  %v1748_v3 = vsel %vm60_vm1, %v1732_v48, 0.0  ;;  %v1751_v5 = vsel %vm60_vm1, %v1733_v0, 0.0  ;;  %v5294_v29 = vsub.f32 %v5188_v49, %v1708_v45 }
 0x808   :  { %v1663_v44 = vpop.xlane.xlu1 %1662  ;;  %1749 = vadd.xlane.f32.xlu1 %v1748_v3  ;;  %v1681_v40 = vpop.xlane.xlu0 %1680  ;;  %1752 = vadd.xlane.f32.xlu0 %v1751_v5 }
 0x809   :  { %v1703_v54 = vmul.f32 0.03125, %v1663_v44  ;;  %v1709_v58 = vmul.f32 0.03125, %v1681_v40  ;;  %v1734_v2 = vmul.f32 %v5264_v14, %v5264_v14 }
 0x80b   :  { %v5271_v60 = vsub.f32 %v5178_v21, %v1703_v54  ;;  %v5274_v16 = vsub.f32 %v5192_v41, %v1709_v58  ;;  %v1754_v42 = vsel %vm60_vm1, %v1734_v2, 0.0 }
 0x80c   :  { %v1666_v10 = vpop.xlane.xlu1 %1665  ;;  %1755 = vadd.xlane.f32.xlu1 %v1754_v42  ;;  %v1684_v23 = vpop.xlane.xlu0 %1683 }
 0x80d   :  { %v1704_v57 = vmul.f32 0.03125, %v1666_v10  ;;  %v1710_v26 = vmul.f32 0.03125, %v1684_v23  ;;  %v1735_v43 = vmul.f32 %v5271_v60, %v5271_v60  ;;  %v1741_v7 = vmul.f32 %v5274_v16, %v5274_v16 }
 0x80f   :  { %v5282_v21 = vsub.f32 %v5181_v37, %v1704_v57  ;;  %v5285_v41 = vsub.f32 %v5195_v56, %v1710_v26  ;;  %v1757_v51 = vsel %vm60_vm1, %v1735_v43, 0.0  ;;  %v1775_v36 = vsel %vm60_vm1, %v1741_v7, 0.0 }
 0x810   :  { %1758 = vadd.xlane.f32.xlu1 %v1757_v51  ;;  %v1669_v9 = vpop.xlane.xlu1 %1668  ;;  %v1687_v6 = vpop.xlane.xlu0 %1686  ;;  %1776 = vadd.xlane.f32.xlu0 %v1775_v36 }
 0x811   :  { %v1705_v31 = vmul.f32 0.03125, %v1669_v9  ;;  %v1711_v20 = vmul.f32 0.03125, %v1687_v6  ;;  %v1736_v50 = vmul.f32 %v5282_v21, %v5282_v21  ;;  %v1742_v37 = vmul.f32 %v5285_v41, %v5285_v41 }
 0x813   :  { %v5297_v56 = vsub.f32 %v5199_v47, %v1705_v31  ;;  %v5300_v27 = vsub.f32 %v5215_v34, %v1711_v20  ;;  %v1760_v30 = vsel %vm60_vm1, %v1736_v50, 0.0  ;;  %v1778_v13 = vsel %vm60_vm1, %v1742_v37, 0.0 }
 0x814   :  { %1761 = vadd.xlane.f32.xlu1 %v1760_v30  ;;  %v1672_v63 = vpop.xlane.xlu1 %1671  ;;  %v1690_v48 = vpop.xlane.xlu0 %1689  ;;  %1779 = vadd.xlane.f32.xlu0 %v1778_v13  ;;  %v1740_v34 = vmul.f32 %v5294_v29, %v5294_v29 }
 0x815   :  { %v1706_v0 = vmul.f32 0.03125, %v1672_v63  ;;  %v1712_v3 = vmul.f32 0.03125, %v1690_v48  ;;  %v1737_v49 = vmul.f32 %v5297_v56, %v5297_v56  ;;  %v1743_v47 = vmul.f32 %v5300_v27, %v5300_v27 }
 0x816   :  { %v1772_v57 = vsel %vm60_vm1, %v1740_v34, 0.0 }
 0x817   :  { %v5311_v5 = vsub.f32 %v5202_v52, %v1706_v0  ;;  %v5314_v44 = vsub.f32 %v5218_v32, %v1712_v3  ;;  %v1763_v40 = vsel %vm60_vm1, %v1737_v49, 0.0  ;;  %v1781_v54 = vsel %vm60_vm1, %v1743_v47, 0.0 }
 0x818   :  { %1764 = vadd.xlane.f32.xlu1 %v1763_v40  ;;  %v1675_v58 = vpop.xlane.xlu1 %1674  ;;  %1782 = vadd.xlane.f32.xlu0 %v1781_v54  ;;  %v1693_v2 = vpop.xlane.xlu0 %1692 }
 0x819   :  { %v1707_v42 = vmul.f32 0.03125, %v1675_v58  ;;  %v1713_v10 = vmul.f32 0.03125, %v1693_v2  ;;  %v1744_v23 = vmul.f32 %v5314_v44, %v5314_v44  ;;  %v1738_v43 = vmul.f32 %v5311_v5, %v5311_v5 }
 0x81b   :  { %v5322_v52 = vsub.f32 %v5206_v18, %v1707_v42  ;;  %v5325_v32 = vsub.f32 %v5221_v25, %v1713_v10  ;;  %v1784_v26 = vsel %vm60_vm1, %v1744_v23, 0.0  ;;  %v1766_v18 = vsel %vm60_vm1, %v1738_v43, 0.0 }
 0x81c   :  { %1773 = vadd.xlane.f32.xlu1 %v1772_v57  ;;  %1785 = vadd.xlane.f32.xlu0 %v1784_v26  ;;  %v1696_v7 = vpop.xlane.xlu0 %1695 }
 0x81d   :  { %v1714_v45 = vmul.f32 0.03125, %v1696_v7  ;;  %v1745_v51 = vmul.f32 %v5325_v32, %v5325_v32  ;;  %v1739_v9 = vmul.f32 %v5322_v52, %v5322_v52 }
 0x81f   :  { %v5333_v36 = vsub.f32 %v5224_v1, %v1714_v45  ;;  %v1787_v25 = vsel %vm60_vm1, %v1745_v51, 0.0  ;;  %v1769_v1 = vsel %vm60_vm1, %v1739_v9, 0.0 }
 0x820   :  { %1767 = vadd.xlane.f32.xlu1 %v1766_v18  ;;  %1788 = vadd.xlane.f32.xlu0 %v1787_v25  ;;  %v1699_v6 = vpop.xlane.xlu0 %1698 }
 0x821   :  { %v1715_v31 = vmul.f32 0.03125, %v1699_v6  ;;  %v1746_v20 = vmul.f32 %v5333_v36, %v5333_v36 }
 0x823   :  { %v5342_v50 = vsub.f32 %v5227_v12, %v1715_v31  ;;  %v1790_v37 = vsel %vm60_vm1, %v1746_v20, 0.0 }
 0x824   :  { %1770 = vadd.xlane.f32.xlu1 %v1769_v1  ;;  %1791 = vadd.xlane.f32.xlu0 %v1790_v37 }
 0x825   :  { %v1747_v30 = vmul.f32 %v5342_v50, %v5342_v50 }
 0x827   :  { %v1793_v13 = vsel %vm60_vm1, %v1747_v30, 0.0 }
 0x828   :  { %1794 = vadd.xlane.f32.xlu0 %v1793_v13 }
 0x835   :  { %2164 = vrot.lane.b32.xlu1 %v5105_v33, %s4397_s1 }
 0x83e   :  { %2166 = vrot.lane.b32.xlu0 %v5109_v61, %s4397_s1 }
 0x895   :  { %v1750_v12 = vpop.xlane.xlu1 %1749  ;;  %v1753_v63 = vpop.xlane.xlu0 %1752 }
 0x896   :  { %v1796_v48 = vmul.f32 0.03125, %v1750_v12  ;;  %v1797_v0 = vmul.f32 0.03125, %v1753_v63 }
 0x898   :  { %v1812_v3 = vadd.f32 1e-05, %v1796_v48  ;;  %v1813_v49 = vadd.f32 1e-05, %v1797_v0 }
 0x899   :  { %v1756_v47 = vpop.xlane.xlu1 %1755 }
 0x89a   :  { %4039 = vrsqrt.f32 %v1812_v3  ;;  %v1798_v34 = vmul.f32 0.03125, %v1756_v47 }
 0x89b   :  { %4041 = vrsqrt.f32 %v1813_v49 }
 0x89c   :  { %v1814_v40 = vadd.f32 1e-05, %v1798_v34 }
 0x89d   :  { %v1759_v54 = vpop.xlane.xlu1 %1758  ;;  %v1777_v58 = vpop.xlane.xlu0 %1776 }
 0x89e   :  { %4043 = vrsqrt.f32 %v1814_v40  ;;  %v1799_v2 = vmul.f32 0.03125, %v1759_v54  ;;  %v1805_v42 = vmul.f32 0.03125, %v1777_v58 }
 0x8a0   :  { %v1815_v10 = vadd.f32 1e-05, %v1799_v2  ;;  %v1821_v23 = vadd.f32 1e-05, %v1805_v42 }
 0x8a1   :  { %v1762_v57 = vpop.xlane.xlu1 %1761  ;;  %v1780_v26 = vpop.xlane.xlu0 %1779 }
 0x8a2   :  { %4045 = vrsqrt.f32 %v1815_v10  ;;  %v1800_v43 = vmul.f32 0.03125, %v1762_v57  ;;  %v1806_v7 = vmul.f32 0.03125, %v1780_v26 }
 0x8a3   :  { %4047 = vrsqrt.f32 %v1821_v23 }
 0x8a4   :  { %v4040_v45 = vpop.eup %4039  ;;  %v1816_v51 = vadd.f32 1e-05, %v1800_v43  ;;  %v1822_v18 = vadd.f32 1e-05, %v1806_v7 }
 0x8a5   :  { %v4042_v25 = vpop.eup %4041  ;;  %v1844_v9 = vmul.f32 %v4040_v45, %v5254_v19  ;;  %v1765_v6 = vpop.xlane.xlu1 %1764 }
 0x8a6   :  { %v1783_v31 = vpop.xlane.xlu0 %1782  ;;  %v1845_v20 = vmul.f32 %v4042_v25, %v5257_v15  ;;  %4049 = vrsqrt.f32 %v1816_v51  ;;  %v1801_v1 = vmul.f32 0.03125, %v1765_v6 }
 0x8a7   :  { %v1807_v37 = vmul.f32 0.03125, %v1783_v31  ;;  %v1860_v30 = vmax.f32 %v1844_v9, 0.0  ;;  %4051 = vrsqrt.f32 %v1822_v18 }
 0x8a8   :  { %v4044_v13 = vpop.eup %4043  ;;  %v1861_v12 = vmax.f32 %v1845_v20, 0.0  ;;  %v1817_v63 = vadd.f32 1e-05, %v1801_v1 }
 0x8a9   :  { %v1823_v48 = vadd.f32 1e-05, %v1807_v37  ;;  %v5356_v0 = vadd.f32 %v1860_v30, %v4826_v4  ;;  %v1846_v3 = vmul.f32 %v4044_v13, %v5264_v14  ;;  %v1774_v49 = vpop.xlane.xlu1 %1773 }
 0x8aa   :  { %v1786_v19 = vpop.xlane.xlu0 %1785  ;;  %v5360_v47 = vadd.f32 %v1861_v12, %v4831_v35  ;;  %4053 = vrsqrt.f32 %v1817_v63  ;;  %v1804_v15 = vmul.f32 0.03125, %v1774_v49 }
 0x8ab   :  { %v1808_v34 = vmul.f32 0.03125, %v1786_v19  ;;  %v3674_v40 = vmul.f32 -1.442695, %v5356_v0  ;;  %v1862_v54 = vmax.f32 %v1846_v3, 0.0  ;;  %4055 = vrsqrt.f32 %v1823_v48 }
 0x8ac   :  { %v4046_v58 = vpop.eup %4045  ;;  %v3675_v2 = vmul.f32 -1.442695, %v5360_v47  ;;  %v1820_v42 = vadd.f32 1e-05, %v1804_v15 }
 0x8ad   :  { %v1824_v4 = vadd.f32 1e-05, %v1808_v34  ;;  %v4048_v10 = vpop.eup %4047  ;;  %4057 = vpow2.f32 %v3674_v40  ;;  %v5365_v14 = vadd.f32 %v1862_v54, %v4836_v55  ;;  %v1847_v35 = vmul.f32 %v4046_v58, %v5271_v60  ;;  %v1768_v23 = vpop.xlane.xlu1 %1767 }
 0x8ae   :  { %v1789_v57 = vpop.xlane.xlu0 %1788  ;;  %4059 = vpow2.f32 %v3675_v2  ;;  %v1853_v26 = vmul.f32 %v4048_v10, %v5274_v16  ;;  %v1802_v43 = vmul.f32 0.03125, %v1768_v23 }
 0x8af   :  { %v1809_v7 = vmul.f32 0.03125, %v1789_v57  ;;  %v3676_v45 = vmul.f32 -1.442695, %v5365_v14  ;;  %v1863_v51 = vmax.f32 %v1847_v35, 0.0  ;;  %4061 = vrsqrt.f32 %v1820_v42 }
 0x8b0   :  { %v4050_v18 = vpop.eup %4049  ;;  %v1869_v25 = vmax.f32 %v1853_v26, 0.0  ;;  %4063 = vrsqrt.f32 %v1824_v4  ;;  %v1818_v9 = vadd.f32 1e-05, %v1802_v43 }
 0x8b1   :  { %v1825_v6 = vadd.f32 1e-05, %v1809_v7  ;;  %v4052_v55 = vpop.eup %4051  ;;  %4065 = vpow2.f32 %v3676_v45  ;;  %v5371_v60 = vadd.f32 %v1863_v51, %v4841_v59  ;;  %v1848_v31 = vmul.f32 %v4050_v18, %v5282_v21  ;;  %v1771_v20 = vpop.xlane.xlu1 %1770 }
 0x8b2   :  { %v1792_v16 = vpop.xlane.xlu0 %1791  ;;  %v5375_v1 = vadd.f32 %v1869_v25, %v4862_v8  ;;  %v1854_v37 = vmul.f32 %v4052_v55, %v5285_v41  ;;  %4067 = vrsqrt.f32 %v1818_v9  ;;  %v1803_v30 = vmul.f32 0.03125, %v1771_v20 }
 0x8b3   :  { %v3677_v13 = vmul.f32 -1.442695, %v5371_v60  ;;  %v1864_v12 = vmax.f32 %v1848_v31, 0.0  ;;  %4069 = vrsqrt.f32 %v1825_v6  ;;  %v1810_v63 = vmul.f32 0.03125, %v1792_v16 }
 0x8b4   :  { %v4054_v48 = vpop.eup %4053  ;;  %v3683_v59 = vmul.f32 -1.442695, %v5375_v1  ;;  %v1870_v3 = vmax.f32 %v1854_v37, 0.0  ;;  %v1819_v49 = vadd.f32 1e-05, %v1803_v30 }
 0x8b5   :  { %v4056_v21 = vpop.eup %4055  ;;  %4071 = vpow2.f32 %v3677_v13  ;;  %v5381_v19 = vadd.f32 %v1864_v12, %v4846_v62  ;;  %v1849_v8 = vmul.f32 %v4054_v48, %v5297_v56  ;;  %v1826_v41 = vadd.f32 1e-05, %v1810_v63 }
 0x8b6   :  { %v1795_v15 = vpop.xlane.xlu0 %1794  ;;  %4073 = vpow2.f32 %v3683_v59  ;;  %v5385_v34 = vadd.f32 %v1870_v3, %v4871_v11  ;;  %v1855_v40 = vmul.f32 %v4056_v21, %v5300_v27 }
 0x8b7   :  { %v4058_v54 = vpop.eup %4057  ;;  %v3678_v58 = vmul.f32 -1.442695, %v5381_v19  ;;  %v1865_v2 = vmax.f32 %v1849_v8, 0.0  ;;  %4075 = vrsqrt.f32 %v1819_v49  ;;  %v1811_v42 = vmul.f32 0.03125, %v1795_v15 }
 0x8b8   :  { %v4060_v4 = vpop.eup %4059  ;;  %v1940_v10 = vadd.f32 1.0, %v4058_v54  ;;  %v3684_v62 = vmul.f32 -1.442695, %v5385_v34  ;;  %v1871_v35 = vmax.f32 %v1855_v40, 0.0  ;;  %4077 = vrsqrt.f32 %v1826_v41 }
 0x8b9   :  { %v4062_v56 = vpop.eup %4061  ;;  %v1941_v23 = vadd.f32 1.0, %v4060_v4  ;;  %4079 = vpow2.f32 %v3678_v58  ;;  %v5391_v11 = vadd.f32 %v1865_v2, %v4851_v38  ;;  %v1827_v51 = vadd.f32 1e-05, %v1811_v42 }
 0x8ba   :  { %v4064_v57 = vpop.eup %4063  ;;  %4081 = vrcp.f32 %v1940_v10  ;;  %v5394_v27 = vadd.f32 %v1871_v35, %v4876_v22  ;;  %v1852_v26 = vmul.f32 %v4062_v56, %v5294_v29 }
 0x8bb   :  { %v4066_v43 = vpop.eup %4065  ;;  %4083 = vrcp.f32 %v1941_v23  ;;  %v3679_v7 = vmul.f32 -1.442695, %v5391_v11  ;;  %v1856_v45 = vmul.f32 %v4064_v57, %v5314_v44 }
 0x8bc   :  { %v4068_v18 = vpop.eup %4067  ;;  %v1942_v25 = vadd.f32 1.0, %v4066_v43  ;;  %4085 = vpow2.f32 %v3684_v62  ;;  %v3685_v38 = vmul.f32 -1.442695, %v5394_v27  ;;  %v1868_v9 = vmax.f32 %v1852_v26, 0.0 }
 0x8bd   :  { %v4070_v6 = vpop.eup %4069  ;;  %4087 = vpow2.f32 %v3679_v7  ;;  %v1872_v55 = vmax.f32 %v1856_v45, 0.0  ;;  %v1850_v22 = vmul.f32 %v4068_v18, %v5311_v5  ;;  %v6185_v45 = vld [vmem:[#allocation5_spill] sm:$0xff] }
 0x8be   :  { %4089 = vrcp.f32 %v1942_v25  ;;  %v5402_v29 = vadd.f32 %v1868_v9, %v4856_v39  ;;  %v1857_v31 = vmul.f32 %v4070_v6, %v5325_v32 }
 0x8bf   :  { %v4072_v20 = vpop.eup %4071  ;;  %4091 = vpow2.f32 %v3685_v38  ;;  %v5406_v44 = vadd.f32 %v1872_v55, %v4885_v46  ;;  %v1866_v63 = vmax.f32 %v1850_v22, 0.0 }
 0x8c0   :  { %v4074_v16 = vpop.eup %4073  ;;  %v1943_v37 = vadd.f32 1.0, %v4072_v20  ;;  %v3682_v30 = vmul.f32 -1.442695, %v5402_v29  ;;  %4093 = vrsqrt.f32 %v1827_v51  ;;  %v1873_v39 = vmax.f32 %v1857_v31, 0.0 }
 0x8c1   :  { %v4076_v13 = vpop.eup %4075  ;;  %v1949_v12 = vadd.f32 1.0, %v4074_v16  ;;  %v3686_v5 = vmul.f32 -1.442695, %v5406_v44  ;;  %v5412_v8 = vadd.f32 %v1866_v63, %v4865_v24 }
 0x8c2   :  { %v4078_v48 = vpop.eup %4077  ;;  %4095 = vrcp.f32 %v1943_v37  ;;  %v1851_v46 = vmul.f32 %v4076_v13, %v5322_v52  ;;  %v5416_v54 = vadd.f32 %v1873_v39, %v4894_v53 }
 0x8c3   :  { %v4080_v59 = vpop.eup %4079  ;;  %4097 = vrcp.f32 %v1949_v12  ;;  %v1858_v41 = vmul.f32 %v4078_v48, %v5333_v36  ;;  %v3680_v24 = vmul.f32 -1.442695, %v5412_v8 }
 0x8c4   :  { %v4082_v32 = vpop.eup %4081  ;;  %v1944_v3 = vadd.f32 1.0, %v4080_v59  ;;  %4099 = vpow2.f32 %v3682_v30  ;;  %v1867_v4 = vmax.f32 %v1851_v46, 0.0  ;;  %v3687_v23 = vmul.f32 -1.442695, %v5416_v54 }
 0x8c5   :  { %v4084_v49 = vpop.eup %4083  ;;  %v1988_v21 = vmul.f32 1.442695, %v4082_v32  ;;  %4101 = vpow2.f32 %v3686_v5  ;;  %v1874_v35 = vmax.f32 %v1858_v41, 0.0  ;;  %v6187_v5 = vld [vmem:[#allocation6_spill] sm:$0xff] }
 0x8c6   :  { %v4086_v15 = vpop.eup %4085  ;;  %v1990_v40 = vmul.f32 1.442695, %v4084_v49  ;;  %4103 = vrcp.f32 %v1944_v3  ;;  %v5422_v26 = vadd.f32 %v1867_v4, %v4903_v28 }
 0x8c7   :  { %v4088_v58 = vpop.eup %4087  ;;  %4105 = vpow2.f32 %v1988_v21  ;;  %v1950_v2 = vadd.f32 1.0, %v4086_v15  ;;  %v5425_v51 = vadd.f32 %v1874_v35, %v6185_v45 }
 0x8c8   :  { %v4090_v42 = vpop.eup %4089  ;;  %4107 = vpow2.f32 %v1990_v40  ;;  %v1945_v52 = vadd.f32 1.0, %v4088_v58  ;;  %v3681_v22 = vmul.f32 -1.442695, %v5422_v26 }
 0x8c9   :  { %v4092_v10 = vpop.eup %4091  ;;  %v1992_v62 = vmul.f32 1.442695, %v4090_v42  ;;  %4109 = vrcp.f32 %v1950_v2  ;;  %6186 = vst [vmem:[#allocation5_spill] sm:$0xff] %v5425_v51  ;;  %v3688_v20 = vmul.f32 -1.442695, %v5425_v51 }
 0x8ca   :  { %v4094_v36 = vpop.eup %4093  ;;  %4111 = vrcp.f32 %v1945_v52  ;;  %v1951_v56 = vadd.f32 1.0, %v4092_v10 }
 0x8cb   :  { %4113 = vpow2.f32 %v1992_v62  ;;  %v1859_v53 = vmul.f32 %v4094_v36, %v5342_v50 }
 0x8cc   :  { %v4096_v57 = vpop.eup %4095  ;;  %4115 = vrcp.f32 %v1951_v56 }
 0x8cd   :  { %v4098_v43 = vpop.eup %4097  ;;  %v1994_v7 = vmul.f32 1.442695, %v4096_v57  ;;  %4117 = vpow2.f32 %v3680_v24  ;;  %v1875_v6 = vmax.f32 %v1859_v53, 0.0 }
 0x8ce   :  { %v4100_v18 = vpop.eup %4099  ;;  %v2006_v25 = vmul.f32 1.442695, %v4098_v43  ;;  %4119 = vpow2.f32 %v3687_v23 }
 0x8cf   :  { %v4102_v38 = vpop.eup %4101  ;;  %4121 = vpow2.f32 %v1994_v7  ;;  %v1948_v9 = vadd.f32 1.0, %v4100_v18  ;;  %v5438_v63 = vadd.f32 %v1875_v6, %v6187_v5 }
 0x8d0   :  { %v4104_v55 = vpop.eup %4103  ;;  %4123 = vpow2.f32 %v2006_v25  ;;  %v1952_v50 = vadd.f32 1.0, %v4102_v38 }
 0x8d1   :  { %v5428_v28 = vpop.eup %4105  ;;  %v1996_v31 = vmul.f32 1.442695, %v4104_v55  ;;  %4125 = vrcp.f32 %v1948_v9  ;;  %6188 = vst [vmem:[#allocation6_spill] sm:$0xff] %v5438_v63  ;;  %v3689_v42 = vmul.f32 -1.442695, %v5438_v63 }
 0x8d2   :  { %v5431_v16 = vpop.eup %4107  ;;  %v2020_v37 = vsel %vm60_vm1, %v5428_v28, 0.0  ;;  %4127 = vrcp.f32 %v1952_v50 }
 0x8d3   :  { %v4110_v30 = vpop.eup %4109  ;;  %v2021_v13 = vrot.slane %v2020_v37, 4  ;;  %v2027_v12 = vsel %vm60_vm1, %v5431_v16, 0.0  ;;  %4129 = vpow2.f32 %v1996_v31 }
 0x8d4   :  { %v4112_v48 = vpop.eup %4111  ;;  %v2028_v39 = vrot.slane %v2027_v12, 4  ;;  %v2008_v59 = vmul.f32 1.442695, %v4110_v30  ;;  %4131 = vpow2.f32 %v3681_v22 }
 0x8d5   :  { %v5440_v32 = vpop.eup %4113  ;;  %v1998_v3 = vmul.f32 1.442695, %v4112_v48  ;;  %4133 = vpow2.f32 %v3688_v20  ;;  %v2022_v46 = vadd.f32 %v2021_v13, %v2020_v37 }
 0x8d6   :  { %v4116_v49 = vpop.eup %4115  ;;  %v2034_v21 = vsel %vm60_vm1, %v5440_v32, 0.0  ;;  %4135 = vpow2.f32 %v2008_v59  ;;  %v2029_v41 = vadd.f32 %v2028_v39, %v2027_v12 }
 0x8d7   :  { %v4118_v15 = vpop.eup %4117  ;;  %v2035_v40 = vrot.slane %v2034_v21, 4  ;;  %v2010_v58 = vmul.f32 1.442695, %v4116_v49  ;;  %v2023_v2 = vrot.slane %v2022_v46, 2  ;;  %4137 = vpow2.f32 %v1998_v3 }
 0x8d8   :  { %v4120_v52 = vpop.eup %4119  ;;  %v1946_v4 = vadd.f32 1.0, %v4118_v15  ;;  %v2030_v10 = vrot.slane %v2029_v41, 2 }
 0x8d9   :  { %v5445_v62 = vpop.eup %4121  ;;  %4139 = vpow2.f32 %v2010_v58  ;;  %v2024_v24 = vadd.f32 %v2023_v2, %v2022_v46  ;;  %v2036_v35 = vadd.f32 %v2035_v40, %v2034_v21  ;;  %v1953_v40 = vadd.f32 1.0, %v4120_v52 }
 0x8da   :  { %v5447_v36 = vpop.eup %4123  ;;  %v2041_v56 = vsel %vm60_vm1, %v5445_v62, 0.0  ;;  %4141 = vrcp.f32 %v1946_v4  ;;  %v2031_v23 = vadd.f32 %v2030_v10, %v2029_v41 }
 0x8db   :  { %v4126_v53 = vpop.eup %4125  ;;  %v2042_v57 = vrot.slane %v2041_v56, 4  ;;  %v2083_v43 = vsel %vm60_vm1, %v5447_v36, 0.0  ;;  %v2025_v7 = vrot.slane %v2024_v24, 1  ;;  %4143 = vpow2.f32 %v3689_v42 }
 0x8dc   :  { %v4128_v45 = vpop.eup %4127  ;;  %v2084_v18 = vrot.slane %v2083_v43, 4  ;;  %v2004_v25 = vmul.f32 1.442695, %v4126_v53  ;;  %v2037_v38 = vrot.slane %v2036_v35, 2  ;;  %v2032_v9 = vrot.slane %v2031_v23, 1 }
 0x8dd   :  { %v5453_v6 = vpop.eup %4129  ;;  %v2012_v55 = vmul.f32 1.442695, %v4128_v45  ;;  %v2026_v50 = vadd.f32 %v2025_v7, %v2024_v24  ;;  %v2043_v22 = vadd.f32 %v2042_v57, %v2041_v56 }
 0x8de   :  { %v4132_v31 = vpop.eup %4131  ;;  %v2048_v20 = vsel %vm60_vm1, %v5453_v6, 0.0  ;;  %4145 = vpow2.f32 %v2004_v25  ;;  %v2038_v37 = vadd.f32 %v2037_v38, %v2036_v35  ;;  %v2033_v30 = vadd.f32 %v2032_v9, %v2031_v23 }
 0x8df   :  { %v4134_v13 = vpop.eup %4133  ;;  %v2049_v12 = vrot.slane %v2048_v20, 4  ;;  %4147 = vpow2.f32 %v2012_v55  ;;  %v1947_v5 = vadd.f32 1.0, %v4132_v31  ;;  %v2044_v48 = vrot.slane %v2043_v22, 2 }
 0x8e0   :  { %v5457_v39 = vpop.eup %4135  ;;  %v2039_v59 = vrot.slane %v2038_v37, 1  ;;  %4149 = vrcp.f32 %v2026_v50  ;;  %v2085_v3 = vadd.f32 %v2084_v18, %v2083_v43  ;;  %v1954_v4 = vadd.f32 1.0, %v4134_v13 }
 0x8e1   :  { %v2090_v46 = vsel %vm60_vm1, %v5457_v39, 0.0  ;;  %4151 = vrcp.f32 %v1947_v5  ;;  %v2045_v49 = vadd.f32 %v2044_v48, %v2043_v22  ;;  %v2050_v21 = vadd.f32 %v2049_v12, %v2048_v20  ;;  %v5461_v41 = vpop.eup %4137 }
 0x8e2   :  { %v2091_v15 = vrot.slane %v2090_v46, 4  ;;  %v2040_v58 = vadd.f32 %v2039_v59, %v2038_v37  ;;  %v2086_v2 = vrot.slane %v2085_v3, 2  ;;  %4153 = vrcp.f32 %v2033_v30 }
 0x8e3   :  { %v5463_v42 = vpop.eup %4139  ;;  %v2046_v10 = vrot.slane %v2045_v49, 1  ;;  %v2051_v24 = vrot.slane %v2050_v21, 2  ;;  %v2055_v55 = vsel %vm60_vm1, %v5461_v41, 0.0 }
 0x8e4   :  { %v4142_v35 = vpop.eup %4141  ;;  %v2097_v56 = vsel %vm60_vm1, %v5463_v42, 0.0  ;;  %4155 = vrcp.f32 %v2040_v58  ;;  %v2087_v23 = vadd.f32 %v2086_v2, %v2085_v3  ;;  %v2092_v53 = vadd.f32 %v2091_v15, %v2090_v46 }
 0x8e5   :  { %v4144_v57 = vpop.eup %4143  ;;  %v2098_v43 = vrot.slane %v2097_v56, 4  ;;  %v2000_v7 = vmul.f32 1.442695, %v4142_v35  ;;  %v2047_v45 = vadd.f32 %v2046_v10, %v2045_v49  ;;  %v2052_v52 = vadd.f32 %v2051_v24, %v2050_v21 }
 0x8e6   :  { %4157 = vrcp.f32 %v1953_v40  ;;  %v2088_v18 = vrot.slane %v2087_v23, 1  ;;  %v2093_v25 = vrot.slane %v2092_v53, 2  ;;  %v1955_v22 = vadd.f32 1.0, %v4144_v57  ;;  %v5478_v40 = vpop.permute.xlu1 %2164 }
 0x8e7   :  { %4159 = vrcp.f32 %v1954_v4  ;;  %v2053_v38 = vrot.slane %v2052_v52, 1  ;;  %v2099_v9 = vadd.f32 %v2098_v43, %v2097_v56  ;;  %v2056_v20 = vrot.slane %v2055_v55, 4 }
 0x8e8   :  { %v5469_v50 = vpop.eup %4145  ;;  %4161 = vpow2.f32 %v2000_v7  ;;  %v2089_v31 = vadd.f32 %v2088_v18, %v2087_v23  ;;  %v2094_v12 = vadd.f32 %v2093_v25, %v2092_v53 }
 0x8e9   :  { %v5471_v37 = vpop.eup %4147  ;;  %v2076_v30 = vsel %vm60_vm1, %v5469_v50, 0.0  ;;  %v2054_v13 = vadd.f32 %v2053_v38, %v2052_v52  ;;  %4163 = vrcp.f32 %v2047_v45  ;;  %v2100_v21 = vrot.slane %v2099_v9, 2 }
 0x8ea   :  { %v4150_v5 = vpop.eup %4149  ;;  %v2077_v48 = vrot.slane %v2076_v30, 4  ;;  %v2104_v59 = vsel %vm60_vm1, %v5471_v37, 0.0  ;;  %4165 = vrcp.f32 %v2089_v31  ;;  %v2057_v2 = vadd.f32 %v2056_v20, %v2055_v55 }
 0x8eb   :  { %v4152_v3 = vpop.eup %4151  ;;  %v2105_v46 = vrot.slane %v2104_v59, 4  ;;  %4167 = vrcp.f32 %v2054_v13  ;;  %v2148_v49 = vmul.f32 %v4150_v5, %v5428_v28  ;;  %v2095_v24 = vrot.slane %v2094_v12, 1 }
 0x8ec   :  { %v2002_v15 = vmul.f32 1.442695, %v4152_v3  ;;  %4169 = vrcp.f32 %v1955_v22  ;;  %v2078_v58 = vadd.f32 %v2077_v48, %v2076_v30  ;;  %v4154_v4 = vpop.eup %4153  ;;  %v2058_v57 = vrot.slane %v2057_v2, 2 }
 0x8ed   :  { %v2170_v10 = vmul.f32 %v5478_v40, %v2148_v49  ;;  %v2106_v35 = vadd.f32 %v2105_v46, %v2104_v59  ;;  %v2149_v23 = vmul.f32 %v4154_v4, %v5431_v16  ;;  %v2101_v43 = vadd.f32 %v2100_v21, %v2099_v9 }
 0x8ee   :  { %v4156_v56 = vpop.eup %4155  ;;  %4171 = vpow2.f32 %v2002_v15  ;;  %v2079_v53 = vrot.slane %v2078_v58, 2  ;;  %v2096_v22 = vadd.f32 %v2095_v24, %v2094_v12  ;;  %v2059_v31 = vadd.f32 %v2058_v57, %v2057_v2 }
 0x8ef   :  { %v2150_v28 = vmul.f32 %v4156_v56, %v5440_v32  ;;  %v2171_v45 = vmul.f32 %v5478_v40, %v2149_v23  ;;  %v2186_v52 = vsel %vm60_vm1, %v2170_v10, 0.0  ;;  %v2107_v25 = vrot.slane %v2106_v35, 2 }
 0x8f0   :  { %v4158_v7 = vpop.eup %4157  ;;  %v2080_v18 = vadd.f32 %v2079_v53, %v2078_v58  ;;  %v2187_v32 = vrot.slane %v2186_v52, 4  ;;  %v2060_v9 = vrot.slane %v2059_v31, 1  ;;  %v2102_v49 = vrot.slane %v2101_v43, 1 }
 0x8f1   :  { %v4160_v38 = vpop.eup %4159  ;;  %v2172_v55 = vmul.f32 %v5478_v40, %v2150_v28  ;;  %v2108_v30 = vadd.f32 %v2107_v25, %v2106_v35  ;;  %v2014_v5 = vmul.f32 1.442695, %v4158_v7  ;;  %v2193_v3 = vsel %vm60_vm1, %v2171_v45, 0.0 }
 0x8f2   :  { %v5486_v20 = vpop.eup %4161  ;;  %v2081_v16 = vrot.slane %v2080_v18, 1  ;;  %v2016_v15 = vmul.f32 1.442695, %v4160_v38  ;;  %4173 = vrcp.f32 %v2096_v22  ;;  %v2061_v58 = vadd.f32 %v2060_v9, %v2059_v31 }
 0x8f3   :  { %v4164_v13 = vpop.eup %4163  ;;  %v2200_v12 = vsel %vm60_vm1, %v2172_v55, 0.0  ;;  %v2109_v10 = vrot.slane %v2108_v30, 1  ;;  %v2188_v35 = vadd.f32 %v2187_v32, %v2186_v52  ;;  %v2194_v56 = vrot.slane %v2193_v3, 4 }
 0x8f4   :  { %v4166_v48 = vpop.eup %4165  ;;  %v2151_v59 = vmul.f32 %v4164_v13, %v5445_v62  ;;  %v2082_v46 = vadd.f32 %v2081_v16, %v2080_v18  ;;  %v2062_v62 = vsel %vm60_vm1, %v5486_v20, 0.0  ;;  %v2103_v57 = vadd.f32 %v2102_v49, %v2101_v43  ;;  %v5499_v18 = vpop.permute.xlu0 %2166 }
 0x8f5   :  { %v4168_v21 = vpop.eup %4167  ;;  %v2157_v24 = vmul.f32 %v4166_v48, %v5447_v36  ;;  %v2063_v28 = vrot.slane %v2062_v62, 4  ;;  %v2110_v52 = vadd.f32 %v2109_v10, %v2108_v30  ;;  %v2195_v22 = vadd.f32 %v2194_v56, %v2193_v3 }
 0x8f6   :  { %v4170_v2 = vpop.eup %4169  ;;  %v2152_v4 = vmul.f32 %v4168_v21, %v5453_v6  ;;  %4175 = vrcp.f32 %v2082_v46  ;;  %v2173_v53 = vmul.f32 %v5478_v40, %v2151_v59  ;;  %v2201_v6 = vrot.slane %v2200_v12, 4 }
 0x8f7   :  { %4177 = vrcp.f32 %v2061_v58  ;;  %v2018_v45 = vmul.f32 1.442695, %v4170_v2  ;;  %v2179_v25 = vmul.f32 %v5499_v18, %v2157_v24  ;;  %v2064_v38 = vadd.f32 %v2063_v28, %v2062_v62 }
 0x8f8   :  { %v5495_v23 = vpop.eup %4171  ;;  %4179 = vpow2.f32 %v2014_v5  ;;  %v2174_v7 = vmul.f32 %v5478_v40, %v2152_v4  ;;  %v2189_v31 = vrot.slane %v2188_v35, 2  ;;  %v2207_v13 = vsel %vm60_vm1, %v2173_v53, 0.0 }
 0x8f9   :  { %v2069_v36 = vsel %vm60_vm1, %v5495_v23, 0.0  ;;  %4181 = vpow2.f32 %v2016_v15  ;;  %v2065_v43 = vrot.slane %v2064_v38, 2  ;;  %v2202_v5 = vadd.f32 %v2201_v6, %v2200_v12 }
 0x8fa   :  { %v2070_v55 = vrot.slane %v2069_v36, 4  ;;  %4183 = vrcp.f32 %v2103_v57  ;;  %v2214_v32 = vsel %vm60_vm1, %v2174_v7, 0.0  ;;  %v2249_v9 = vsel %vm60_vm1, %v2179_v25, 0.0 }
 0x8fb   :  { %4185 = vpow2.f32 %v2018_v45  ;;  %v2066_v30 = vadd.f32 %v2065_v43, %v2064_v38  ;;  %v2190_v46 = vadd.f32 %v2189_v31, %v2188_v35  ;;  %v2196_v49 = vrot.slane %v2195_v22, 2 }
 0x8fc   :  { %v2071_v16 = vadd.f32 %v2070_v55, %v2069_v36  ;;  %4187 = vrcp.f32 %v2110_v52  ;;  %v4174_v59 = vpop.eup %4173  ;;  %v2208_v21 = vrot.slane %v2207_v13, 4  ;;  %v2215_v2 = vrot.slane %v2214_v32, 4 }
 0x8fd   :  { %v2067_v15 = vrot.slane %v2066_v30, 1  ;;  %v2250_v24 = vrot.slane %v2249_v9, 4  ;;  %v2203_v12 = vrot.slane %v2202_v5, 2  ;;  %v2158_v62 = vmul.f32 %v4174_v59, %v5457_v39 }
 0x8fe   :  { %v2072_v48 = vrot.slane %v2071_v16, 2  ;;  %v2191_v7 = vrot.slane %v2190_v46, 1  ;;  %v2197_v6 = vadd.f32 %v2196_v49, %v2195_v22  ;;  %v2209_v45 = vadd.f32 %v2208_v21, %v2207_v13 }
 0x8ff   :  { %v2068_v53 = vadd.f32 %v2067_v15, %v2066_v30  ;;  %v2204_v38 = vadd.f32 %v2203_v12, %v2202_v5  ;;  %v2180_v39 = vmul.f32 %v5499_v18, %v2158_v62  ;;  %v5517_v31 = vadd.f32 %v2250_v24, %v2249_v9 }
 0x900   :  { %v4176_v3 = vpop.eup %4175  ;;  %v2073_v58 = vadd.f32 %v2072_v48, %v2071_v16  ;;  %v2192_v16 = vadd.f32 %v2191_v7, %v2190_v46  ;;  %v2198_v13 = vrot.slane %v2197_v6, 1 }
 0x901   :  { %v4178_v4 = vpop.eup %4177  ;;  %v2156_v10 = vmul.f32 %v4176_v3, %v5469_v50  ;;  %4189 = vrcp.f32 %v2068_v53  ;;  %v2216_v50 = vadd.f32 %v2215_v2, %v2214_v32  ;;  %v2210_v32 = vrot.slane %v2209_v45, 2 }
 0x902   :  { %v5508_v56 = vpop.eup %4179  ;;  %v2074_v57 = vrot.slane %v2073_v58, 1  ;;  %v2153_v28 = vmul.f32 %v4178_v4, %v5461_v41  ;;  %v2205_v21 = vrot.slane %v2204_v38, 1  ;;  %v2256_v2 = vsel %vm60_vm1, %v2180_v39, 0.0 }
 0x903   :  { %v2178_v35 = vmul.f32 %v5499_v18, %v2156_v10  ;;  %v5514_v25 = vpop.eup %4181  ;;  %v2217_v59 = vrot.slane %v2216_v50, 2  ;;  %v2111_v5 = vsel %vm60_vm1, %v5508_v56, 0.0  ;;  %v2199_v24 = vadd.f32 %v2198_v13, %v2197_v6 }
 0x904   :  { %v2075_v36 = vadd.f32 %v2074_v57, %v2073_v58  ;;  %v2175_v52 = vmul.f32 %v5478_v40, %v2153_v28  ;;  %v4184_v55 = vpop.eup %4183  ;;  %v2118_v9 = vsel %vm60_vm1, %v5514_v25, 0.0  ;;  %v2112_v15 = vrot.slane %v2111_v5, 4 }
 0x905   :  { %v5520_v43 = vpop.eup %4185  ;;  %v2242_v22 = vsel %vm60_vm1, %v2178_v35, 0.0  ;;  %v2159_v49 = vmul.f32 %v4184_v55, %v5463_v42  ;;  %v2119_v46 = vrot.slane %v2118_v9, 4  ;;  %v5532_v12 = vmul.f32 0.125, %v2192_v16 }
 0x906   :  { %4191 = vrcp.f32 %v2075_v36  ;;  %v2221_v41 = vsel %vm60_vm1, %v2175_v52, 0.0  ;;  %v4188_v48 = vpop.eup %4187  ;;  %v2243_v58 = vrot.slane %v2242_v22, 4  ;;  %v2125_v4 = vsel %vm60_vm1, %v5520_v43, 0.0 }
 0x907   :  { %v2222_v30 = vrot.slane %v2221_v41, 4  ;;  %v2160_v10 = vmul.f32 %v4188_v48, %v5471_v37  ;;  %v2113_v62 = vadd.f32 %v2112_v15, %v2111_v5  ;;  %v2211_v53 = vadd.f32 %v2210_v32, %v2209_v45 }
 0x908   :  { %v2218_v57 = vadd.f32 %v2217_v59, %v2216_v50  ;;  %v2120_v28 = vadd.f32 %v2119_v46, %v2118_v9  ;;  %v2126_v42 = vrot.slane %v2125_v4, 4  ;;  %v2257_v35 = vrot.slane %v2256_v2, 4 }
 0x909   :  { %v2223_v3 = vadd.f32 %v2222_v30, %v2221_v41  ;;  %v2206_v7 = vadd.f32 %v2205_v21, %v2204_v38  ;;  %v2114_v52 = vrot.slane %v2113_v62, 2  ;;  %v2181_v39 = vmul.f32 %v5499_v18, %v2159_v49 }
 0x90a   :  { %v2244_v41 = vadd.f32 %v2243_v58, %v2242_v22  ;;  %v2121_v30 = vrot.slane %v2120_v28, 2  ;;  %v2127_v17 = vadd.f32 %v2126_v42, %v2125_v4  ;;  %v2182_v37 = vmul.f32 %v5499_v18, %v2160_v10 }
 0x90b   :  { %v2224_v36 = vrot.slane %v2223_v3, 2  ;;  %v4190_v55 = vpop.eup %4189  ;;  %v2299_v16 = vmul.f32 0.125, %v2199_v24  ;;  %v2115_v13 = vadd.f32 %v2114_v52, %v2113_v62  ;;  %v2212_v50 = vrot.slane %v2211_v53, 1 }
 0x90c   :  { %v2154_v6 = vmul.f32 %v4190_v55, %v5486_v20  ;;  %v2219_v48 = vrot.slane %v2218_v57, 1  ;;  %v2122_v32 = vadd.f32 %v2121_v30, %v2120_v28  ;;  %v2128_v59 = vrot.slane %v2127_v17, 2 }
 0x90d   :  { %v2225_v9 = vadd.f32 %v2224_v36, %v2223_v3  ;;  %v2116_v49 = vrot.slane %v2115_v13, 1  ;;  %v2245_v15 = vrot.slane %v2244_v41, 2  ;;  %v2263_v58 = vsel %vm60_vm1, %v2181_v39, 0.0 }
 0x90e   :  { %v2176_v5 = vmul.f32 %v5478_v40, %v2154_v6  ;;  %v2123_v22 = vrot.slane %v2122_v32, 1  ;;  %v2129_v21 = vadd.f32 %v2128_v59, %v2127_v17  ;;  %v2252_v10 = vrot.slane %v5517_v31, 2 }
 0x90f   :  { %v2117_v4 = vadd.f32 %v2116_v49, %v2115_v13  ;;  %v2226_v42 = vrot.slane %v2225_v9, 1  ;;  %v2264_v36 = vrot.slane %v2263_v58, 4  ;;  %v2213_v39 = vadd.f32 %v2212_v50, %v2211_v53 }
 0x910   :  { %v4192_v45 = vpop.eup %4191  ;;  %v2228_v46 = vsel %vm60_vm1, %v2176_v5, 0.0  ;;  %v2124_v62 = vadd.f32 %v2123_v22, %v2122_v32  ;;  %v2130_v28 = vrot.slane %v2129_v21, 1  ;;  %v2270_v6 = vsel %vm60_vm1, %v2182_v37, 0.0 }
 0x911   :  { %v2155_v38 = vmul.f32 %v4192_v45, %v5495_v23  ;;  %v2229_v24 = vrot.slane %v2228_v46, 4  ;;  %v2258_v23 = vadd.f32 %v2257_v35, %v2256_v2  ;;  %4193 = vrcp.f32 %v2117_v4 }
 0x912   :  { %v2131_v55 = vadd.f32 %v2130_v28, %v2129_v21  ;;  %4195 = vrcp.f32 %v2124_v62  ;;  %v2265_v30 = vadd.f32 %v2264_v36, %v2263_v58  ;;  %v2271_v32 = vrot.slane %v2270_v6, 4 }
 0x913   :  { %v2177_v20 = vmul.f32 %v5478_v40, %v2155_v38  ;;  %v2230_v17 = vadd.f32 %v2229_v24, %v2228_v46  ;;  %v2246_v40 = vadd.f32 %v2245_v15, %v2244_v41  ;;  %v2220_v59 = vadd.f32 %v2219_v48, %v2218_v57 }
 0x914   :  { %4197 = vrcp.f32 %v2131_v55  ;;  %v2300_v2 = vmul.f32 0.125, %v2206_v7  ;;  %v2259_v35 = vrot.slane %v2258_v23, 2  ;;  %v2227_v38 = vadd.f32 %v2226_v42, %v2225_v9 }
 0x915   :  { %v2235_v3 = vsel %vm60_vm1, %v2177_v20, 0.0  ;;  %v2231_v13 = vrot.slane %v2230_v17, 2  ;;  %v2253_v22 = vadd.f32 %v2252_v10, %v5517_v31  ;;  %v2301_v20 = vmul.f32 0.125, %v2213_v39 }
 0x916   :  { %v2236_v52 = vrot.slane %v2235_v3, 4  ;;  %v2247_v21 = vrot.slane %v2246_v40, 1  ;;  %v2272_v46 = vadd.f32 %v2271_v32, %v2270_v6  ;;  %v2330_v37 = vsel %vm1143_vm2, %v2299_v16, %v5532_v12 }
 0x917   :  { %v2232_v5 = vadd.f32 %v2231_v13, %v2230_v17  ;;  %v2266_v50 = vrot.slane %v2265_v30, 2  ;;  %v2302_v15 = vmul.f32 0.125, %v2220_v59  ;;  %v2331_v58 = vsel %vm1145_vm3, %v2300_v2, %v2330_v37 }
 0x918   :  { %v2237_v45 = vadd.f32 %v2236_v52, %v2235_v3  ;;  %v2260_v57 = vadd.f32 %v2259_v35, %v2258_v23  ;;  %v2303_v9 = vmul.f32 0.125, %v2227_v38  ;;  %v2254_v4 = vrot.slane %v2253_v22, 1 }
 0x919   :  { %v2233_v53 = vrot.slane %v2232_v5, 1  ;;  %v2332_v31 = vsel %vm1147_vm4, %v2301_v20, %v2331_v58  ;;  %v2248_v10 = vadd.f32 %v2247_v21, %v2246_v40  ;;  %v2273_v62 = vrot.slane %v2272_v46, 2 }
 0x91a   :  { %v2238_v49 = vrot.slane %v2237_v45, 2  ;;  %v2267_v12 = vadd.f32 %v2266_v50, %v2265_v30  ;;  %v2333_v16 = vsel %vm1149_vm5, %v2302_v15, %v2332_v31  ;;  %v2261_v23 = vrot.slane %v2260_v57, 1 }
 0x91b   :  { %v2234_v7 = vadd.f32 %v2233_v53, %v2232_v5  ;;  %v4194_v24 = vpop.eup %4193  ;;  %v2334_v39 = vsel %vm1151_vm6, %v2303_v9, %v2333_v16  ;;  %v2255_v13 = vadd.f32 %v2254_v4, %v2253_v22  ;;  %v2306_v2 = vmul.f32 0.125, %v2248_v10 }
 0x91c   :  { %v2239_v41 = vadd.f32 %v2238_v49, %v2237_v45  ;;  %v4196_v28 = vpop.eup %4195  ;;  %v2161_v36 = vmul.f32 %v4194_v24, %v5508_v56  ;;  %v2274_v56 = vadd.f32 %v2273_v62, %v2272_v46  ;;  %v2268_v59 = vrot.slane %v2267_v12, 1 }
 0x91d   :  { %v2304_v3 = vmul.f32 0.125, %v2234_v7  ;;  %v2162_v17 = vmul.f32 %v4196_v28, %v5514_v25  ;;  %v2262_v38 = vadd.f32 %v2261_v23, %v2260_v57  ;;  %v2307_v20 = vmul.f32 0.125, %v2255_v13 }
 0x91e   :  { %v2240_v48 = vrot.slane %v2239_v41, 1  ;;  %v4198_v52 = vpop.eup %4197  ;;  %v2183_v6 = vmul.f32 %v5499_v18, %v2161_v36  ;;  %v2269_v53 = vadd.f32 %v2268_v59, %v2267_v12 }
 0x91f   :  { %v2335_v40 = vsel %vm1153_vm7, %v2304_v3, %v2334_v39  ;;  %v2163_v45 = vmul.f32 %v4198_v52, %v5520_v43  ;;  %v2184_v32 = vmul.f32 %v5499_v18, %v2162_v17  ;;  %v2275_v43 = vrot.slane %v2274_v56, 1 }
 0x920   :  { %v2241_v42 = vadd.f32 %v2240_v48, %v2239_v41  ;;  %v2277_v25 = vsel %vm60_vm1, %v2183_v6, 0.0  ;;  %v2337_v50 = vsel %vm1143_vm2, %v2307_v20, %v2306_v2  ;;  %v2308_v58 = vmul.f32 0.125, %v2262_v38 }
 0x921   :  { %v2185_v35 = vmul.f32 %v5499_v18, %v2163_v45  ;;  %v2278_v5 = vrot.slane %v2277_v25, 4  ;;  %v2284_v49 = vsel %vm60_vm1, %v2184_v32, 0.0  ;;  %v2276_v18 = vadd.f32 %v2275_v43, %v2274_v56 }
 0x922   :  { %v2305_v55 = vmul.f32 0.125, %v2241_v42  ;;  %v2285_v22 = vrot.slane %v2284_v49, 4  ;;  %v2338_v9 = vsel %vm1145_vm3, %v2308_v58, %v2337_v50  ;;  %v2309_v31 = vmul.f32 0.125, %v2269_v53  ;;  %v3872_v50 = vld [vmem:[%s6144_s2 + $0x28] sm:$0xff]  }
 0x923   :  { %v2279_v21 = vadd.f32 %v2278_v5, %v2277_v25  ;;  %v2291_v46 = vsel %vm60_vm1, %v2185_v35, 0.0  ;;  %v2310_v36 = vmul.f32 0.125, %v2276_v18 }
 0x924   :  { %v2336_v30 = vsel %vm1155_vm8, %v2305_v55, %v2335_v40  ;;  %v2286_v41 = vadd.f32 %v2285_v22, %v2284_v49  ;;  %v2292_v37 = vrot.slane %v2291_v46, 4  ;;  %v2339_v42 = vsel %vm1147_vm4, %v2309_v31, %v2338_v9  ;;  %v3873_v31 = vld [vmem:[%s6145_s3 + $0x20] sm:$0xff]  }
 0x925   :  { %2344 = vrot.lane.b32.xlu1 %v2336_v30, %s4398_s13  ;;  %v2280_v15 = vrot.slane %v2279_v21, 2  ;;  %v2340_v23 = vsel %vm1149_vm5, %v2310_v36, %v2339_v42  ;;  %v6190_v42 = vld [vmem:[#allocation9_spill] sm:$0xff] }
 0x926   :  { %v2287_v7 = vrot.slane %v2286_v41, 2  ;;  %v2293_v48 = vadd.f32 %v2292_v37, %v2291_v46  ;;  %v3871_v37 = vld [vmem:[%s6144_s2 + $0x20] sm:$0xff]  }
 0x927   :  { %v2281_v57 = vadd.f32 %v2280_v15, %v2279_v21  ;;  %3823 = vmatpush3.bf16.msra.mxu1 %v3871_v37  ;;  %v6189_v15 = vmov 0.0  }
 0x928   :  { %v2288_v4 = vadd.f32 %v2287_v7, %v2286_v41  ;;  %v2294_v24 = vrot.slane %v2293_v48, 2  ;;  %3824 = vmatprep.subr.bf16.mxu1 %v6189_v15 }
 0x929   :  { %v2282_v10 = vrot.slane %v2281_v57, 1 }
 0x92a   :  { %v2289_v62 = vrot.slane %v2288_v4, 1  ;;  %v2295_v28 = vadd.f32 %v2294_v24, %v2293_v48 }
 0x92b   :  { %v2283_v3 = vadd.f32 %v2282_v10, %v2281_v57  ;;  %3825 = vmatpush3.bf16.msra.mxu1 %v3872_v50 }
 0x92c   :  { %v2290_v12 = vadd.f32 %v2289_v62, %v2288_v4  ;;  %v2296_v16 = vrot.slane %v2295_v28, 1  ;;  %3830 = vmatprep.subr.bf16.mxu1 %v3873_v31 }
 0x92d   :  { %v2311_v17 = vmul.f32 0.125, %v2283_v3  ;;  %v6191_v3 = vmax.f32 %v6190_v42, 0.0 }
 0x92e   :  { %v2297_v52 = vadd.f32 %v2296_v16, %v2295_v28  ;;  %v2312_v55 = vmul.f32 0.125, %v2290_v12  ;;  %v6193_v16 = vld [vmem:[#allocation10_spill] sm:$0xff] }
 0x92f   :  { %v2341_v6 = vsel %vm1151_vm6, %v2311_v17, %v2340_v23  ;;  %v6194_v17 = vmax.f32 %v6193_v16, 0.0 }
 0x930   :  { %v2313_v39 = vmul.f32 0.125, %v2297_v52  ;;  %v2342_v13 = vsel %vm1153_vm7, %v2312_v55, %v2341_v6  ;;  %v3874_v6 = vld [vmem:[%s6145_s3 + $0x28] sm:$0xff]  }
 0x932   :  { %v2343_v40 = vsel %vm1155_vm8, %v2313_v39, %v2342_v13  ;;  %v2473_v13 = vpack.c.bf16 %v5360_v47, %v5356_v0 }
 0x933   :  { %2346 = vrot.lane.b32.xlu1 %v2343_v40, %s4398_s13  ;;  %v2474_v40 = vpack.c.bf16 %v5371_v60, %v5365_v14 }
 0x997   :  { %v2345_v45 = vpop.permute.xlu1 %2344 }
 0x998   :  { %v2350_v32 = vadd.f32 %v2345_v45, %v5105_v33  ;;  %v2475_v45 = vpack.c.bf16 %v5391_v11, %v5381_v19 }
 0x99a   :  { %2354 = vrot.lane.b32.xlu0 %v2350_v32, %s4398_s13 }
 0x9a5   :  { %v2347_v56 = vpop.permute.xlu1 %2346 }
 0x9a6   :  { %v2351_v30 = vadd.f32 %v2347_v56, %v5109_v61  ;;  %v2477_v56 = vpack.c.bf16 %v5375_v1, %v5402_v29 }
 0x9a8   :  { %2356 = vrot.lane.b32.xlu1 %v2351_v30, %s4398_s13 }
 0xa0c   :  { %v2355_v59 = vpop.permute.xlu0 %2354 }
 0xa0d   :  { %v2360_v25 = vsel %vm60_vm1, %v2355_v59, 0.0  ;;  %v2479_v59 = vpack.c.bf16 %v5416_v54, %v5406_v44 }
 0xa0e   :  { %2361 = vadd.xlane.f32.xlu0 %v2360_v25  ;;  %v2480_v25 = vpack.c.bf16 %v5438_v63, %v5425_v51 }
 0xa1a   :  { %v2357_v2 = vpop.permute.xlu1 %2356 }
 0xa1b   :  { %v2363_v35 = vsel %vm60_vm1, %v2357_v2, 0.0 }
 0xa1c   :  { %2364 = vadd.xlane.f32.xlu1 %v2363_v35 }
 0xa9b   :  { %v2362_v38 = vpop.xlane.xlu0 %2361 }
 0xa9c   :  { %v2366_v5 = vmul.f32 0.03125, %v2362_v38 }
 0xa9e   :  { %v2368_v49 = vsub.f32 %v2350_v32, %v2366_v5  ;;  %v2476_v32 = vpack.c.bf16 %v5422_v26, %v5412_v8 }
 0xaa0   :  { %v2370_v22 = vmul.f32 %v2368_v49, %v2368_v49 }
 0xaa2   :  { %2374 = vrot.lane.b32.xlu0 %v2370_v22, %s4398_s13 }
 0xaa9   :  { %v2365_v33 = vpop.xlane.xlu1 %2364 }
 0xaaa   :  { %v2367_v20 = vmul.f32 0.03125, %v2365_v33 }
 0xaac   :  { %v2369_v43 = vsub.f32 %v2351_v30, %v2367_v20  ;;  %v2478_v30 = vpack.c.bf16 %v5394_v27, %v5385_v34 }
 0xaae   :  { %v2371_v61 = vmul.f32 %v2369_v43, %v2369_v43 }
 0xab0   :  { %2376 = vrot.lane.b32.xlu1 %v2371_v61, %s4398_s13 }
 0xb14   :  { %v2375_v21 = vpop.permute.xlu0 %2374 }
 0xb15   :  { %v2380_v46 = vsel %vm60_vm1, %v2375_v21, 0.0 }
 0xb16   :  { %2381 = vadd.xlane.f32.xlu0 %v2380_v46 }
 0xb22   :  { %v2377_v53 = vpop.permute.xlu1 %2376 }
 0xb23   :  { %v2383_v41 = vsel %vm60_vm1, %v2377_v53, 0.0 }
 0xb24   :  { %2384 = vadd.xlane.f32.xlu1 %v2383_v41 }
 0xba3   :  { %v2382_v58 = vpop.xlane.xlu0 %2381 }
 0xba4   :  { %v2386_v7 = vmul.f32 0.03125, %v2382_v58 }
 0xba6   :  { %v2388_v48 = vadd.f32 1e-05, %v2386_v7 }
 0xba8   :  { %4199 = vrsqrt.f32 %v2388_v48 }
 0xbb1   :  { %v2385_v9 = vpop.xlane.xlu1 %2384 }
 0xbb2   :  { %v4200_v18 = vpop.eup %4199  ;;  %v2387_v4 = vmul.f32 0.03125, %v2385_v9 }
 0xbb3   :  { %v2392_v57 = vmul.f32 %v4200_v18, %v2368_v49 }
 0xbb4   :  { %v2389_v24 = vadd.f32 1e-05, %v2387_v4 }
 0xbb5   :  { %2396 = vrot.lane.b32.xlu0 %v2392_v57, %s4398_s13  ;;  %v6196_v57 = vld [vmem:[#allocation7_spill] sm:$0xff] }
 0xbb6   :  { %4201 = vrsqrt.f32 %v2389_v24 }
 0xbc0   :  { %v4202_v10 = vpop.eup %4201 }
 0xbc1   :  { %v2393_v62 = vmul.f32 %v4202_v10, %v2369_v43 }
 0xbc3   :  { %2398 = vrot.lane.b32.xlu1 %v2393_v62, %s4398_s13 }
 0xc27   :  { %v2397_v28 = vpop.permute.xlu0 %2396 }
 0xc28   :  { %v5596_v36 = vadd.f32 %v2397_v28, %v6191_v3 }
 0xc2a   :  { %6192 = vst [vmem:[#allocation9_spill] sm:$0xff] %v5596_v36  ;;  %v6166_v52 = vmax.f32 %v5596_v36, 0.0 }
 0xc35   :  { %v2399_v12 = vpop.permute.xlu1 %2398 }
 0xc36   :  { %v5600_v23 = vadd.f32 %v2399_v12, %v6194_v17 }
 0xc38   :  { %6195 = vst [vmem:[#allocation10_spill] sm:$0xff] %v5600_v23  ;;  %v6165_v55 = vmax.f32 %v5600_v23, 0.0 }
 0xc3a   :  { %v2416_v39 = vpack.c.bf16 %v6165_v55, %v6166_v52 }
 0xc3c   :  { %3827 = vmatmul.mubr.msk.bf16.vlgmr.msra.gmra.mrb[12].mxu1 %vm60_vm1, %v2416_v39 }
 0xc3d   :  { %3831 = vmatpush3.bf16.msra.mxu1 %v3873_v31  ;;  %3834 = vmatprep.mubr.msk.bf16.mxu1 %vm60_vm1, %v2473_v13 }
 0xc3e   :  { %3832 = vmatprep.subr.bf16.mxu1 %v3874_v6 }
 0xc41   :  { %3833 = vmatpush3.bf16.msra.mxu1 %v3874_v6 }
 0xc44   :  { %3835 = vmatmul.mubr.msk.bf16.vlgmr.msra.gmra.mrb[16].mxu1 %vm60_vm1, %v2474_v40 }
 0xc45   :  { %3838 = vmatprep.mubr.msk.bf16.mxu1 %vm60_vm1, %v2475_v45 }
 0xc4c   :  { %3839 = vmatmul.mubr.msk.bf16.gmra.mrb[20].mxu1 %vm60_vm1, %v2476_v32 }
 0xc4d   :  { %3842 = vmatprep.mubr.msk.bf16.mxu1 %vm60_vm1, %v2477_v56 }
 0xc54   :  { %3843 = vmatmul.mubr.msk.bf16.gmra.mrb[24].mxu1 %vm60_vm1, %v2478_v30 }
 0xc55   :  { %3846 = vmatprep.mubr.msk.bf16.mxu1 %vm60_vm1, %v2479_v59 }
 0xc5c   :  { %3847 = vmatmul.mubr.msk.bf16.gmra.mrb[28].mxu1 %vm60_vm1, %v2480_v25 }
 0xd0f   :  { %v5636_v2 = vpop.f32.mrb[12].mxu1 }
 0xd10   :  { %2794 = vrot.lane.b32.xlu0 %v5636_v2, %s4395_s12  ;;  %v3828_v35 = vpop.f32.mrb[13].mxu1  ;;  %v2616_v18 = vcombine.high %v5636_v2, %v5636_v2  ;;  %v2623_v9 = vrot.slane %v5636_v2, %v6196_v57 }
 0xd11   :  { %v5640_v38 = vpop.f32.mrb[14].mxu1  ;;  %v6197_v35 = vld [vmem:[#allocation8_spill] sm:$0xff] }
 0xd12   :  { %2796 = vrot.lane.b32.xlu1 %v5640_v38, %s4395_s12  ;;  %v3829_v5 = vpop.f32.mrb[15].mxu1  ;;  %v2630_v4 = vrot.slane %v2616_v18, %v6196_v57  ;;  %v2665_v24 = vcombine.high %v5640_v38, %v5640_v38  ;;  %v2631_v31 = vcombine.high %v2623_v9, %v2623_v9  ;;  %v2672_v10 = vrot.slane %v5640_v38, %v6196_v57 }
 0xd13   :  { %v2639_v42 = vrot.slane %v2623_v9, %v6196_v57 }
 0xd14   :  { %v2679_v62 = vrot.slane %v2665_v24, %v6196_v57  ;;  %v2632_v28 = vcombine.high %v2630_v4, %v2630_v4  ;;  %v2653_v3 = vrot.slane %v2631_v31, %v6196_v57  ;;  %v2688_v12 = vrot.slane %v2672_v10, %v6196_v57 }
 0xd15   :  { %v2680_v16 = vcombine.high %v2672_v10, %v2672_v10  ;;  %v2646_v17 = vrot.slane %v2630_v4, %v6196_v57  ;;  %v2661_v13 = vcombine.high %v2639_v42, %v2639_v42  ;;  %v2717_v5 = vrot.slane %v2639_v42, %v6197_v35 }
 0xd16   :  { %v2660_v39 = vrot.slane %v2632_v28, %v6196_v57  ;;  %v2681_v6 = vcombine.high %v2679_v62, %v2679_v62  ;;  %v2663_v40 = vcombine.high %v2653_v3, %v2653_v3  ;;  %v2710_v32 = vcombine.high %v2688_v12, %v2688_v12 }
 0xd17   :  { %v5644_v49 = vpop.f32.mrb[16].mxu1  ;;  %v2702_v45 = vrot.slane %v2680_v16, %v6196_v57  ;;  %v2662_v56 = vcombine.high %v2646_v17, %v2646_v17  ;;  %v2695_v30 = vrot.slane %v2679_v62, %v6196_v57  ;;  %v2721_v18 = vrot.slane %v2653_v3, %v6197_v35 }
 0xd18   :  { %v2551_v22 = vpop.f32.mrb[17].mxu1  ;;  %v2664_v59 = vcombine.high %v2660_v39, %v2660_v39  ;;  %v2709_v25 = vrot.slane %v2681_v6, %v6196_v57  ;;  %v2725_v9 = vrot.slane %v2661_v13, %v6197_v35  ;;  %v2749_v4 = vrot.slane %v2688_v12, %v6197_v35 }
 0xd19   :  { %v5646_v33 = vpop.f32.mrb[18].mxu1  ;;  %v2729_v24 = vrot.slane %v2663_v40, %v6197_v35  ;;  %v2733_v31 = vrot.slane %v2646_v17, %v6197_v35  ;;  %v2753_v10 = vrot.slane %v2702_v45, %v6197_v35  ;;  %v2757_v28 = vrot.slane %v2710_v32, %v6197_v35 }
 0xd1a   :  { %v2554_v20 = vpop.f32.mrb[19].mxu1  ;;  %v2737_v62 = vrot.slane %v2660_v39, %v6197_v35  ;;  %v2712_v16 = vcombine.high %v2702_v45, %v2702_v45  ;;  %v2741_v42 = vrot.slane %v2662_v56, %v6197_v35  ;;  %v2745_v3 = vrot.slane %v2664_v59, %v6197_v35 }
 0xd1b   :  { %v2711_v6 = vcombine.high %v2695_v30, %v2695_v30  ;;  %v2713_v13 = vcombine.high %v2709_v25, %v2709_v25 }
 0xd1f   :  { %v5648_v43 = vpop.f32.mrb[20].mxu1 }
 0xd20   :  { %v5650_v61 = vpop.f32.mrb[21].mxu1 }
 0xd21   :  { %v5652_v21 = vpop.f32.mrb[22].mxu1 }
 0xd22   :  { %v5654_v46 = vpop.f32.mrb[23].mxu1 }
 0xd27   :  { %v5656_v53 = vpop.f32.mrb[24].mxu1 }
 0xd28   :  { %v5658_v41 = vpop.f32.mrb[25].mxu1 }
 0xd29   :  { %v5660_v37 = vpop.f32.mrb[26].mxu1 }
 0xd2a   :  { %v5662_v50 = vpop.f32.mrb[27].mxu1 }
 0xd2f   :  { %v5664_v15 = vpop.f32.mrb[28].mxu1 }
 0xd30   :  { %v5666_v58 = vpop.f32.mrb[29].mxu1 }
 0xd31   :  { %v5668_v7 = vpop.f32.mrb[30].mxu1 }
 0xd32   :  { %v5670_v48 = vpop.f32.mrb[31].mxu1 }
 0xd82   :  { %v2795_v57 = vpop.permute.xlu0 %2794 }
 0xd83   :  { %v2800_v55 = vadd.f32 %v2795_v57, %v2717_v5  ;;  %v2801_v12 = vadd.f32 %v2795_v57, %v2721_v18  ;;  %v2802_v52 = vadd.f32 %v2795_v57, %v2725_v9  ;;  %v2803_v40 = vadd.f32 %v2795_v57, %v2729_v24 }
 0xd84   :  { %v2797_v23 = vpop.permute.xlu1 %2796  ;;  %v2804_v17 = vadd.f32 %v2795_v57, %v2733_v31  ;;  %v2805_v36 = vadd.f32 %v2795_v57, %v2737_v62  ;;  %v2806_v63 = vadd.f32 %v2795_v57, %v2741_v42  ;;  %v2807_v51 = vadd.f32 %v2795_v57, %v2745_v3 }
 0xd85   :  { %v5701_v32 = vadd.f32 %v2800_v55, %v2551_v22  ;;  %v5703_v39 = vadd.f32 %v2801_v12, %v2554_v20  ;;  %v5706_v45 = vadd.f32 %v5644_v49, %v2802_v52  ;;  %v2808_v56 = vadd.f32 %v2797_v23, %v2749_v4 }
 0xd86   :  { %v5709_v59 = vadd.f32 %v5646_v33, %v2803_v40  ;;  %v2809_v5 = vadd.f32 %v2797_v23, %v2753_v10  ;;  %v5712_v18 = vadd.f32 %v2804_v17, %v5650_v61  ;;  %v2810_v9 = vadd.f32 %v2797_v23, %v2757_v28 }
 0xd87   :  { %v2832_v24 = vsel %vm60_vm1, %v5701_v32, 0.0  ;;  %v2835_v55 = vsel %vm60_vm1, %v5703_v39, 0.0  ;;  %v5719_v22 = vadd.f32 %v2808_v56, %v5658_v41  ;;  %v2761_v52 = vrot.slane %v2712_v16, %v6197_v35 }
 0xd88   :  { %2833 = vadd.xlane.f32.xlu0 %v2832_v24  ;;  %2836 = vadd.xlane.f32.xlu1 %v2835_v55  ;;  %v5723_v49 = vadd.f32 %v2809_v5, %v5662_v50  ;;  %v5726_v33 = vadd.f32 %v5656_v53, %v2810_v9  ;;  %v2765_v20 = vrot.slane %v2695_v30, %v6197_v35  ;;  %v2838_v30 = vsel %vm60_vm1, %v5706_v45, 0.0 }
 0xd89   :  { %v5730_v61 = vadd.f32 %v2805_v36, %v5654_v46  ;;  %v2811_v4 = vadd.f32 %v2797_v23, %v2761_v52  ;;  %v5733_v31 = vadd.f32 %v5648_v43, %v2806_v63  ;;  %v2769_v41 = vrot.slane %v2709_v25, %v6197_v35 }
 0xd8a   :  { %v2812_v10 = vadd.f32 %v2797_v23, %v2765_v20  ;;  %v5737_v28 = vadd.f32 %v5652_v21, %v2807_v51  ;;  %v2773_v50 = vrot.slane %v2711_v6, %v6197_v35  ;;  %v2777_v53 = vrot.slane %v2713_v13, %v6197_v35 }
 0xd8b   :  { %v2856_v36 = vsel %vm60_vm1, %v5719_v22, 0.0  ;;  %v5746_v46 = vadd.f32 %v5660_v37, %v2811_v4  ;;  %v2813_v63 = vadd.f32 %v2797_v23, %v2769_v41  ;;  %v2841_v37 = vsel %vm60_vm1, %v5709_v59, 0.0 }
 0xd8c   :  { %2839 = vadd.xlane.f32.xlu1 %v2838_v30  ;;  %2857 = vadd.xlane.f32.xlu0 %v2856_v36  ;;  %v5749_v43 = vadd.f32 %v2812_v10, %v5666_v58  ;;  %v2814_v51 = vadd.f32 %v2797_v23, %v2773_v50  ;;  %v2815_v21 = vadd.f32 %v2797_v23, %v2777_v53  ;;  %v2859_v16 = vsel %vm60_vm1, %v5723_v49, 0.0 }
 0xd8d   :  { %v5752_v25 = vadd.f32 %v2813_v63, %v5670_v48  ;;  %v2844_v23 = vsel %vm60_vm1, %v5712_v18, 0.0  ;;  %v2862_v58 = vsel %vm60_vm1, %v5726_v33, 0.0  ;;  %v2850_v48 = vsel %vm60_vm1, %v5733_v31, 0.0 }
 0xd8e   :  { %v5755_v35 = vadd.f32 %v5664_v15, %v2814_v51  ;;  %v5758_v62 = vadd.f32 %v5668_v7, %v2815_v21  ;;  %v2847_v15 = vsel %vm60_vm1, %v5730_v61, 0.0  ;;  %v2865_v7 = vsel %vm60_vm1, %v5746_v46, 0.0 }
 0xd8f   :  { %v2868_v57 = vsel %vm60_vm1, %v5749_v43, 0.0  ;;  %v2853_v42 = vsel %vm60_vm1, %v5737_v28, 0.0  ;;  %v2871_v3 = vsel %vm60_vm1, %v5752_v25, 0.0 }
 0xd90   :  { %2842 = vadd.xlane.f32.xlu1 %v2841_v37  ;;  %2860 = vadd.xlane.f32.xlu0 %v2859_v16  ;;  %v2874_v6 = vsel %vm60_vm1, %v5755_v35, 0.0  ;;  %v2877_v13 = vsel %vm60_vm1, %v5758_v62, 0.0 }
 0xd94   :  { %2845 = vadd.xlane.f32.xlu1 %v2844_v23  ;;  %2863 = vadd.xlane.f32.xlu0 %v2862_v58 }
 0xd98   :  { %2848 = vadd.xlane.f32.xlu1 %v2847_v15  ;;  %2866 = vadd.xlane.f32.xlu0 %v2865_v7 }
 0xd9c   :  { %2851 = vadd.xlane.f32.xlu1 %v2850_v48  ;;  %2869 = vadd.xlane.f32.xlu0 %v2868_v57 }
 0xda0   :  { %2854 = vadd.xlane.f32.xlu1 %v2853_v42  ;;  %2872 = vadd.xlane.f32.xlu0 %v2871_v3 }
 0xda4   :  { %2875 = vadd.xlane.f32.xlu0 %v2874_v6 }
 0xda8   :  { %2878 = vadd.xlane.f32.xlu0 %v2877_v13 }
 0xe15   :  { %v2834_v12 = vpop.xlane.xlu0 %2833  ;;  %v2837_v40 = vpop.xlane.xlu1 %2836 }
 0xe16   :  { %v2880_v17 = vmul.f32 0.03125, %v2834_v12  ;;  %v2881_v56 = vmul.f32 0.03125, %v2837_v40 }
 0xe18   :  { %v5785_v5 = vsub.f32 %v5701_v32, %v2880_v17  ;;  %v5788_v9 = vsub.f32 %v5703_v39, %v2881_v56 }
 0xe19   :  { %v2840_v24 = vpop.xlane.xlu1 %2839  ;;  %v2858_v55 = vpop.xlane.xlu0 %2857 }
 0xe1a   :  { %v2882_v52 = vmul.f32 0.03125, %v2840_v24  ;;  %v2912_v20 = vmul.f32 %v5785_v5, %v5785_v5  ;;  %v2913_v4 = vmul.f32 %v5788_v9, %v5788_v9  ;;  %v2888_v7 = vmul.f32 0.03125, %v2858_v55 }
 0xe1c   :  { %v5795_v41 = vsub.f32 %v5706_v45, %v2882_v52  ;;  %v2928_v10 = vsel %vm60_vm1, %v2912_v20, 0.0  ;;  %v2931_v32 = vsel %vm60_vm1, %v2913_v4, 0.0  ;;  %v5825_v40 = vsub.f32 %v5719_v22, %v2888_v7 }
 0xe1d   :  { %v2843_v50 = vpop.xlane.xlu1 %2842  ;;  %2929 = vadd.xlane.f32.xlu1 %v2928_v10  ;;  %v2861_v39 = vpop.xlane.xlu0 %2860  ;;  %2932 = vadd.xlane.f32.xlu0 %v2931_v32 }
 0xe1e   :  { %v2883_v53 = vmul.f32 0.03125, %v2843_v50  ;;  %v2889_v30 = vmul.f32 0.03125, %v2861_v39  ;;  %v2914_v36 = vmul.f32 %v5795_v41, %v5795_v41 }
 0xe20   :  { %v5802_v63 = vsub.f32 %v5709_v59, %v2883_v53  ;;  %v5805_v51 = vsub.f32 %v5723_v49, %v2889_v30  ;;  %v2934_v45 = vsel %vm60_vm1, %v2914_v36, 0.0 }
 0xe21   :  { %v2846_v21 = vpop.xlane.xlu1 %2845  ;;  %2935 = vadd.xlane.f32.xlu1 %v2934_v45  ;;  %v2864_v37 = vpop.xlane.xlu0 %2863 }
 0xe22   :  { %v2884_v16 = vmul.f32 0.03125, %v2846_v21  ;;  %v2890_v23 = vmul.f32 0.03125, %v2864_v37  ;;  %v2915_v58 = vmul.f32 %v5802_v63, %v5802_v63  ;;  %v2921_v15 = vmul.f32 %v5805_v51, %v5805_v51 }
 0xe24   :  { %v5813_v59 = vsub.f32 %v5712_v18, %v2884_v16  ;;  %v5816_v49 = vsub.f32 %v5726_v33, %v2890_v23  ;;  %v2937_v48 = vsel %vm60_vm1, %v2915_v58, 0.0  ;;  %v2955_v57 = vsel %vm60_vm1, %v2921_v15, 0.0 }
 0xe25   :  { %2938 = vadd.xlane.f32.xlu1 %v2937_v48  ;;  %v2849_v42 = vpop.xlane.xlu1 %2848  ;;  %v2867_v3 = vpop.xlane.xlu0 %2866  ;;  %2956 = vadd.xlane.f32.xlu0 %v2955_v57 }
 0xe26   :  { %v2885_v6 = vmul.f32 0.03125, %v2849_v42  ;;  %v2891_v13 = vmul.f32 0.03125, %v2867_v3  ;;  %v2916_v12 = vmul.f32 %v5813_v59, %v5813_v59  ;;  %v2922_v18 = vmul.f32 %v5816_v49, %v5816_v49 }
 0xe28   :  { %v5828_v33 = vsub.f32 %v5730_v61, %v2885_v6  ;;  %v5831_v17 = vsub.f32 %v5746_v46, %v2891_v13  ;;  %v2940_v56 = vsel %vm60_vm1, %v2916_v12, 0.0  ;;  %v2958_v24 = vsel %vm60_vm1, %v2922_v18, 0.0 }
 0xe29   :  { %2941 = vadd.xlane.f32.xlu1 %v2940_v56  ;;  %v2852_v55 = vpop.xlane.xlu1 %2851  ;;  %v2870_v52 = vpop.xlane.xlu0 %2869  ;;  %2959 = vadd.xlane.f32.xlu0 %v2958_v24  ;;  %v2920_v46 = vmul.f32 %v5825_v40, %v5825_v40 }
 0xe2a   :  { %v2886_v20 = vmul.f32 0.03125, %v2852_v55  ;;  %v2892_v4 = vmul.f32 0.03125, %v2870_v52  ;;  %v2917_v22 = vmul.f32 %v5828_v33, %v5828_v33  ;;  %v2923_v61 = vmul.f32 %v5831_v17, %v5831_v17 }
 0xe2b   :  { %v2952_v37 = vsel %vm60_vm1, %v2920_v46, 0.0 }
 0xe2c   :  { %v5842_v10 = vsub.f32 %v5733_v31, %v2886_v20  ;;  %v5845_v32 = vsub.f32 %v5749_v43, %v2892_v4  ;;  %v2943_v50 = vsel %vm60_vm1, %v2917_v22, 0.0  ;;  %v2961_v39 = vsel %vm60_vm1, %v2923_v61, 0.0 }
 0xe2d   :  { %2944 = vadd.xlane.f32.xlu1 %v2943_v50  ;;  %v2855_v53 = vpop.xlane.xlu1 %2854  ;;  %2962 = vadd.xlane.f32.xlu0 %v2961_v39  ;;  %v2873_v30 = vpop.xlane.xlu0 %2872 }
 0xe2e   :  { %v2887_v36 = vmul.f32 0.03125, %v2855_v53  ;;  %v2893_v45 = vmul.f32 0.03125, %v2873_v30  ;;  %v2924_v21 = vmul.f32 %v5845_v32, %v5845_v32  ;;  %v2918_v23 = vmul.f32 %v5842_v10, %v5842_v10 }
 0xe30   :  { %v5853_v31 = vsub.f32 %v5737_v28, %v2887_v36  ;;  %v5856_v43 = vsub.f32 %v5752_v25, %v2893_v45  ;;  %v2964_v16 = vsel %vm60_vm1, %v2924_v21, 0.0  ;;  %v2946_v28 = vsel %vm60_vm1, %v2918_v23, 0.0 }
 0xe31   :  { %2953 = vadd.xlane.f32.xlu1 %v2952_v37  ;;  %2965 = vadd.xlane.f32.xlu0 %v2964_v16  ;;  %v2876_v58 = vpop.xlane.xlu0 %2875 }
 0xe32   :  { %v2894_v15 = vmul.f32 0.03125, %v2876_v58  ;;  %v2925_v7 = vmul.f32 %v5856_v43, %v5856_v43  ;;  %v2919_v57 = vmul.f32 %v5853_v31, %v5853_v31 }
 0xe34   :  { %v5864_v48 = vsub.f32 %v5755_v35, %v2894_v15  ;;  %v2967_v25 = vsel %vm60_vm1, %v2925_v7, 0.0  ;;  %v2949_v35 = vsel %vm60_vm1, %v2919_v57, 0.0 }
 0xe35   :  { %2947 = vadd.xlane.f32.xlu1 %v2946_v28  ;;  %2968 = vadd.xlane.f32.xlu0 %v2967_v25  ;;  %v2879_v42 = vpop.xlane.xlu0 %2878 }
 0xe36   :  { %v2895_v3 = vmul.f32 0.03125, %v2879_v42  ;;  %v2926_v6 = vmul.f32 %v5864_v48, %v5864_v48 }
 0xe38   :  { %v5873_v13 = vsub.f32 %v5758_v62, %v2895_v3  ;;  %v2970_v12 = vsel %vm60_vm1, %v2926_v6, 0.0 }
 0xe39   :  { %2950 = vadd.xlane.f32.xlu1 %v2949_v35  ;;  %2971 = vadd.xlane.f32.xlu0 %v2970_v12 }
 0xe3a   :  { %v2927_v18 = vmul.f32 %v5873_v13, %v5873_v13 }
 0xe3c   :  { %v2973_v56 = vsel %vm60_vm1, %v2927_v18, 0.0 }
 0xe3d   :  { %2974 = vadd.xlane.f32.xlu0 %v2973_v56 }
 0xe4a   :  { %3344 = vrot.lane.b32.xlu1 %v5636_v2, %s4397_s1 }
 0xe53   :  { %3346 = vrot.lane.b32.xlu0 %v5640_v38, %s4397_s1 }
 0xeaa   :  { %v2930_v62 = vpop.xlane.xlu1 %2929  ;;  %v2933_v24 = vpop.xlane.xlu0 %2932 }
 0xeab   :  { %v2976_v55 = vmul.f32 0.03125, %v2930_v62  ;;  %v2977_v52 = vmul.f32 0.03125, %v2933_v24 }
 0xead   :  { %v2992_v20 = vadd.f32 1e-05, %v2976_v55  ;;  %v2993_v4 = vadd.f32 1e-05, %v2977_v52 }
 0xeae   :  { %v2936_v22 = vpop.xlane.xlu1 %2935 }
 0xeaf   :  { %4203 = vrsqrt.f32 %v2992_v20  ;;  %v2978_v61 = vmul.f32 0.03125, %v2936_v22 }
 0xeb0   :  { %4205 = vrsqrt.f32 %v2993_v4 }
 0xeb1   :  { %v2994_v46 = vadd.f32 1e-05, %v2978_v61 }
 0xeb2   :  { %v2939_v50 = vpop.xlane.xlu1 %2938  ;;  %v2957_v39 = vpop.xlane.xlu0 %2956 }
 0xeb3   :  { %4207 = vrsqrt.f32 %v2994_v46  ;;  %v2979_v53 = vmul.f32 0.03125, %v2939_v50  ;;  %v2985_v30 = vmul.f32 0.03125, %v2957_v39 }
 0xeb5   :  { %v2995_v36 = vadd.f32 1e-05, %v2979_v53  ;;  %v3001_v45 = vadd.f32 1e-05, %v2985_v30 }
 0xeb6   :  { %v2942_v21 = vpop.xlane.xlu1 %2941  ;;  %v2960_v37 = vpop.xlane.xlu0 %2959 }
 0xeb7   :  { %4209 = vrsqrt.f32 %v2995_v36  ;;  %v2980_v16 = vmul.f32 0.03125, %v2942_v21  ;;  %v2986_v23 = vmul.f32 0.03125, %v2960_v37 }
 0xeb8   :  { %4211 = vrsqrt.f32 %v3001_v45 }
 0xeb9   :  { %v4204_v58 = vpop.eup %4203  ;;  %v2996_v15 = vadd.f32 1e-05, %v2980_v16  ;;  %v3002_v7 = vadd.f32 1e-05, %v2986_v23 }
 0xeba   :  { %v4206_v28 = vpop.eup %4205  ;;  %v3024_v25 = vmul.f32 %v4204_v58, %v5785_v5  ;;  %v2945_v57 = vpop.xlane.xlu1 %2944 }
 0xebb   :  { %v2963_v42 = vpop.xlane.xlu0 %2962  ;;  %v3025_v3 = vmul.f32 %v4206_v28, %v5788_v9  ;;  %4213 = vrsqrt.f32 %v2996_v15  ;;  %v2981_v6 = vmul.f32 0.03125, %v2945_v57 }
 0xebc   :  { %v2987_v35 = vmul.f32 0.03125, %v2963_v42  ;;  %v3040_v12 = vmax.f32 %v3024_v25, 0.0  ;;  %4215 = vrsqrt.f32 %v3002_v7 }
 0xebd   :  { %v4208_v18 = vpop.eup %4207  ;;  %v3041_v56 = vmax.f32 %v3025_v3, 0.0  ;;  %v2997_v62 = vadd.f32 1e-05, %v2981_v6 }
 0xebe   :  { %v3003_v24 = vadd.f32 1e-05, %v2987_v35  ;;  %v3056_v55 = vadd.f32 %v3040_v12, %v5356_v0  ;;  %v3026_v52 = vmul.f32 %v4208_v18, %v5795_v41  ;;  %v2954_v20 = vpop.xlane.xlu1 %2953 }
 0xebf   :  { %v2966_v4 = vpop.xlane.xlu0 %2965  ;;  %v3057_v5 = vadd.f32 %v3041_v56, %v5360_v47  ;;  %4217 = vrsqrt.f32 %v2997_v62  ;;  %v2984_v22 = vmul.f32 0.03125, %v2954_v20 }
 0xec0   :  { %v2988_v9 = vmul.f32 0.03125, %v2966_v4  ;;  %v3711_v61 = vmul.f32 -1.442695, %v3056_v55  ;;  %3588 = vst.msk [vmem:[%s6147_s5] sm:$0xff] %vm60_vm1, %v3056_v55  ;;  %v3042_v46 = vmax.f32 %v3026_v52, 0.0  ;;  %4219 = vrsqrt.f32 %v3003_v24 }
 0xec1   :  { %v4210_v50 = vpop.eup %4209  ;;  %v3712_v39 = vmul.f32 -1.442695, %v3057_v5  ;;  %3589 = vst.msk [vmem:[%s6147_s5 + $0x8] sm:$0xff] %vm60_vm1, %v3057_v5  ;;  %v3000_v0 = vadd.f32 1e-05, %v2984_v22 }
 0xec2   :  { %v3004_v47 = vadd.f32 1e-05, %v2988_v9  ;;  %v4212_v41 = vpop.eup %4211  ;;  %4221 = vpow2.f32 %v3711_v61  ;;  %v3058_v53 = vadd.f32 %v3042_v46, %v5365_v14  ;;  %v3027_v30 = vmul.f32 %v4210_v50, %v5802_v63  ;;  %v2948_v36 = vpop.xlane.xlu1 %2947 }
 0xec3   :  { %v2969_v45 = vpop.xlane.xlu0 %2968  ;;  %4223 = vpow2.f32 %v3712_v39  ;;  %v3033_v21 = vmul.f32 %v4212_v41, %v5805_v51  ;;  %v2982_v37 = vmul.f32 0.03125, %v2948_v36 }
 0xec4   :  { %v2989_v16 = vmul.f32 0.03125, %v2969_v45  ;;  %v3713_v23 = vmul.f32 -1.442695, %v3058_v53  ;;  %3590 = vst.msk [vmem:[%s6147_s5 + $0x10] sm:$0xff] %vm60_vm1, %v3058_v53  ;;  %v3043_v58 = vmax.f32 %v3027_v30, 0.0  ;;  %4225 = vrsqrt.f32 %v3000_v0 }
 0xec5   :  { %v4214_v15 = vpop.eup %4213  ;;  %v3049_v7 = vmax.f32 %v3033_v21, 0.0  ;;  %4227 = vrsqrt.f32 %v3004_v47  ;;  %v2998_v14 = vadd.f32 1e-05, %v2982_v37 }
 0xec6   :  { %v3005_v63 = vadd.f32 1e-05, %v2989_v16  ;;  %v4216_v28 = vpop.eup %4215  ;;  %4229 = vpow2.f32 %v3713_v23  ;;  %v3059_v25 = vadd.f32 %v3043_v58, %v5371_v60  ;;  %v3028_v51 = vmul.f32 %v4214_v15, %v5813_v59  ;;  %v2951_v57 = vpop.xlane.xlu1 %2950 }
 0xec7   :  { %v2972_v42 = vpop.xlane.xlu0 %2971  ;;  %v3065_v3 = vadd.f32 %v3049_v7, %v5375_v1  ;;  %v3034_v6 = vmul.f32 %v4216_v28, %v5816_v49  ;;  %4231 = vrsqrt.f32 %v2998_v14  ;;  %v2983_v35 = vmul.f32 0.03125, %v2951_v57 }
 0xec8   :  { %v3714_v12 = vmul.f32 -1.442695, %v3059_v25  ;;  %3591 = vst.msk [vmem:[%s6147_s5 + $0x18] sm:$0xff] %vm60_vm1, %v3059_v25  ;;  %v3044_v18 = vmax.f32 %v3028_v51, 0.0  ;;  %4233 = vrsqrt.f32 %v3005_v63  ;;  %v2990_v56 = vmul.f32 0.03125, %v2972_v42 }
 0xec9   :  { %v4218_v60 = vpop.eup %4217  ;;  %v3720_v62 = vmul.f32 -1.442695, %v3065_v3  ;;  %3597 = vst.msk [vmem:[%s6147_s5 + $0x48] sm:$0xff] %vm60_vm1, %v3065_v3  ;;  %v3050_v1 = vmax.f32 %v3034_v6, 0.0  ;;  %v2999_v59 = vadd.f32 1e-05, %v2983_v35 }
 0xeca   :  { %v4220_v49 = vpop.eup %4219  ;;  %4235 = vpow2.f32 %v3714_v12  ;;  %v3060_v24 = vadd.f32 %v3044_v18, %v5381_v19  ;;  %v3029_v55 = vmul.f32 %v4218_v60, %v5828_v33  ;;  %v3006_v52 = vadd.f32 1e-05, %v2990_v56 }
 0xecb   :  { %v2975_v20 = vpop.xlane.xlu0 %2974  ;;  %4237 = vpow2.f32 %v3720_v62  ;;  %v3066_v4 = vadd.f32 %v3050_v1, %v5385_v34  ;;  %v3035_v5 = vmul.f32 %v4220_v49, %v5831_v17 }
 0xecc   :  { %v4222_v22 = vpop.eup %4221  ;;  %v3715_v9 = vmul.f32 -1.442695, %v3060_v24  ;;  %3592 = vst.msk [vmem:[%s6147_s5 + $0x20] sm:$0xff] %vm60_vm1, %v3060_v24  ;;  %v3045_v61 = vmax.f32 %v3029_v55, 0.0  ;;  %4239 = vrsqrt.f32 %v2999_v59  ;;  %v2991_v46 = vmul.f32 0.03125, %v2975_v20  ;;  %v6198_v24 = vld [vmem:[#allocation5_spill] sm:$0xff] }
 0xecd   :  { %v4224_v19 = vpop.eup %4223  ;;  %v3120_v50 = vadd.f32 1.0, %v4222_v22  ;;  %v3721_v33 = vmul.f32 -1.442695, %v3066_v4  ;;  %3598 = vst.msk [vmem:[%s6147_s5 + $0x50] sm:$0xff] %vm60_vm1, %v3066_v4  ;;  %v3051_v34 = vmax.f32 %v3035_v5, 0.0  ;;  %4241 = vrsqrt.f32 %v3006_v52 }
 0xece   :  { %v4226_v17 = vpop.eup %4225  ;;  %v3121_v39 = vadd.f32 1.0, %v4224_v19  ;;  %4243 = vpow2.f32 %v3715_v9  ;;  %v3061_v0 = vadd.f32 %v3045_v61, %v5391_v11  ;;  %v3007_v21 = vadd.f32 1e-05, %v2991_v46 }
 0xecf   :  { %v4228_v47 = vpop.eup %4227  ;;  %4245 = vrcp.f32 %v3120_v50  ;;  %v3067_v41 = vadd.f32 %v3051_v34, %v5394_v27  ;;  %v3032_v53 = vmul.f32 %v4226_v17, %v5825_v40 }
 0xed0   :  { %v4230_v30 = vpop.eup %4229  ;;  %4247 = vrcp.f32 %v3121_v39  ;;  %v3716_v36 = vmul.f32 -1.442695, %v3061_v0  ;;  %3593 = vst.msk [vmem:[%s6147_s5 + $0x28] sm:$0xff] %vm60_vm1, %v3061_v0  ;;  %v3036_v45 = vmul.f32 %v4228_v47, %v5845_v32 }
 0xed1   :  { %v4232_v37 = vpop.eup %4231  ;;  %v3122_v16 = vadd.f32 1.0, %v4230_v30  ;;  %4249 = vpow2.f32 %v3721_v33  ;;  %v3722_v11 = vmul.f32 -1.442695, %v3067_v41  ;;  %3599 = vst.msk [vmem:[%s6147_s5 + $0x58] sm:$0xff] %vm60_vm1, %v3067_v41  ;;  %v3048_v27 = vmax.f32 %v3032_v53, 0.0  ;;  %v6199_v41 = vld [vmem:[#allocation6_spill] sm:$0xff] }
 0xed2   :  { %v4234_v40 = vpop.eup %4233  ;;  %4251 = vpow2.f32 %v3716_v36  ;;  %v3052_v23 = vmax.f32 %v3036_v45, 0.0  ;;  %v3030_v58 = vmul.f32 %v4232_v37, %v5842_v10 }
 0xed3   :  { %4253 = vrcp.f32 %v3122_v16  ;;  %v3064_v15 = vadd.f32 %v3048_v27, %v5402_v29  ;;  %v3037_v32 = vmul.f32 %v4234_v40, %v5856_v43 }
 0xed4   :  { %v4236_v7 = vpop.eup %4235  ;;  %4255 = vpow2.f32 %v3722_v11  ;;  %v3068_v14 = vadd.f32 %v3052_v23, %v5406_v44  ;;  %v3046_v63 = vmax.f32 %v3030_v58, 0.0 }
 0xed5   :  { %v4238_v28 = vpop.eup %4237  ;;  %v3123_v25 = vadd.f32 1.0, %v4236_v7  ;;  %v3719_v51 = vmul.f32 -1.442695, %v3064_v15  ;;  %3596 = vst.msk [vmem:[%s6147_s5 + $0x40] sm:$0xff] %vm60_vm1, %v3064_v15  ;;  %v3053_v57 = vmax.f32 %v3037_v32, 0.0  ;;  %4257 = vrsqrt.f32 %v3007_v21 }
 0xed6   :  { %v4240_v10 = vpop.eup %4239  ;;  %v3129_v42 = vadd.f32 1.0, %v4238_v28  ;;  %v3723_v29 = vmul.f32 -1.442695, %v3068_v14  ;;  %3600 = vst.msk [vmem:[%s6147_s5 + $0x60] sm:$0xff] %vm60_vm1, %v3068_v14  ;;  %v3062_v44 = vadd.f32 %v3046_v63, %v5412_v8 }
 0xed7   :  { %v4242_v43 = vpop.eup %4241  ;;  %4259 = vrcp.f32 %v3123_v25  ;;  %v3069_v3 = vadd.f32 %v3053_v57, %v5416_v54  ;;  %v3031_v6 = vmul.f32 %v4240_v10, %v5853_v31 }
 0xed8   :  { %v4244_v35 = vpop.eup %4243  ;;  %4261 = vrcp.f32 %v3129_v42  ;;  %3594 = vst.msk [vmem:[%s6147_s5 + $0x30] sm:$0xff] %vm60_vm1, %v3062_v44  ;;  %v3038_v12 = vmul.f32 %v4242_v43, %v5864_v48  ;;  %v3717_v22 = vmul.f32 -1.442695, %v3062_v44 }
 0xed9   :  { %v4246_v18 = vpop.eup %4245  ;;  %v3124_v56 = vadd.f32 1.0, %v4244_v35  ;;  %4263 = vpow2.f32 %v3719_v51  ;;  %3601 = vst.msk [vmem:[%s6147_s5 + $0x68] sm:$0xff] %vm60_vm1, %v3069_v3  ;;  %v3047_v8 = vmax.f32 %v3031_v6, 0.0  ;;  %v3724_v61 = vmul.f32 -1.442695, %v3069_v3 }
 0xeda   :  { %v4248_v54 = vpop.eup %4247  ;;  %v3168_v31 = vmul.f32 1.442695, %v4246_v18  ;;  %4265 = vpow2.f32 %v3723_v29  ;;  %v3054_v60 = vmax.f32 %v3038_v12, 0.0 }
 0xedb   :  { %v4250_v62 = vpop.eup %4249  ;;  %v3170_v1 = vmul.f32 1.442695, %v4248_v54  ;;  %4267 = vrcp.f32 %v3124_v56  ;;  %v3063_v59 = vadd.f32 %v3047_v8, %v5422_v26 }
 0xedc   :  { %v4252_v49 = vpop.eup %4251  ;;  %4269 = vpow2.f32 %v3168_v31  ;;  %v3130_v48 = vadd.f32 1.0, %v4250_v62  ;;  %v3070_v55 = vadd.f32 %v3054_v60, %v6198_v24 }
 0xedd   :  { %v4254_v52 = vpop.eup %4253  ;;  %4271 = vpow2.f32 %v3170_v1  ;;  %v3125_v20 = vadd.f32 1.0, %v4252_v49  ;;  %3595 = vst.msk [vmem:[%s6147_s5 + $0x38] sm:$0xff] %vm60_vm1, %v3063_v59  ;;  %v3718_v45 = vmul.f32 -1.442695, %v3063_v59 }
 0xede   :  { %v4256_v4 = vpop.eup %4255  ;;  %v3172_v5 = vmul.f32 1.442695, %v4254_v52  ;;  %4273 = vrcp.f32 %v3130_v48  ;;  %3602 = vst.msk [vmem:[%s6147_s5 + $0x70] sm:$0xff] %vm60_vm1, %v3070_v55  ;;  %v3725_v37 = vmul.f32 -1.442695, %v3070_v55 }
 0xedf   :  { %v4258_v26 = vpop.eup %4257  ;;  %4275 = vrcp.f32 %v3125_v20  ;;  %v3131_v9 = vadd.f32 1.0, %v4256_v4 }
 0xee0   :  { %4277 = vpow2.f32 %v3172_v5  ;;  %v3039_v46 = vmul.f32 %v4258_v26, %v5873_v13 }
 0xee1   :  { %v4260_v19 = vpop.eup %4259  ;;  %4279 = vrcp.f32 %v3131_v9 }
 0xee2   :  { %v4262_v50 = vpop.eup %4261  ;;  %v3174_v33 = vmul.f32 1.442695, %v4260_v19  ;;  %4281 = vpow2.f32 %v3717_v22  ;;  %v3055_v34 = vmax.f32 %v3039_v46, 0.0 }
 0xee3   :  { %v4264_v17 = vpop.eup %4263  ;;  %v3186_v39 = vmul.f32 1.442695, %v4262_v50  ;;  %4283 = vpow2.f32 %v3724_v61 }
 0xee4   :  { %v4266_v0 = vpop.eup %4265  ;;  %4285 = vpow2.f32 %v3174_v33  ;;  %v3128_v47 = vadd.f32 1.0, %v4264_v17  ;;  %v3071_v53 = vadd.f32 %v3055_v34, %v6199_v41 }
 0xee5   :  { %v4268_v30 = vpop.eup %4267  ;;  %4287 = vpow2.f32 %v3186_v39  ;;  %v3132_v36 = vadd.f32 1.0, %v4266_v0 }
 0xee6   :  { %v5976_v21 = vpop.eup %4269  ;;  %v3176_v13 = vmul.f32 1.442695, %v4268_v30  ;;  %4289 = vrcp.f32 %v3128_v47  ;;  %3603 = vst.msk [vmem:[%s6147_s5 + $0x78] sm:$0xff] %vm60_vm1, %v3071_v53  ;;  %v3726_v6 = vmul.f32 -1.442695, %v3071_v53  ;;  %s4399_s5 = smov [#allocation2]  }
 0xee7   :  { %v5982_v16 = vpop.eup %4271  ;;  %v3200_v11 = vsel %vm60_vm1, %v5976_v21, 0.0  ;;  %4291 = vrcp.f32 %v3132_v36  ;;  %s3609_s10 = sshll.u32 %s4399_s5, 4  ;;  %s3610_s10 = int_to_ptr.vmem [resolvable:$true] %s3609_s10 }
 0xee8   :  { %v4274_v27 = vpop.eup %4273  ;;  %v3201_v40 = vrot.slane %v3200_v11, 4  ;;  %v3207_v23 = vsel %vm60_vm1, %v5982_v16, 0.0  ;;  %4293 = vpow2.f32 %v3176_v13  ;;  %s4369_s11 = scalar_lea.vmem %s3610_s10, 256  ;;  %p4374_p1 = scmp.lt.s32.totalorder %s3610_s10, %s3610_s10 }
 0xee9   :  { %v4276_v58 = vpop.eup %4275  ;;  %v3208_v15 = vrot.slane %v3207_v23, 4  ;;  %v3188_v32 = vmul.f32 1.442695, %v4274_v27  ;;  %4295 = vpow2.f32 %v3718_v45  ;;  %p4370_p0 = scmp.ne.s32.totalorder %s3610_s10, %s4369_s11  ;;  %p4375_p2 = scmp.lt.s32.totalorder %s4369_s11, %s4369_s11 }
 0xeea   :  { %v5988_v7 = vpop.eup %4277  ;;  %v3202_v14 = vadd.f32 %v3201_v40, %v3200_v11  ;;  %v3178_v63 = vmul.f32 1.442695, %v4276_v58  ;;  %4297 = vpow2.f32 %v3725_v37 }
 0xeeb   :  { %v4280_v28 = vpop.eup %4279  ;;  %v3209_v25 = vadd.f32 %v3208_v15, %v3207_v23  ;;  %v3214_v51 = vsel %vm60_vm1, %v5988_v7, 0.0  ;;  %4299 = vpow2.f32 %v3188_v32  ;;  %p4376_p3 = por %p4375_p2, %p4374_p1 }
 0xeec   :  { %v4282_v57 = vpop.eup %4281  ;;  %v3215_v10 = vrot.slane %v3214_v51, 4  ;;  %4301 = vpow2.f32 %v3178_v63  ;;  %v3190_v42 = vmul.f32 1.442695, %v4280_v28  ;;  %v3203_v29 = vrot.slane %v3202_v14, 2 }
 0xeed   :  { %v4284_v44 = vpop.eup %4283  ;;  %v3126_v43 = vadd.f32 1.0, %v4282_v57  ;;  %v3210_v3 = vrot.slane %v3209_v25, 2  ;;  %p4377_p4 = pnand %p4376_p3, %p4370_p0 }
 0xeee   :  { %v5992_v35 = vpop.eup %4285  ;;  %v3216_v12 = vadd.f32 %v3215_v10, %v3214_v51  ;;  %4303 = vpow2.f32 %v3190_v42  ;;  %v3133_v18 = vadd.f32 1.0, %v4284_v44  ;;  %v3204_v56 = vadd.f32 %v3203_v29, %v3202_v14 }
 0xeef   :  { %v5994_v8 = vpop.eup %4287  ;;  %v3221_v54 = vsel %vm60_vm1, %v5992_v35, 0.0  ;;  %4305 = vrcp.f32 %v3126_v43  ;;  %v3211_v31 = vadd.f32 %v3210_v3, %v3209_v25 }
 0xef0   :  { %v4290_v60 = vpop.eup %4289  ;;  %v3222_v62 = vrot.slane %v3221_v54, 4  ;;  %v3263_v1 = vsel %vm60_vm1, %v5994_v8, 0.0  ;;  %4307 = vrcp.f32 %v3133_v18  ;;  %v3205_v59 = vrot.slane %v3204_v56, 1 }
 0xef1   :  { %v4292_v49 = vpop.eup %4291  ;;  %v3264_v48 = vrot.slane %v3263_v1, 4  ;;  %v3184_v24 = vmul.f32 1.442695, %v4290_v60  ;;  %v3217_v55 = vrot.slane %v3216_v12, 2  ;;  %v3212_v52 = vrot.slane %v3211_v31, 1 }
 0xef2   :  { %v6000_v20 = vpop.eup %4293  ;;  %v3223_v4 = vadd.f32 %v3222_v62, %v3221_v54  ;;  %v3192_v5 = vmul.f32 1.442695, %v4292_v49  ;;  %v3206_v22 = vadd.f32 %v3205_v59, %v3204_v56  ;;  %4309 = vpow2.f32 %v3726_v6 }
 0xef3   :  { %v4296_v26 = vpop.eup %4295  ;;  %v3228_v9 = vsel %vm60_vm1, %v6000_v20, 0.0  ;;  %4311 = vpow2.f32 %v3184_v24  ;;  %v3218_v61 = vadd.f32 %v3217_v55, %v3216_v12  ;;  %v3265_v17 = vadd.f32 %v3264_v48, %v3263_v1 }
 0xef4   :  { %v4298_v46 = vpop.eup %4297  ;;  %v3229_v19 = vrot.slane %v3228_v9, 4  ;;  %4313 = vpow2.f32 %v3192_v5  ;;  %v3127_v50 = vadd.f32 1.0, %v4296_v26  ;;  %v3224_v33 = vrot.slane %v3223_v4, 2 }
 0xef5   :  { %v6004_v34 = vpop.eup %4299  ;;  %v3219_v39 = vrot.slane %v3218_v61, 1  ;;  %4315 = vrcp.f32 %v3206_v22  ;;  %v3213_v0 = vadd.f32 %v3212_v52, %v3211_v31  ;;  %v3134_v13 = vadd.f32 1.0, %v4298_v46 }
 0xef6   :  { %v6006_v47 = vpop.eup %4301  ;;  %v3230_v41 = vadd.f32 %v3229_v19, %v3228_v9  ;;  %v3270_v53 = vsel %vm60_vm1, %v6004_v34, 0.0  ;;  %4317 = vrcp.f32 %v3127_v50  ;;  %v3225_v30 = vadd.f32 %v3224_v33, %v3223_v4 }
 0xef7   :  { %v3271_v36 = vrot.slane %v3270_v53, 4  ;;  %v3235_v45 = vsel %vm60_vm1, %v6006_v47, 0.0  ;;  %v3220_v37 = vadd.f32 %v3219_v39, %v3218_v61  ;;  %4319 = vrcp.f32 %v3213_v0  ;;  %v6027_v39 = vpop.permute.xlu1 %3344 }
 0xef8   :  { %v6012_v11 = vpop.eup %4303  ;;  %v3236_v27 = vrot.slane %v3235_v45, 4  ;;  %v3226_v40 = vrot.slane %v3225_v30, 1  ;;  %v3231_v23 = vrot.slane %v3230_v41, 2  ;;  %v3266_v44 = vrot.slane %v3265_v17, 2 }
 0xef9   :  { %v4306_v58 = vpop.eup %4305  ;;  %v3277_v15 = vsel %vm60_vm1, %v6012_v11, 0.0  ;;  %4321 = vrcp.f32 %v3220_v37  ;;  %v3272_v14 = vadd.f32 %v3271_v36, %v3270_v53 }
 0xefa   :  { %v4308_v32 = vpop.eup %4307  ;;  %v3237_v63 = vadd.f32 %v3236_v27, %v3235_v45  ;;  %v3180_v28 = vmul.f32 1.442695, %v4306_v58  ;;  %v3227_v25 = vadd.f32 %v3226_v40, %v3225_v30  ;;  %4323 = vrcp.f32 %v3134_v13 }
 0xefb   :  { %v3194_v51 = vmul.f32 1.442695, %v4308_v32  ;;  %v3232_v57 = vadd.f32 %v3231_v23, %v3230_v41  ;;  %v3278_v42 = vrot.slane %v3277_v15, 4  ;;  %v3273_v56 = vrot.slane %v3272_v14, 2 }
 0xefc   :  { %v4310_v10 = vpop.eup %4309  ;;  %4325 = vpow2.f32 %v3180_v28  ;;  %v3238_v29 = vrot.slane %v3237_v63, 2  ;;  %v3267_v24 = vadd.f32 %v3266_v44, %v3265_v17 }
 0xefd   :  { %v6016_v43 = vpop.eup %4311  ;;  %4327 = vpow2.f32 %v3194_v51  ;;  %v3233_v3 = vrot.slane %v3232_v57, 1  ;;  %v3279_v59 = vadd.f32 %v3278_v42, %v3277_v15  ;;  %v3135_v26 = vadd.f32 1.0, %v4310_v10 }
 0xefe   :  { %v6018_v6 = vpop.eup %4313  ;;  %v3256_v12 = vsel %vm60_vm1, %v6016_v43, 0.0  ;;  %v3239_v18 = vadd.f32 %v3238_v29, %v3237_v63  ;;  %4329 = vrcp.f32 %v3227_v25  ;;  %v3274_v9 = vadd.f32 %v3273_v56, %v3272_v14 }
 0xeff   :  { %v4316_v54 = vpop.eup %4315  ;;  %v3257_v31 = vrot.slane %v3256_v12, 4  ;;  %v3284_v60 = vsel %vm60_vm1, %v6018_v6, 0.0  ;;  %v3234_v62 = vadd.f32 %v3233_v3, %v3232_v57  ;;  %v3268_v17 = vrot.slane %v3267_v24, 1 }
 0xf00   :  { %v4318_v1 = vpop.eup %4317  ;;  %v3285_v49 = vrot.slane %v3284_v60, 4  ;;  %v3240_v48 = vrot.slane %v3239_v18, 1  ;;  %v3328_v4 = vmul.f32 %v4316_v54, %v5976_v21  ;;  %v3280_v0 = vrot.slane %v3279_v59, 2 }
 0xf01   :  { %v3258_v55 = vadd.f32 %v3257_v31, %v3256_v12  ;;  %v3182_v52 = vmul.f32 1.442695, %v4318_v1  ;;  %4331 = vrcp.f32 %v3234_v62  ;;  %v4320_v5 = vpop.eup %4319  ;;  %v3275_v37 = vrot.slane %v3274_v9, 1 }
 0xf02   :  { %v3241_v22 = vadd.f32 %v3240_v48, %v3239_v18  ;;  %v3286_v46 = vadd.f32 %v3285_v49, %v3284_v60  ;;  %v3329_v19 = vmul.f32 %v4320_v5, %v5982_v16  ;;  %v3350_v21 = vmul.f32 %v6027_v39, %v3328_v4 }
 0xf03   :  { %v4322_v61 = vpop.eup %4321  ;;  %4333 = vpow2.f32 %v3182_v52  ;;  %v3259_v50 = vrot.slane %v3258_v55, 2  ;;  %v3281_v45 = vadd.f32 %v3280_v0, %v3279_v59  ;;  %v3269_v15 = vadd.f32 %v3268_v17, %v3267_v24 }
 0xf04   :  { %v3330_v33 = vmul.f32 %v4322_v61, %v5988_v7  ;;  %v4324_v41 = vpop.eup %4323  ;;  %4335 = vrcp.f32 %v3241_v22  ;;  %v3351_v53 = vmul.f32 %v6027_v39, %v3329_v19  ;;  %v3287_v27 = vrot.slane %v3286_v46, 2 }
 0xf05   :  { %v3260_v30 = vadd.f32 %v3259_v50, %v3258_v55  ;;  %4337 = vrcp.f32 %v3135_v26  ;;  %v3366_v63 = vsel %vm60_vm1, %v3350_v21, 0.0  ;;  %v3196_v51 = vmul.f32 1.442695, %v4324_v41 }
 0xf06   :  { %v6031_v36 = vpop.eup %4325  ;;  %v3352_v58 = vmul.f32 %v6027_v39, %v3330_v33  ;;  %v3373_v28 = vsel %vm60_vm1, %v3351_v53, 0.0  ;;  %v3282_v10 = vrot.slane %v3281_v45, 1  ;;  %v3276_v3 = vadd.f32 %v3275_v37, %v3274_v9 }
 0xf07   :  { %v6033_v13 = vpop.eup %4327  ;;  %v3242_v16 = vsel %vm60_vm1, %v6031_v36, 0.0  ;;  %v3261_v7 = vrot.slane %v3260_v30, 1  ;;  %v3288_v12 = vadd.f32 %v3287_v27, %v3286_v46  ;;  %v3367_v18 = vrot.slane %v3366_v63, 4 }
 0xf08   :  { %v4330_v40 = vpop.eup %4329  ;;  %v3291_v23 = vsel %vm60_vm1, %v6033_v13, 0.0  ;;  %v3243_v25 = vrot.slane %v3242_v16, 4  ;;  %v3374_v56 = vrot.slane %v3373_v28, 4  ;;  %v3380_v54 = vsel %vm60_vm1, %v3352_v58, 0.0 }
 0xf09   :  { %v3292_v32 = vrot.slane %v3291_v23, 4  ;;  %v3331_v14 = vmul.f32 %v4330_v40, %v5992_v35  ;;  %v3262_v57 = vadd.f32 %v3261_v7, %v3260_v30  ;;  %v3283_v62 = vadd.f32 %v3282_v10, %v3281_v45 }
 0xf0a   :  { %v3289_v1 = vrot.slane %v3288_v12, 1  ;;  %v3244_v59 = vadd.f32 %v3243_v25, %v3242_v16  ;;  %v3381_v48 = vrot.slane %v3380_v54, 4  ;;  %v3368_v4 = vadd.f32 %v3367_v18, %v3366_v63 }
 0xf0b   :  { %v4332_v42 = vpop.eup %4331  ;;  %v3293_v29 = vadd.f32 %v3292_v32, %v3291_v23  ;;  %v3353_v44 = vmul.f32 %v6027_v39, %v3331_v14  ;;  %4339 = vrcp.f32 %v3262_v57  ;;  %v3375_v5 = vadd.f32 %v3374_v56, %v3373_v28 }
 0xf0c   :  { %v3332_v31 = vmul.f32 %v4332_v42, %v6000_v20  ;;  %4341 = vrcp.f32 %v3269_v15  ;;  %v3245_v22 = vrot.slane %v3244_v59, 2  ;;  %v3290_v50 = vadd.f32 %v3289_v1, %v3288_v12 }
 0xf0d   :  { %v6045_v35 = vpop.eup %4333  ;;  %v3294_v60 = vrot.slane %v3293_v29, 2  ;;  %4343 = vpow2.f32 %v3196_v51  ;;  %v3387_v24 = vsel %vm60_vm1, %v3353_v44, 0.0  ;;  %v3382_v17 = vadd.f32 %v3381_v48, %v3380_v54 }
 0xf0e   :  { %v4336_v49 = vpop.eup %4335  ;;  %4345 = vrcp.f32 %v3276_v3  ;;  %v3249_v26 = vsel %vm60_vm1, %v6045_v35, 0.0  ;;  %v3354_v9 = vmul.f32 %v6027_v39, %v3332_v31  ;;  %v3388_v19 = vrot.slane %v3387_v24, 4 }
 0xf0f   :  { %v3295_v55 = vadd.f32 %v3294_v60, %v3293_v29  ;;  %v4338_v52 = vpop.eup %4337  ;;  %v3333_v20 = vmul.f32 %v4336_v49, %v6006_v47  ;;  %v3250_v46 = vrot.slane %v3249_v26, 4  ;;  %4347 = vrcp.f32 %v3283_v62  ;;  %v6060_v29 = vpop.permute.xlu0 %3346 }
 0xf10   :  { %v3246_v33 = vadd.f32 %v3245_v22, %v3244_v59  ;;  %v3198_v0 = vmul.f32 1.442695, %v4338_v52  ;;  %v3369_v21 = vrot.slane %v3368_v4, 2  ;;  %v3376_v53 = vrot.slane %v3375_v5, 2 }
 0xf11   :  { %v3296_v61 = vrot.slane %v3295_v55, 1  ;;  %v3251_v41 = vadd.f32 %v3250_v46, %v3249_v26  ;;  %v3355_v45 = vmul.f32 %v6027_v39, %v3333_v20  ;;  %4349 = vrcp.f32 %v3290_v50 }
 0xf12   :  { %v3247_v30 = vrot.slane %v3246_v33, 1  ;;  %v3389_v27 = vadd.f32 %v3388_v19, %v3387_v24  ;;  %v3394_v40 = vsel %vm60_vm1, %v3354_v9, 0.0  ;;  %4351 = vpow2.f32 %v3198_v0 }
 0xf13   :  { %v3297_v16 = vadd.f32 %v3296_v61, %v3295_v55  ;;  %v3252_v7 = vrot.slane %v3251_v41, 2  ;;  %v3383_v32 = vrot.slane %v3382_v17, 2  ;;  %v3370_v63 = vadd.f32 %v3369_v21, %v3368_v4 }
 0xf14   :  { %v3248_v47 = vadd.f32 %v3247_v30, %v3246_v33  ;;  %v3377_v28 = vadd.f32 %v3376_v53, %v3375_v5  ;;  %v3395_v57 = vrot.slane %v3394_v40, 4  ;;  %v3401_v10 = vsel %vm60_vm1, %v3355_v45, 0.0 }
 0xf15   :  { %v4340_v37 = vpop.eup %4339  ;;  %v3253_v15 = vadd.f32 %v3252_v7, %v3251_v41  ;;  %v3390_v44 = vrot.slane %v3389_v27, 2  ;;  %v3384_v18 = vadd.f32 %v3383_v32, %v3382_v17  ;;  %v3402_v31 = vrot.slane %v3401_v10, 4 }
 0xf16   :  { %v4342_v23 = vpop.eup %4341  ;;  %v3336_v58 = vmul.f32 %v4340_v37, %v6016_v43  ;;  %4353 = vrcp.f32 %v3248_v47  ;;  %v3371_v60 = vrot.slane %v3370_v63, 1  ;;  %v3378_v62 = vrot.slane %v3377_v28, 1 }
 0xf17   :  { %v6056_v14 = vpop.eup %4343  ;;  %4355 = vrcp.f32 %v3297_v16  ;;  %v3254_v51 = vrot.slane %v3253_v15, 1  ;;  %v3337_v42 = vmul.f32 %v4342_v23, %v5994_v8  ;;  %v3396_v1 = vadd.f32 %v3395_v57, %v3394_v40 }
 0xf18   :  { %v4346_v25 = vpop.eup %4345  ;;  %v3298_v43 = vsel %vm60_vm1, %v6056_v14, 0.0  ;;  %v3358_v3 = vmul.f32 %v6060_v29, %v3336_v58  ;;  %v3391_v49 = vadd.f32 %v3390_v44, %v3389_v27  ;;  %v3385_v55 = vrot.slane %v3384_v18, 1 }
 0xf19   :  { %v3255_v12 = vadd.f32 %v3254_v51, %v3253_v15  ;;  %v4348_v56 = vpop.eup %4347  ;;  %v3338_v54 = vmul.f32 %v4346_v25, %v6004_v34  ;;  %v3299_v59 = vrot.slane %v3298_v43, 4  ;;  %v3359_v8 = vmul.f32 %v6060_v29, %v3337_v42 }
 0xf1a   :  { %v3339_v48 = vmul.f32 %v4348_v56, %v6012_v11  ;;  %v3422_v24 = vsel %vm60_vm1, %v3358_v3, 0.0  ;;  %v3403_v5 = vadd.f32 %v3402_v31, %v3401_v10  ;;  %v3372_v34 = vadd.f32 %v3371_v60, %v3370_v63 }
 0xf1b   :  { %4357 = vrcp.f32 %v3255_v12  ;;  %v4350_v52 = vpop.eup %4349  ;;  %v3360_v4 = vmul.f32 %v6060_v29, %v3338_v54  ;;  %v3379_v26 = vadd.f32 %v3378_v62, %v3377_v28  ;;  %v3397_v20 = vrot.slane %v3396_v1, 2 }
 0xf1c   :  { %v6070_v22 = vpop.eup %4351  ;;  %v3423_v61 = vrot.slane %v3422_v24, 4  ;;  %v3429_v46 = vsel %vm60_vm1, %v3359_v8, 0.0  ;;  %v3392_v19 = vrot.slane %v3391_v49, 1  ;;  %v3300_v50 = vadd.f32 %v3299_v59, %v3298_v43 }
 0xf1d   :  { %v3340_v11 = vmul.f32 %v4350_v52, %v6018_v6  ;;  %v3361_v17 = vmul.f32 %v6060_v29, %v3339_v48  ;;  %v3386_v41 = vadd.f32 %v3385_v55, %v3384_v18  ;;  %v3436_v21 = vsel %vm60_vm1, %v3360_v4, 0.0 }
 0xf1e   :  { %v3404_v53 = vrot.slane %v3403_v5, 2  ;;  %v3301_v30 = vrot.slane %v3300_v50, 2  ;;  %v3305_v45 = vsel %vm60_vm1, %v6070_v22, 0.0  ;;  %v3430_v16 = vrot.slane %v3429_v46, 4 }
 0xf1f   :  { %v3398_v37 = vadd.f32 %v3397_v20, %v3396_v1  ;;  %v3306_v47 = vrot.slane %v3305_v45, 4  ;;  %v3424_v6 = vadd.f32 %v3423_v61, %v3422_v24  ;;  %v3393_v40 = vadd.f32 %v3392_v19, %v3391_v49 }
 0xf20   :  { %v4354_v9 = vpop.eup %4353  ;;  %v3302_v23 = vadd.f32 %v3301_v30, %v3300_v50  ;;  %v3443_v15 = vsel %vm60_vm1, %v3361_v17, 0.0  ;;  %v3405_v25 = vadd.f32 %v3404_v53, %v3403_v5  ;;  %v3362_v10 = vmul.f32 %v6060_v29, %v3340_v11 }
 0xf21   :  { %v4356_v33 = vpop.eup %4355  ;;  %v3334_v0 = vmul.f32 %v4354_v9, %v6031_v36  ;;  %v3437_v36 = vrot.slane %v3436_v21, 4  ;;  %v3307_v63 = vadd.f32 %v3306_v47, %v3305_v45  ;;  %v3431_v42 = vadd.f32 %v3430_v16, %v3429_v46 }
 0xf22   :  { %v3341_v27 = vmul.f32 %v4356_v33, %v6033_v13  ;;  %v3303_v57 = vrot.slane %v3302_v23, 1  ;;  %v3399_v44 = vrot.slane %v3398_v37, 1  ;;  %v3425_v56 = vrot.slane %v3424_v6, 2 }
 0xf23   :  { %v3356_v7 = vmul.f32 %v6027_v39, %v3334_v0  ;;  %v3308_v13 = vrot.slane %v3307_v63, 2  ;;  %v3438_v54 = vadd.f32 %v3437_v36, %v3436_v21  ;;  %v3444_v31 = vrot.slane %v3443_v15, 4 }
 0xf24   :  { %v3363_v43 = vmul.f32 %v6060_v29, %v3341_v27  ;;  %v3304_v18 = vadd.f32 %v3303_v57, %v3302_v23  ;;  %v3406_v62 = vrot.slane %v3405_v25, 1  ;;  %v3478_v8 = vmul.f32 0.125, %v3372_v34 }
 0xf25   :  { %v4358_v58 = vpop.eup %4357  ;;  %v3408_v32 = vsel %vm60_vm1, %v3356_v7, 0.0  ;;  %v3309_v60 = vadd.f32 %v3308_v13, %v3307_v63  ;;  %v3450_v48 = vsel %vm60_vm1, %v3362_v10, 0.0  ;;  %v3432_v24 = vrot.slane %v3431_v42, 2 }
 0xf26   :  { %v3335_v28 = vmul.f32 %v4358_v58, %v6045_v35  ;;  %v3409_v51 = vrot.slane %v3408_v32, 4  ;;  %4359 = vrcp.f32 %v3304_v18  ;;  %v3400_v55 = vadd.f32 %v3399_v44, %v3398_v37 }
 0xf27   :  { %v3310_v49 = vrot.slane %v3309_v60, 1  ;;  %v3479_v5 = vmul.f32 0.125, %v3379_v26  ;;  %v3480_v20 = vmul.f32 0.125, %v3386_v41  ;;  %v3407_v61 = vadd.f32 %v3406_v62, %v3405_v25 }
 0xf28   :  { %v3357_v3 = vmul.f32 %v6027_v39, %v3335_v28  ;;  %v3410_v12 = vadd.f32 %v3409_v51, %v3408_v32  ;;  %v3457_v39 = vsel %vm60_vm1, %v3363_v43, 0.0  ;;  %v3426_v19 = vadd.f32 %v3425_v56, %v3424_v6 }
 0xf29   :  { %v3311_v9 = vadd.f32 %v3310_v49, %v3309_v60  ;;  %v3451_v50 = vrot.slane %v3450_v48, 4  ;;  %v3445_v11 = vadd.f32 %v3444_v31, %v3443_v15  ;;  %v3458_v34 = vrot.slane %v3457_v39, 4 }
 0xf2a   :  { %v3411_v35 = vrot.slane %v3410_v12, 2  ;;  %v3415_v1 = vsel %vm60_vm1, %v3357_v3, 0.0  ;;  %v3481_v0 = vmul.f32 0.125, %v3393_v40  ;;  %v3439_v21 = vrot.slane %v3438_v54, 2 }
 0xf2b   :  { %v3416_v59 = vrot.slane %v3415_v1, 4  ;;  %4361 = vrcp.f32 %v3311_v9  ;;  %v3482_v30 = vmul.f32 0.125, %v3400_v55  ;;  %v3433_v45 = vadd.f32 %v3432_v24, %v3431_v42 }
 0xf2c   :  { %v3412_v52 = vadd.f32 %v3411_v35, %v3410_v12  ;;  %v3483_v16 = vmul.f32 0.125, %v3407_v61  ;;  %v3510_v7 = vsel %vm1143_vm2, %v3479_v5, %v3478_v8  ;;  %v3427_v26 = vrot.slane %v3426_v19, 1 }
 0xf2d   :  { %v3417_v4 = vadd.f32 %v3416_v59, %v3415_v1  ;;  %v3452_v41 = vadd.f32 %v3451_v50, %v3450_v48  ;;  %v3511_v47 = vsel %vm1145_vm3, %v3480_v20, %v3510_v7  ;;  %v3446_v27 = vrot.slane %v3445_v11, 2 }
 0xf2e   :  { %v3413_v46 = vrot.slane %v3412_v52, 1  ;;  %v3459_v6 = vadd.f32 %v3458_v34, %v3457_v39  ;;  %v3512_v36 = vsel %vm1147_vm4, %v3481_v0, %v3511_v47  ;;  %v3440_v15 = vadd.f32 %v3439_v21, %v3438_v54 }
 0xf2f   :  { %v3418_v33 = vrot.slane %v3417_v4, 2  ;;  %v3513_v32 = vsel %vm1149_vm5, %v3482_v30, %v3512_v36  ;;  %v3434_v28 = vrot.slane %v3433_v45, 1  ;;  %v3428_v51 = vadd.f32 %v3427_v26, %v3426_v19 }
 0xf30   :  { %v3414_v17 = vadd.f32 %v3413_v46, %v3412_v52  ;;  %v4360_v23 = vpop.eup %4359  ;;  %v3514_v25 = vsel %vm1151_vm6, %v3483_v16, %v3513_v32  ;;  %v3453_v57 = vrot.slane %v3452_v41, 2  ;;  %v3447_v44 = vadd.f32 %v3446_v27, %v3445_v11 }
 0xf31   :  { %v3419_v53 = vadd.f32 %v3418_v33, %v3417_v4  ;;  %v3342_v63 = vmul.f32 %v4360_v23, %v6056_v14  ;;  %v3460_v13 = vrot.slane %v3459_v6, 2  ;;  %v3441_v3 = vrot.slane %v3440_v15, 1 }
 0xf32   :  { %v3484_v58 = vmul.f32 0.125, %v3414_v17  ;;  %v3435_v56 = vadd.f32 %v3434_v28, %v3433_v45  ;;  %v3454_v31 = vadd.f32 %v3453_v57, %v3452_v41  ;;  %v3448_v62 = vrot.slane %v3447_v44, 1 }
 0xf33   :  { %v3420_v37 = vrot.slane %v3419_v53, 1  ;;  %v3364_v42 = vmul.f32 %v6060_v29, %v3342_v63  ;;  %v3461_v35 = vadd.f32 %v3460_v13, %v3459_v6  ;;  %v3486_v1 = vmul.f32 0.125, %v3428_v51 }
 0xf34   :  { %v3515_v43 = vsel %vm1153_vm7, %v3484_v58, %v3514_v25  ;;  %v3442_v8 = vadd.f32 %v3441_v3, %v3440_v15  ;;  %v3487_v48 = vmul.f32 0.125, %v3435_v56  ;;  %v3455_v24 = vrot.slane %v3454_v31, 1 }
 0xf35   :  { %v3421_v40 = vadd.f32 %v3420_v37, %v3419_v53  ;;  %v4362_v12 = vpop.eup %4361  ;;  %v3464_v54 = vsel %vm60_vm1, %v3364_v42, 0.0  ;;  %v3449_v39 = vadd.f32 %v3448_v62, %v3447_v44  ;;  %v3462_v4 = vrot.slane %v3461_v35, 1 }
 0xf36   :  { %v3343_v14 = vmul.f32 %v4362_v12, %v6070_v22  ;;  %v3465_v60 = vrot.slane %v3464_v54, 4  ;;  %v3517_v20 = vsel %vm1143_vm2, %v3487_v48, %v3486_v1  ;;  %v3488_v9 = vmul.f32 0.125, %v3442_v8 }
 0xf37   :  { %v3485_v10 = vmul.f32 0.125, %v3421_v40  ;;  %v3456_v46 = vadd.f32 %v3455_v24, %v3454_v31  ;;  %v3489_v11 = vmul.f32 0.125, %v3449_v39 }
 0xf38   :  { %v3365_v59 = vmul.f32 %v6060_v29, %v3343_v14  ;;  %v3466_v49 = vadd.f32 %v3465_v60, %v3464_v54  ;;  %v3518_v50 = vsel %vm1145_vm3, %v3488_v9, %v3517_v20  ;;  %v3463_v29 = vadd.f32 %v3462_v4, %v3461_v35 }
 0xf39   :  { %v3516_v18 = vsel %vm1155_vm8, %v3485_v10, %v3515_v43  ;;  %v3519_v0 = vsel %vm1147_vm4, %v3489_v11, %v3518_v50  ;;  %v3490_v21 = vmul.f32 0.125, %v3456_v46 }
 0xf3a   :  { %3524 = vrot.lane.b32.xlu1 %v3516_v18, %s4398_s13  ;;  %v3467_v55 = vrot.slane %v3466_v49, 2  ;;  %v3471_v52 = vsel %vm60_vm1, %v3365_v59, 0.0  ;;  %v3491_v30 = vmul.f32 0.125, %v3463_v29  ;;  %v6200_v59 = vld [vmem:[#allocation9_spill] sm:$0xff] }
 0xf3b   :  { %v3472_v5 = vrot.slane %v3471_v52, 4  ;;  %v3520_v16 = vsel %vm1149_vm5, %v3490_v21, %v3519_v0  ;;  %v6201_v8 = vmax.f32 %v6200_v59, 0.0 }
 0xf3c   :  { %v3468_v22 = vadd.f32 %v3467_v55, %v3466_v49  ;;  %v3521_v41 = vsel %vm1151_vm6, %v3491_v30, %v3520_v16  ;;  %v6202_v55 = vld [vmem:[#allocation10_spill] sm:$0xff] }
 0xf3d   :  { %v3473_v61 = vadd.f32 %v3472_v5, %v3471_v52  ;;  %v6203_v52 = vmax.f32 %v6202_v55, 0.0 }
 0xf3e   :  { %v3469_v19 = vrot.slane %v3468_v22, 1 }
 0xf3f   :  { %v3474_v33 = vrot.slane %v3473_v61, 2 }
 0xf40   :  { %v3470_v34 = vadd.f32 %v3469_v19, %v3468_v22 }
 0xf41   :  { %v3475_v17 = vadd.f32 %v3474_v33, %v3473_v61 }
 0xf42   :  { %v3492_v45 = vmul.f32 0.125, %v3470_v34 }
 0xf43   :  { %v3476_v53 = vrot.slane %v3475_v17, 1 }
 0xf44   :  { %v3522_v37 = vsel %vm1153_vm7, %v3492_v45, %v3521_v41 }
 0xf45   :  { %v3477_v7 = vadd.f32 %v3476_v53, %v3475_v17 }
 0xf47   :  { %v3493_v26 = vmul.f32 0.125, %v3477_v7 }
 0xf49   :  { %v3523_v47 = vsel %vm1155_vm8, %v3493_v26, %v3522_v37 }
 0xf4a   :  { %3526 = vrot.lane.b32.xlu1 %v3523_v47, %s4398_s13 }
 0xfac   :  { %v3525_v27 = vpop.permute.xlu1 %3524 }
 0xfad   :  { %v3530_v6 = vadd.f32 %v3525_v27, %v5636_v2 }
 0xfaf   :  { %3534 = vrot.lane.b32.xlu0 %v3530_v6, %s4398_s13 }
 0xfbc   :  { %v3527_v23 = vpop.permute.xlu1 %3526 }
 0xfbd   :  { %v3531_v58 = vadd.f32 %v3527_v23, %v5640_v38 }
 0xfbf   :  { %3536 = vrot.lane.b32.xlu1 %v3531_v58, %s4398_s13 }
0x1021   :  { %v3535_v36 = vpop.permute.xlu0 %3534 }
0x1022   :  { %v3540_v15 = vsel %vm60_vm1, %v3535_v36, 0.0 }
0x1023   :  { %3541 = vadd.xlane.f32.xlu0 %v3540_v15 }
0x1031   :  { %v3537_v40 = vpop.permute.xlu1 %3536 }
0x1032   :  { %v3543_v32 = vsel %vm60_vm1, %v3537_v40, 0.0 }
0x1033   :  { %3544 = vadd.xlane.f32.xlu1 %v3543_v32 }
0x10b0   :  { %v3542_v63 = vpop.xlane.xlu0 %3541 }
0x10b1   :  { %v3546_v28 = vmul.f32 0.03125, %v3542_v63 }
0x10b3   :  { %v3548_v25 = vsub.f32 %v3530_v6, %v3546_v28 }
0x10b5   :  { %v3550_v51 = vmul.f32 %v3548_v25, %v3548_v25 }
0x10b7   :  { %3554 = vrot.lane.b32.xlu0 %v3550_v51, %s4398_s13 }
0x10c0   :  { %v3545_v2 = vpop.xlane.xlu1 %3544 }
0x10c1   :  { %v3547_v57 = vmul.f32 0.03125, %v3545_v2 }
0x10c3   :  { %v3549_v10 = vsub.f32 %v3531_v58, %v3547_v57 }
0x10c5   :  { %v3551_v38 = vmul.f32 %v3549_v10, %v3549_v10 }
0x10c7   :  { %3556 = vrot.lane.b32.xlu1 %v3551_v38, %s4398_s13 }
0x1129   :  { %v3555_v42 = vpop.permute.xlu0 %3554 }
0x112a   :  { %v3560_v44 = vsel %vm60_vm1, %v3555_v42, 0.0 }
0x112b   :  { %3561 = vadd.xlane.f32.xlu0 %v3560_v44 }
0x1139   :  { %v3557_v13 = vpop.permute.xlu1 %3556 }
0x113a   :  { %v3563_v43 = vsel %vm60_vm1, %v3557_v13, 0.0 }
0x113b   :  { %3564 = vadd.xlane.f32.xlu1 %v3563_v43 }
0x11b8   :  { %v3562_v3 = vpop.xlane.xlu0 %3561 }
0x11b9   :  { %v3566_v12 = vmul.f32 0.03125, %v3562_v3 }
0x11bb   :  { %v3568_v18 = vadd.f32 1e-05, %v3566_v12 }
0x11bd   :  { %4363 = vrsqrt.f32 %v3568_v18 }
0x11c7   :  { %v4364_v56 = vpop.eup %4363 }
0x11c8   :  { %v3572_v54 = vmul.f32 %v4364_v56, %v3548_v25  ;;  %v3565_v14 = vpop.xlane.xlu1 %3564 }
0x11c9   :  { %v3567_v31 = vmul.f32 0.03125, %v3565_v14 }
0x11ca   :  { %3576 = vrot.lane.b32.xlu0 %v3572_v54, %s4398_s13 }
0x11cb   :  { %v3569_v60 = vadd.f32 1e-05, %v3567_v31 }
0x11cd   :  { %4365 = vrsqrt.f32 %v3569_v60 }
0x11d7   :  { %v4366_v62 = vpop.eup %4365 }
0x11d8   :  { %v3573_v35 = vmul.f32 %v4366_v62, %v3549_v10 }
0x11da   :  { %3578 = vrot.lane.b32.xlu1 %v3573_v35, %s4398_s13 }
0x123c   :  { %v3577_v1 = vpop.permute.xlu0 %3576 }
0x123d   :  { %v3582_v49 = vadd.f32 %v3577_v1, %v6201_v8 }
0x123f   :  { %v3584_v48 = vmax.f32 %v3582_v49, 0.0 }
0x1241   :  { %3586 = vst.msk [vmem:[#allocation2] sm:$0xff] %vm60_vm1, %v3584_v48 }
0x124c   :  { %v3579_v24 = vpop.permute.xlu1 %3578 }
0x124d   :  { %v3583_v39 = vadd.f32 %v3579_v24, %v6203_v52 }
0x124f   :  { %v3585_v4 = vmax.f32 %v3583_v39, 0.0 }
0x1251   :  { %3587 = vst.msk [vmem:[#allocation2 + $0x8] sm:$0xff] %vm60_vm1, %v3585_v4 }
0x1252   :  { %4380 = shalt.err (!%p4377_p4)
}
0x1253   :  { %s4381_s1 = scalar_lea.hbm %s6146_s4, 256 }
0x1254   :  { %p4382_p5 = scmp.ne.s32.totalorder %s6146_s4, %s4381_s1  ;;  %p4385_p6 = scmp.lt.u32.totalorder %s4381_s1, %s6146_s4 }
0x1256   :  { %p4387_p7 = pnand %p4385_p6, %p4382_p5 }
0x1258   :  { %4390 = shalt.err (!%p4387_p7)
}
0x1259   :  { %s4400_s18 = smov 128   ;;  %s4401_s19 = smov 8  }
0x125a   :  { %3615 = dma.vmem_to_hbm [thread:$0]  %s3610_s10, 256, %s6146_s4, [#allocation3], %s4400_s18, %s4400_s18, %s4401_s19  }
0x125b   :  { %4391 = dma.done.wait [#allocation3], 256  }
0x125c   :  { %4392 = vsyncadd [#allocation3], 4294967040 }
0x125d   :  { %3623 = vsyncpa [#allocation3], 1 }

</bundles_post_ra>
